<compile_context>
chip_gen: v7x
topology: tpu7x:2x2x1
jax: 0.10.0
libtpu: 0.0.40
codegen_flags: <defaults>
</compile_context>

<pallas_src>
import jax
import jax.numpy as jnp
from jax.experimental import pallas as pl
from jax.experimental.pallas import tpu as pltpu

INPUT_SIZE = 1201
HIDDEN_SIZE1 = 1000
HIDDEN_SIZE2 = 500     # unused: fc3 path is unreachable/ill-typed in the reference
NUM_CLASSES = 51

LANE = 128


def _round_up(x, m):
    return (x + m - 1) // m * m


def mlp_kernel(x_ref, w1_ref, b1_ref, w2_ref, b2_ref, o_ref):
    # fc1: x @ W1 + b1, then ReLU (relu1).  x arrives f32 and is cast to bf16
    # in-VMEM (avoids an extra HBM pass in the wrapper); f32 MXU accumulation.
    x = x_ref[...].astype(jnp.bfloat16)
    h = jnp.dot(x, w1_ref[...], preferred_element_type=jnp.float32)
    h = jnp.maximum(h + b1_ref[...], 0.0)
    # fc2: h @ W2 + b2 (h cast back to bf16 for the MXU; accumulate in f32).
    out = jnp.dot(h.astype(jnp.bfloat16), w2_ref[...],
                  preferred_element_type=jnp.float32)
    o_ref[...] = out + b2_ref[...]
    # TODO(synk): relu2()/fc3 from the reference forward are not implemented:
    # relu2 is invoked with no tensor and fc3's input dim (500) mismatches
    # fc2's output dim (51), so that part of the graph cannot execute.


def prepare_params(w1, b1, w2, b2):
    """One-time: transpose weights to (in, out), pad the *output* dims to lane
    multiples, cast to bf16.  Padding is exact: padded hidden units are
    relu(0 + 0) = 0 and feed zero W2 rows; padded class columns stay 0 and are
    sliced off.  The input-feature dim (1201) is left unpadded - the kernel
    consumes x at its natural width and Mosaic masks the ragged contraction.
    Call once and keep the returned arrays resident on device.
    """
    H, D_in = w1.shape
    C = w2.shape[0]
    Hp = _round_up(H, LANE)
    Cp = _round_up(C, LANE)

    w1_p = jnp.zeros((D_in, Hp), jnp.bfloat16).at[:, :H].set(
        w1.T.astype(jnp.bfloat16))
    b1_p = jnp.zeros((1, Hp), jnp.float32).at[0, :H].set(b1)
    w2_p = jnp.zeros((Hp, Cp), jnp.bfloat16).at[:H, :C].set(
        w2.T.astype(jnp.bfloat16))
    b2_p = jnp.zeros((1, Cp), jnp.float32).at[0, :C].set(b2)
    return (w1_p, b1_p, w2_p, b2_p), (D_in, H, C)


def _pick_batch_tile(B):
    # Perf-review tiling:
    #  - TB in the 512-1024 range so the ~0.35 us/step pipeline overhead is
    #    <10% of each step's MXU time on v6e/v7x.
    #  - 512 < B <= 2048: cap TB at 512 so the "parallel" grid axis has >=2
    #    steps and v7x's two TensorCores can split the batch.
    #  - B > 2048: TB = 1024 (footprint ~24 MiB incl. double-buffered f32 x,
    #    single-buffered weights, h scratch - inside v7x's 64 MiB VMEM).
    #  - B <= 512: a single full-batch block (block dims equal the array dims,
    #    so any B - even non-multiples of 8 - is legal); batch is never padded.
    if B <= 512:
        return B
    if B <= 2048:
        return 512
    return 1024


def net_forward(x, params, num_classes=NUM_CLASSES):
    """x: (B, INPUT_SIZE) f32.  Returns (B, num_classes) f32."""
    w1_p, b1_p, w2_p, b2_p = params
    B, D_in = x.shape
    Hp = w1_p.shape[1]
    Cp = w2_p.shape[1]

    TB = _pick_batch_tile(B)
    steps = pl.cdiv(B, TB)   # ragged last block: reads clamped, writes masked

    # Grid-invariant operands are single-buffered: their index_map is constant
    # so a second pipeline buffer would only waste VMEM.
    resident = dict(pipeline_mode=pl.Buffered(1))

    out_p = pl.pallas_call(
        mlp_kernel,
        out_shape=jax.ShapeDtypeStruct((B, Cp), jnp.float32),
        grid_spec=pl.GridSpec(
            grid=(steps,),
            in_specs=[
                pl.BlockSpec((TB, D_in), lambda i: (i, 0)),              # x tile
                pl.BlockSpec((D_in, Hp), lambda i: (0, 0), **resident),  # W1
                pl.BlockSpec((1, Hp), lambda i: (0, 0), **resident),     # b1
                pl.BlockSpec((Hp, Cp), lambda i: (0, 0), **resident),    # W2
                pl.BlockSpec((1, Cp), lambda i: (0, 0), **resident),     # b2
            ],
            out_specs=pl.BlockSpec((TB, Cp), lambda i: (i, 0)),
        ),
        compiler_params=pltpu.CompilerParams(
            dimension_semantics=("parallel",),
            # ~24 MiB worst-case footprint at TB=1024; 48 MiB leaves headroom
            # on v5e/v6e (128 MiB) and stays inside v7x's 64 MiB VMEM.
            vmem_limit_bytes=48 << 20,
        ),
    )(x, w1_p, b1_p, w2_p, b2_p)

    # TODO(synk): at tiny batch the kernel is pure exposed weight-DMA latency;
    # a cross-pallas_call weight prefetch (P10) would hide it behind preceding
    # XLA work.  Not implemented to keep the forward a single call.
    return out_p[:, :num_classes]


def init_params(key):
    """Deterministic init mimicking nn.Linear default: U(-1/sqrt(fan_in), +)."""
    k1, k2, k3, k4 = jax.random.split(key, 4)
    bound1 = 1.0 / jnp.sqrt(INPUT_SIZE)
    w1 = jax.random.uniform(k1, (HIDDEN_SIZE1, INPUT_SIZE), jnp.float32,
                            -bound1, bound1)
    b1 = jax.random.uniform(k2, (HIDDEN_SIZE1,), jnp.float32, -bound1, bound1)
    bound2 = 1.0 / jnp.sqrt(HIDDEN_SIZE1)
    w2 = jax.random.uniform(k3, (NUM_CLASSES, HIDDEN_SIZE1), jnp.float32,
                            -bound2, bound2)
    b2 = jax.random.uniform(k4, (NUM_CLASSES,), jnp.float32, -bound2, bound2)
    return w1, b1, w2, b2


if __name__ == "__main__":
    key = jax.random.PRNGKey(0)
    k_params, k_x = jax.random.split(key)
    w1, b1, w2, b2 = init_params(k_params)

    # Hoist weight transpose / pad / bf16 cast out of the per-call path.
    params, _ = prepare_params(w1, b1, w2, b2)
    params = jax.block_until_ready(params)

    batch = 4
    x = jax.random.normal(k_x, (batch, INPUT_SIZE), jnp.float32)

    fwd = jax.jit(net_forward, static_argnames=("num_classes",))
    out = fwd(x, params)
    out = jax.block_until_ready(out)

    # Pure-JAX reference with the same bf16 weight/activation quantization and
    # exact (HIGHEST precision) f32 matmuls.
    hp = jax.lax.Precision.HIGHEST
    xb = x.astype(jnp.bfloat16).astype(jnp.float32)
    w1b = w1.astype(jnp.bfloat16).astype(jnp.float32)
    w2b = w2.astype(jnp.bfloat16).astype(jnp.float32)
    h_ref = jnp.maximum(jnp.dot(xb, w1b.T, precision=hp) + b1, 0.0)
    h_ref = h_ref.astype(jnp.bfloat16).astype(jnp.float32)
    ref = jnp.dot(h_ref, w2b.T, precision=hp) + b2

    assert out.shape == (batch, NUM_CLASSES)
    assert jnp.allclose(out, ref, atol=1e-2, rtol=1e-2), (
        float(jnp.max(jnp.abs(out - ref))))

    print("KERNEL_OK")
</pallas_src>

<mosaic_0001>
module attributes {stable_mosaic.version = 11 : i64} {
  func.func @mlp_kernel(%arg0: i32, %arg1: memref<4x1201xf32, #tpu.memory_space<vmem>>, %arg2: memref<1201x1024xbf16, #tpu.memory_space<vmem>>, %arg3: memref<1x1024xf32, #tpu.memory_space<vmem>>, %arg4: memref<1024x128xbf16, #tpu.memory_space<vmem>>, %arg5: memref<1x128xf32, #tpu.memory_space<vmem>>, %arg6: memref<4x128xf32, #tpu.memory_space<vmem>>) attributes {dimension_semantics = [#tpu.dimension_semantics<parallel>], iteration_bounds = array<i64: 1>, scalar_prefetch = 0 : i64, scratch_operands = 0 : i64, tpu.core_type = #tpu.core_type<tc>, window_params = [{transform_indices = @transform_0, window_bounds = array<i64: 4, 1201>}, {pipeline_mode = #tpu.pipeline_mode<synchronous>, transform_indices = @transform_1, window_bounds = array<i64: 1201, 1024>}, {pipeline_mode = #tpu.pipeline_mode<synchronous>, transform_indices = @transform_2, window_bounds = array<i64: 1, 1024>}, {pipeline_mode = #tpu.pipeline_mode<synchronous>, transform_indices = @transform_3, window_bounds = array<i64: 1024, 128>}, {pipeline_mode = #tpu.pipeline_mode<synchronous>, transform_indices = @transform_4, window_bounds = array<i64: 1, 128>}, {transform_indices = @transform_5, window_bounds = array<i64: 4, 128>}]} {
    %c0 = arith.constant 0 : index
    %c0_0 = arith.constant 0 : index
    %0 = vector.load %arg1[%c0, %c0_0] : memref<4x1201xf32, #tpu.memory_space<vmem>>, vector<4x1201xf32>
    %1 = arith.truncf %0 : vector<4x1201xf32> to vector<4x1201xbf16>
    %c0_1 = arith.constant 0 : index
    %c0_2 = arith.constant 0 : index
    %2 = vector.load %arg2[%c0_1, %c0_2] : memref<1201x1024xbf16, #tpu.memory_space<vmem>>, vector<1201x1024xbf16>
    %cst = arith.constant dense<0.000000e+00> : vector<4x1024xf32>
    %3 = tpu.matmul %1, %2, %cst {dimension_numbers = #tpu.dot_dimension_numbers<[1], [0], [0], [1], [0, 0, 1, 1], [], []>} : vector<4x1201xbf16>, vector<1201x1024xbf16>, vector<4x1024xf32> -> vector<4x1024xf32>
    %c0_3 = arith.constant 0 : index
    %c0_4 = arith.constant 0 : index
    %4 = vector.load %arg3[%c0_3, %c0_4] : memref<1x1024xf32, #tpu.memory_space<vmem>>, vector<1x1024xf32>
    %5 = vector.broadcast %4 : vector<1x1024xf32> to vector<4x1024xf32>
    %6 = arith.addf %3, %5 : vector<4x1024xf32>
    %cst_5 = arith.constant 0.000000e+00 : f32
    %7 = vector.broadcast %cst_5 : f32 to vector<4x1024xf32>
    %8 = arith.maximumf %6, %7 : vector<4x1024xf32>
    %9 = arith.truncf %8 : vector<4x1024xf32> to vector<4x1024xbf16>
    %c0_6 = arith.constant 0 : index
    %c0_7 = arith.constant 0 : index
    %10 = vector.load %arg4[%c0_6, %c0_7] : memref<1024x128xbf16, #tpu.memory_space<vmem>>, vector<1024x128xbf16>
    %cst_8 = arith.constant dense<0.000000e+00> : vector<4x128xf32>
    %11 = tpu.matmul %9, %10, %cst_8 {dimension_numbers = #tpu.dot_dimension_numbers<[1], [0], [0], [1], [0, 0, 1, 1], [], []>} : vector<4x1024xbf16>, vector<1024x128xbf16>, vector<4x128xf32> -> vector<4x128xf32>
    %c0_9 = arith.constant 0 : index
    %c0_10 = arith.constant 0 : index
    %12 = vector.load %arg5[%c0_9, %c0_10] : memref<1x128xf32, #tpu.memory_space<vmem>>, vector<1x128xf32>
    %13 = vector.broadcast %12 : vector<1x128xf32> to vector<4x128xf32>
    %14 = arith.addf %11, %13 : vector<4x128xf32>
    %c0_11 = arith.constant 0 : index
    %c0_12 = arith.constant 0 : index
    %15 = vector.load %arg6[%c0_11, %c0_12] : memref<4x128xf32, #tpu.memory_space<vmem>>, vector<4x128xf32>
    tpu.vector_store %arg6[%c0_11, %c0_12], %14 {strides = array<i32>} : memref<4x128xf32, #tpu.memory_space<vmem>>, vector<4x128xf32>,
    return
  }
  func.func @transform_0(%arg0: i32) -> (i32, i32) {
    %c0_i32 = arith.constant 0 : i32
    %c0_i32_0 = arith.constant 0 : i32
    return %arg0, %c0_i32 : i32, i32
  }
  func.func @transform_1(%arg0: i32) -> (i32, i32) {
    %c0_i32 = arith.constant 0 : i32
    %c0_i32_0 = arith.constant 0 : i32
    %c0_i32_1 = arith.constant 0 : i32
    return %c0_i32, %c0_i32_0 : i32, i32
  }
  func.func @transform_2(%arg0: i32) -> (i32, i32) {
    %c0_i32 = arith.constant 0 : i32
    %c0_i32_0 = arith.constant 0 : i32
    %c0_i32_1 = arith.constant 0 : i32
    return %c0_i32, %c0_i32_0 : i32, i32
  }
  func.func @transform_3(%arg0: i32) -> (i32, i32) {
    %c0_i32 = arith.constant 0 : i32
    %c0_i32_0 = arith.constant 0 : i32
    %c0_i32_1 = arith.constant 0 : i32
    return %c0_i32, %c0_i32_0 : i32, i32
  }
  func.func @transform_4(%arg0: i32) -> (i32, i32) {
    %c0_i32 = arith.constant 0 : i32
    %c0_i32_0 = arith.constant 0 : i32
    %c0_i32_1 = arith.constant 0 : i32
    return %c0_i32, %c0_i32_0 : i32, i32
  }
  func.func @transform_5(%arg0: i32) -> (i32, i32) {
    %c0_i32 = arith.constant 0 : i32
    %c0_i32_0 = arith.constant 0 : i32
    return %arg0, %c0_i32 : i32, i32
  }
}

</mosaic_0001>

<bundles_post_ra>
// kernel: net_forward.1
= control target key start
LH: loop header
LB: loop body
LE: loop exit
PB: predicated region body
PF: predicated region fallthrough
CT: control target
= control target key end

     0   :  { %10 = vsyncpa [#allocation3], 0  ;;  %s6658_s0 = inlined_call_operand.hbm [shape: f32[4,1201], index: 0, kind: input, shape index: {}]   ;;  %s6659_s1 = inlined_call_operand.hbm [shape: bf16[1201,1024], index: 1, kind: input, shape index: {}]   ;;  %s6660_s2 = inlined_call_operand.hbm [shape: f32[1,1024], index: 2, kind: input, shape index: {}]   ;;  %s6661_s3 = inlined_call_operand.hbm [shape: bf16[1024,128], index: 3, kind: input, shape index: {}]   ;;  %s6662_s4 = inlined_call_operand.hbm [shape: f32[1,128], index: 4, kind: input, shape index: {}]   ;;  %s6663_s5 = inlined_call_operand.hbm [shape: f32[4,128], index: 5, kind: output, shape index: {}]  }
   0x1   :  { %11 = vsyncpa [#allocation6], 0 }
   0x2   :  { %12 = vsyncpa [#allocation9], 0 }
   0x3   :  { %13 = vsyncpa [#allocation4], 0  ;;  %s6409_s18 = smov [#allocation5]   ;;  %s6269_s22 = scalar_lea.hbm %s6659_s1, 77312 }
   0x4   :  { %s29_s19 = sshll.u32 %s6409_s18, 4  ;;  %p6270_p0 = scmp.ne.s32.totalorder %s6659_s1, %s6269_s22  ;;  %s30_s19 = int_to_ptr.vmem [resolvable:$true] %s29_s19 }
   0x5   :  { %p6273_p1 = scmp.lt.u32.totalorder %s6269_s22, %s6659_s1 }
   0x7   :  { %p6275_p2 = pnand %p6273_p1, %p6270_p0 }
   0x9   :  { %6278 = shalt.err (!%p6275_p2)
}
   0xa   :  { %s6279_s27 = scalar_lea.vmem %s30_s19, 77312  ;;  %p6284_p4 = scmp.lt.s32.totalorder %s30_s19, %s30_s19 }
   0xb   :  { %p6280_p3 = scmp.ne.s32.totalorder %s30_s19, %s6279_s27  ;;  %p6285_p5 = scmp.lt.s32.totalorder %s6279_s27, %s6279_s27 }
   0xd   :  { %p6286_p6 = por %p6285_p5, %p6284_p4 }
   0xf   :  { %p6287_p7 = pnand %p6286_p6, %p6280_p3 }
  0x11   :  { %6290 = shalt.err (!%p6287_p7)
}
  0x12   :  { %s6410_s28 = smov 512   ;;  %s6411_s29 = smov 32  }
  0x13   :  { %35 = dma.hbm_to_vmem [thread:$0]  %s6659_s1, 77312, %s30_s19, [#allocation6], %s6410_s28, %s6410_s28, %s6411_s29  }
  0x14   :  { %s6412_s7 = smov [#allocation8]   ;;  %s6291_s11 = scalar_lea.hbm %s6661_s3, 8192 }
  0x15   :  { %s51_s8 = sshll.u32 %s6412_s7, 4  ;;  %p6292_p8 = scmp.ne.s32.totalorder %s6661_s3, %s6291_s11  ;;  %s52_s8 = int_to_ptr.vmem [resolvable:$true] %s51_s8 }
  0x16   :  { %p6295_p9 = scmp.lt.u32.totalorder %s6291_s11, %s6661_s3 }
  0x18   :  { %p6297_p10 = pnand %p6295_p9, %p6292_p8 }
  0x1a   :  { %6300 = shalt.err (!%p6297_p10)
}
  0x1b   :  { %s6301_s16 = scalar_lea.vmem %s52_s8, 8192  ;;  %p6306_p12 = scmp.lt.s32.totalorder %s52_s8, %s52_s8 }
  0x1c   :  { %p6302_p11 = scmp.ne.s32.totalorder %s52_s8, %s6301_s16  ;;  %p6307_p13 = scmp.lt.s32.totalorder %s6301_s16, %s6301_s16 }
  0x1e   :  { %p6308_p0 = por %p6307_p13, %p6306_p12 }
  0x20   :  { %p6309_p1 = pnand %p6308_p0, %p6302_p11 }
  0x22   :  { %6312 = shalt.err (!%p6309_p1)
}
  0x23   :  { %s6413_s1 = smov 64   ;;  %s6414_s17 = smov 4  }
  0x24   :  { %57 = dma.hbm_to_vmem [thread:$0]  %s6661_s3, 8192, %s52_s8, [#allocation9], %s6413_s1, %s6413_s1, %s6414_s17  }
  0x25   :  { %s6415_s20 = smov [#allocation2]   ;;  %s6416_s22 = smov [#allocation7]  }
  0x26   :  { %s20_s21 = sshll.u32 %s6415_s20, 4  ;;  %s42_s23 = sshll.u32 %s6416_s22, 4  ;;  %s21_s21 = int_to_ptr.vmem [resolvable:$true] %s20_s21  ;;  %s43_s23 = int_to_ptr.vmem [resolvable:$true] %s42_s23 }
  0x27   :  { %s6313_s26 = scalar_lea.hbm %s6658_s0, 640 }
  0x28   :  { %p6314_p2 = scmp.ne.s32.totalorder %s6658_s0, %s6313_s26  ;;  %p6317_p3 = scmp.lt.u32.totalorder %s6313_s26, %s6658_s0 }
  0x2a   :  { %p6319_p4 = pnand %p6317_p3, %p6314_p2 }
  0x2c   :  { %6322 = shalt.err (!%p6319_p4)
}
  0x2d   :  { %s6323_s3 = scalar_lea.vmem %s21_s21, 640  ;;  %p6328_p6 = scmp.lt.s32.totalorder %s21_s21, %s21_s21 }
  0x2e   :  { %p6324_p5 = scmp.ne.s32.totalorder %s21_s21, %s6323_s3  ;;  %p6329_p7 = scmp.lt.s32.totalorder %s6323_s3, %s6323_s3 }
  0x30   :  { %p6330_p8 = por %p6329_p7, %p6328_p6 }
  0x32   :  { %p6331_p9 = pnand %p6330_p8, %p6324_p5 }
  0x34   :  { %6334 = shalt.err (!%p6331_p9)
}
  0x35   :  { %23 = dma.hbm_to_vmem [thread:$0]  %s6658_s0, 640, %s21_s21, [#allocation3]  }
  0x36   :  { %s6335_s10 = scalar_lea.hbm %s6660_s2, 128 }
  0x37   :  { %p6336_p10 = scmp.ne.s32.totalorder %s6660_s2, %s6335_s10  ;;  %p6339_p11 = scmp.lt.u32.totalorder %s6335_s10, %s6660_s2 }
  0x39   :  { %p6341_p12 = pnand %p6339_p11, %p6336_p10 }
  0x3b   :  { %6344 = shalt.err (!%p6341_p12)
}
  0x3c   :  { %s6345_s15 = scalar_lea.vmem %s43_s23, 128  ;;  %p6350_p0 = scmp.lt.s32.totalorder %s43_s23, %s43_s23 }
  0x3d   :  { %p6346_p13 = scmp.ne.s32.totalorder %s43_s23, %s6345_s15  ;;  %p6351_p1 = scmp.lt.s32.totalorder %s6345_s15, %s6345_s15 }
  0x3f   :  { %p6352_p2 = por %p6351_p1, %p6350_p0 }
  0x41   :  { %p6353_p3 = pnand %p6352_p2, %p6346_p13 }
  0x43   :  { %6356 = shalt.err (!%p6353_p3)
}
  0x44   :  { %45 = dma.hbm_to_vmem [thread:$0]  %s6660_s2, 128, %s43_s23, [#allocation6]  }
  0x45   :  { %s6417_s1 = smov [#allocation10]   ;;  %s6357_s20 = scalar_lea.hbm %s6662_s4, 16 }
  0x46   :  { %s64_s17 = sshll.u32 %s6417_s1, 4  ;;  %p6358_p4 = scmp.ne.s32.totalorder %s6662_s4, %s6357_s20  ;;  %s65_s17 = int_to_ptr.vmem [resolvable:$true] %s64_s17 }
  0x47   :  { %p6361_p5 = scmp.lt.u32.totalorder %s6357_s20, %s6662_s4 }
  0x49   :  { %p6363_p6 = pnand %p6361_p5, %p6358_p4 }
  0x4b   :  { %6366 = shalt.err (!%p6363_p6)
}
  0x4c   :  { %s6367_s26 = scalar_lea.vmem %s65_s17, 16  ;;  %s6371_s2 = scalar_lea.vmem %s65_s17, 32 }
  0x4d   :  { %p6368_p7 = scmp.ne.s32.totalorder %s65_s17, %s6367_s26  ;;  %p6372_p8 = scmp.lt.s32.totalorder %s65_s17, %s65_s17 }
  0x4e   :  { %p6373_p9 = scmp.lt.s32.totalorder %s6371_s2, %s6367_s26 }
  0x50   :  { %p6374_p10 = por %p6373_p9, %p6372_p8 }
  0x52   :  { %p6375_p11 = pnand %p6374_p10, %p6368_p7 }
  0x54   :  { %6378 = shalt.err (!%p6375_p11)
}
  0x55   :  { %67 = dma.hbm_to_vmem [thread:$0]  %s6662_s4, 16, %s65_s17, [#allocation9]  }
  0x56   :  { %6401 = dma.done.wait [#allocation3], 640  }
  0x57   :  { %6402 = vsyncadd [#allocation3], 4294966656 }
  0x58   :  { %6403 = dma.done.wait [#allocation6], 77440  }
  0x59   :  { %6404 = vsyncadd [#allocation6], 4294889856 }
  0x5a   :  { %6405 = dma.done.wait [#allocation9], 8208  }
  0x5b   :  { %6406 = vsyncadd [#allocation9], 4294959088  ;;  %v114_v0 = vld [vmem:[#allocation5] sm:$0xff]  ;;  %v115_v2 = vld [vmem:[#allocation5 + $0x8] sm:$0xff]  ;;  %vm3780_vm0 = vcmask 400384   ;;  %vm3784_vm1 = vcmask 1040384  }
  0x5c   :  { %v118_v1 = vld [vmem:[#allocation5 + $0x20] sm:$0xff]  ;;  %v119_v4 = vld [vmem:[#allocation5 + $0x28] sm:$0xff]  ;;  %v6510_v53 = vld [vmem:[#allocation2] sm:$0xff]  ;;  %s6419_s4 = smov [#allocation11]  }
  0x5d   :  { %v5345_v3 = vcombine.high %v114_v0, %v118_v1  ;;  %v5344_v5 = vcombine.low %v114_v0, %v118_v1  ;;  %v122_v6 = vld [vmem:[#allocation5 + $0x40] sm:$0xff]  ;;  %v5347_v8 = vcombine.high %v115_v2, %v119_v4  ;;  %v5346_v9 = vcombine.low %v115_v2, %v119_v4  ;;  %v123_v11 = vld [vmem:[#allocation5 + $0x48] sm:$0xff]  ;;  %s5333_s28 = sshll.u32 %s6419_s4, 4  ;;  %s5334_s28 = int_to_ptr.vmem [resolvable:$true] %s5333_s28 }
  0x5e   :  { %v126_v7 = vld [vmem:[#allocation5 + $0x60] sm:$0xff]  ;;  %v127_v12 = vld [vmem:[#allocation5 + $0x68] sm:$0xff]  ;;  %v94_v57 = vcombine.high %v6510_v53, %v6510_v53  ;;  %s6379_s29 = scalar_lea.vmem %s5334_s28, 64  ;;  %p6384_p13 = scmp.lt.s32.totalorder %s5334_s28, %s5334_s28 }
  0x5f   :  { %v5353_v10 = vcombine.high %v122_v6, %v126_v7  ;;  %v130_v13 = vld [vmem:[#allocation5 + $0x80] sm:$0xff]  ;;  %3811 = vmatprep.subr.bf16.mxu0 %v5345_v3  ;;  %v5355_v14 = vcombine.high %v123_v11, %v127_v12  ;;  %v131_v16 = vld [vmem:[#allocation5 + $0x88] sm:$0xff]  ;;  %4016 = vmatprep.subr.bf16.mxu1 %v5347_v8  ;;  %v5352_v18 = vcombine.low %v122_v6, %v126_v7  ;;  %p6380_p12 = scmp.ne.s32.totalorder %s5334_s28, %s6379_s29  ;;  %p6385_p0 = scmp.lt.s32.totalorder %s6379_s29, %s6379_s29 }
  0x60   :  { %v134_v15 = vld [vmem:[#allocation5 + $0xa0] sm:$0xff]  ;;  %v135_v17 = vld [vmem:[#allocation5 + $0xa8] sm:$0xff]  ;;  %3812 = vmatpush1.bf16.msra.mxu0 %v5344_v5  ;;  %4017 = vmatpush1.bf16.msra.mxu1 %v5346_v9  ;;  %v5354_v19 = vcombine.low %v123_v11, %v127_v12  ;;  %v6514_v61 = vpack.c.bf16 %v94_v57, %v94_v57 }
  0x61   :  { %3813 = vmatprep.subr.bf16.mxu0 %v5353_v10  ;;  %v5361_v20 = vcombine.high %v130_v13, %v134_v15  ;;  %4018 = vmatprep.subr.bf16.mxu1 %v5355_v14  ;;  %v5363_v21 = vcombine.high %v131_v16, %v135_v17  ;;  %v138_v22 = vld [vmem:[#allocation5 + $0xc0] sm:$0xff]  ;;  %v139_v24 = vld [vmem:[#allocation5 + $0xc8] sm:$0xff]  ;;  %v5360_v26 = vcombine.low %v130_v13, %v134_v15  ;;  %p6386_p1 = por %p6385_p0, %p6384_p13 }
  0x62   :  { %v142_v23 = vld [vmem:[#allocation5 + $0xe0] sm:$0xff]  ;;  %v143_v25 = vld [vmem:[#allocation5 + $0xe8] sm:$0xff]  ;;  %v5362_v27 = vcombine.low %v131_v16, %v135_v17  ;;  %3843 = vmatprep.mubr.bf16.mxu0 %v6514_v61  ;;  %4048 = vmatprep.mubr.bf16.mxu1 %v6514_v61 }
  0x63   :  { %v5369_v28 = vcombine.high %v138_v22, %v142_v23  ;;  %v5371_v29 = vcombine.high %v139_v24, %v143_v25  ;;  %v146_v30 = vld [vmem:[#allocation5 + $0x100] sm:$0xff]  ;;  %v147_v32 = vld [vmem:[#allocation5 + $0x108] sm:$0xff]  ;;  %v5368_v34 = vcombine.low %v138_v22, %v142_v23  ;;  %v5370_v35 = vcombine.low %v139_v24, %v143_v25  ;;  %p6387_p2 = pnand %p6386_p1, %p6380_p12 }
  0x64   :  { %3814 = vmatpush1.bf16.msra.mxu0 %v5352_v18  ;;  %4019 = vmatpush1.bf16.msra.mxu1 %v5354_v19  ;;  %v150_v31 = vld [vmem:[#allocation5 + $0x120] sm:$0xff]  ;;  %v151_v33 = vld [vmem:[#allocation5 + $0x128] sm:$0xff] }
  0x65   :  { %3815 = vmatprep.subr.bf16.mxu0 %v5361_v20  ;;  %4020 = vmatprep.subr.bf16.mxu1 %v5363_v21  ;;  %v5377_v36 = vcombine.high %v146_v30, %v150_v31  ;;  %v5379_v37 = vcombine.high %v147_v32, %v151_v33  ;;  %v154_v38 = vld [vmem:[#allocation5 + $0x140] sm:$0xff]  ;;  %v155_v40 = vld [vmem:[#allocation5 + $0x148] sm:$0xff]  ;;  %v5376_v42 = vcombine.low %v146_v30, %v150_v31 }
  0x66   :  { %v158_v39 = vld [vmem:[#allocation5 + $0x160] sm:$0xff]  ;;  %v159_v41 = vld [vmem:[#allocation5 + $0x168] sm:$0xff]  ;;  %v5378_v43 = vcombine.low %v147_v32, %v151_v33 }
  0x67   :  { %v5385_v44 = vcombine.high %v154_v38, %v158_v39  ;;  %v5387_v45 = vcombine.high %v155_v40, %v159_v41  ;;  %v162_v46 = vld [vmem:[#allocation5 + $0x180] sm:$0xff]  ;;  %v163_v48 = vld [vmem:[#allocation5 + $0x188] sm:$0xff]  ;;  %v5384_v50 = vcombine.low %v154_v38, %v158_v39  ;;  %v5386_v51 = vcombine.low %v155_v40, %v159_v41 }
  0x68   :  { %3816 = vmatpush1.bf16.msra.mxu0 %v5360_v26  ;;  %4021 = vmatpush1.bf16.msra.mxu1 %v5362_v27  ;;  %v166_v47 = vld [vmem:[#allocation5 + $0x1a0] sm:$0xff]  ;;  %v167_v49 = vld [vmem:[#allocation5 + $0x1a8] sm:$0xff] }
  0x69   :  { %3817 = vmatprep.subr.bf16.mxu0 %v5369_v28  ;;  %4022 = vmatprep.subr.bf16.mxu1 %v5371_v29  ;;  %v5393_v52 = vcombine.high %v162_v46, %v166_v47  ;;  %v5395_v54 = vcombine.high %v163_v48, %v167_v49  ;;  %v170_v55 = vld [vmem:[#allocation5 + $0x1c0] sm:$0xff]  ;;  %v171_v58 = vld [vmem:[#allocation5 + $0x1c8] sm:$0xff]  ;;  %v5392_v60 = vcombine.low %v162_v46, %v166_v47 }
  0x6a   :  { %v174_v56 = vld [vmem:[#allocation5 + $0x1e0] sm:$0xff]  ;;  %v175_v59 = vld [vmem:[#allocation5 + $0x1e8] sm:$0xff]  ;;  %v5394_v62 = vcombine.low %v163_v48, %v167_v49 }
  0x6b   :  { %v5401_v63 = vcombine.high %v170_v55, %v174_v56  ;;  %v5403_v0 = vcombine.high %v171_v58, %v175_v59  ;;  %v178_v1 = vld [vmem:[#allocation5 + $0x200] sm:$0xff]  ;;  %v179_v3 = vld [vmem:[#allocation5 + $0x208] sm:$0xff]  ;;  %v5400_v5 = vcombine.low %v170_v55, %v174_v56  ;;  %v5402_v6 = vcombine.low %v171_v58, %v175_v59 }
  0x6c   :  { %3818 = vmatpush1.bf16.msra.mxu0 %v5368_v34  ;;  %4023 = vmatpush1.bf16.msra.mxu1 %v5370_v35  ;;  %v182_v2 = vld [vmem:[#allocation5 + $0x220] sm:$0xff]  ;;  %v183_v4 = vld [vmem:[#allocation5 + $0x228] sm:$0xff] }
  0x6d   :  { %3819 = vmatprep.subr.bf16.mxu0 %v5377_v36  ;;  %4024 = vmatprep.subr.bf16.mxu1 %v5379_v37  ;;  %v5409_v7 = vcombine.high %v178_v1, %v182_v2  ;;  %v5411_v8 = vcombine.high %v179_v3, %v183_v4  ;;  %v186_v9 = vld [vmem:[#allocation5 + $0x240] sm:$0xff]  ;;  %v187_v11 = vld [vmem:[#allocation5 + $0x248] sm:$0xff]  ;;  %v5408_v13 = vcombine.low %v178_v1, %v182_v2 }
  0x6e   :  { %v190_v10 = vld [vmem:[#allocation5 + $0x260] sm:$0xff]  ;;  %v191_v12 = vld [vmem:[#allocation5 + $0x268] sm:$0xff]  ;;  %v5410_v14 = vcombine.low %v179_v3, %v183_v4 }
  0x6f   :  { %v5417_v15 = vcombine.high %v186_v9, %v190_v10  ;;  %v5419_v16 = vcombine.high %v187_v11, %v191_v12  ;;  %v194_v17 = vld [vmem:[#allocation5 + $0x280] sm:$0xff]  ;;  %v195_v19 = vld [vmem:[#allocation5 + $0x288] sm:$0xff]  ;;  %v5416_v21 = vcombine.low %v186_v9, %v190_v10  ;;  %v5418_v22 = vcombine.low %v187_v11, %v191_v12 }
  0x70   :  { %3820 = vmatpush1.bf16.msra.mxu0 %v5376_v42  ;;  %4025 = vmatpush1.bf16.msra.mxu1 %v5378_v43  ;;  %v198_v18 = vld [vmem:[#allocation5 + $0x2a0] sm:$0xff]  ;;  %v199_v20 = vld [vmem:[#allocation5 + $0x2a8] sm:$0xff] }
  0x71   :  { %3821 = vmatprep.subr.bf16.mxu0 %v5385_v44  ;;  %4026 = vmatprep.subr.bf16.mxu1 %v5387_v45  ;;  %v5425_v23 = vcombine.high %v194_v17, %v198_v18  ;;  %v5427_v24 = vcombine.high %v195_v19, %v199_v20  ;;  %v202_v25 = vld [vmem:[#allocation5 + $0x2c0] sm:$0xff]  ;;  %v203_v27 = vld [vmem:[#allocation5 + $0x2c8] sm:$0xff]  ;;  %v5424_v29 = vcombine.low %v194_v17, %v198_v18 }
  0x72   :  { %v206_v26 = vld [vmem:[#allocation5 + $0x2e0] sm:$0xff]  ;;  %v207_v28 = vld [vmem:[#allocation5 + $0x2e8] sm:$0xff]  ;;  %v5426_v30 = vcombine.low %v195_v19, %v199_v20 }
  0x73   :  { %v5433_v31 = vcombine.high %v202_v25, %v206_v26  ;;  %v5435_v32 = vcombine.high %v203_v27, %v207_v28  ;;  %v210_v33 = vld [vmem:[#allocation5 + $0x300] sm:$0xff]  ;;  %v211_v35 = vld [vmem:[#allocation5 + $0x308] sm:$0xff]  ;;  %v5432_v37 = vcombine.low %v202_v25, %v206_v26  ;;  %v5434_v38 = vcombine.low %v203_v27, %v207_v28 }
  0x74   :  { %3822 = vmatpush1.bf16.msra.mxu0 %v5384_v50  ;;  %4027 = vmatpush1.bf16.msra.mxu1 %v5386_v51  ;;  %v214_v34 = vld [vmem:[#allocation5 + $0x320] sm:$0xff]  ;;  %v215_v36 = vld [vmem:[#allocation5 + $0x328] sm:$0xff] }
  0x75   :  { %3823 = vmatprep.subr.bf16.mxu0 %v5393_v52  ;;  %4028 = vmatprep.subr.bf16.mxu1 %v5395_v54  ;;  %v5441_v39 = vcombine.high %v210_v33, %v214_v34  ;;  %v5443_v40 = vcombine.high %v211_v35, %v215_v36  ;;  %v218_v41 = vld [vmem:[#allocation5 + $0x340] sm:$0xff]  ;;  %v219_v43 = vld [vmem:[#allocation5 + $0x348] sm:$0xff]  ;;  %v5440_v45 = vcombine.low %v210_v33, %v214_v34 }
  0x76   :  { %v222_v42 = vld [vmem:[#allocation5 + $0x360] sm:$0xff]  ;;  %v223_v44 = vld [vmem:[#allocation5 + $0x368] sm:$0xff]  ;;  %v5442_v46 = vcombine.low %v211_v35, %v215_v36 }
  0x77   :  { %v5449_v47 = vcombine.high %v218_v41, %v222_v42  ;;  %v5451_v48 = vcombine.high %v219_v43, %v223_v44  ;;  %v226_v49 = vld [vmem:[#allocation5 + $0x380] sm:$0xff]  ;;  %v227_v51 = vld [vmem:[#allocation5 + $0x388] sm:$0xff]  ;;  %v5448_v54 = vcombine.low %v218_v41, %v222_v42  ;;  %v5450_v55 = vcombine.low %v219_v43, %v223_v44 }
  0x78   :  { %3824 = vmatpush1.bf16.msra.mxu0 %v5392_v60  ;;  %4029 = vmatpush1.bf16.msra.mxu1 %v5394_v62  ;;  %v230_v50 = vld [vmem:[#allocation5 + $0x3a0] sm:$0xff]  ;;  %v231_v52 = vld [vmem:[#allocation5 + $0x3a8] sm:$0xff] }
  0x79   :  { %3825 = vmatprep.subr.bf16.mxu0 %v5401_v63  ;;  %4030 = vmatprep.subr.bf16.mxu1 %v5403_v0  ;;  %v5457_v56 = vcombine.high %v226_v49, %v230_v50  ;;  %v5459_v57 = vcombine.high %v227_v51, %v231_v52  ;;  %v234_v58 = vld [vmem:[#allocation5 + $0x3c0] sm:$0xff]  ;;  %v235_v60 = vld [vmem:[#allocation5 + $0x3c8] sm:$0xff]  ;;  %v5456_v63 = vcombine.low %v226_v49, %v230_v50 }
  0x7a   :  { %v238_v59 = vld [vmem:[#allocation5 + $0x3e0] sm:$0xff]  ;;  %v239_v62 = vld [vmem:[#allocation5 + $0x3e8] sm:$0xff]  ;;  %v5458_v0 = vcombine.low %v227_v51, %v231_v52 }
  0x7b   :  { %v5465_v1 = vcombine.high %v234_v58, %v238_v59  ;;  %v5467_v2 = vcombine.high %v235_v60, %v239_v62  ;;  %v242_v3 = vld [vmem:[#allocation5 + $0x400] sm:$0xff]  ;;  %v5466_v9 = vcombine.low %v235_v60, %v239_v62  ;;  %v255_v17 = vld [vmem:[#allocation5 + $0x468] sm:$0xff] }
  0x7c   :  { %3826 = vmatpush1.bf16.msra.mxu0 %v5400_v5  ;;  %4031 = vmatpush1.bf16.msra.mxu1 %v5402_v6  ;;  %v246_v4 = vld [vmem:[#allocation5 + $0x420] sm:$0xff]  ;;  %v243_v5 = vld [vmem:[#allocation5 + $0x408] sm:$0xff] }
  0x7d   :  { %3827 = vmatprep.subr.bf16.mxu0 %v5409_v7  ;;  %4032 = vmatprep.subr.bf16.mxu1 %v5411_v8  ;;  %v247_v6 = vld [vmem:[#allocation5 + $0x428] sm:$0xff]  ;;  %v6518_v7 = vld [vmem:[#allocation2 + $0x8] sm:$0xff]  ;;  %v5464_v8 = vcombine.low %v234_v58, %v238_v59  ;;  %v5473_v10 = vcombine.high %v242_v3, %v246_v4  ;;  %v5472_v18 = vcombine.low %v242_v3, %v246_v4 }
  0x7e   :  { %v5475_v11 = vcombine.high %v243_v5, %v247_v6  ;;  %v250_v12 = vld [vmem:[#allocation5 + $0x440] sm:$0xff]  ;;  %v5474_v19 = vcombine.low %v243_v5, %v247_v6  ;;  %v263_v25 = vld [vmem:[#allocation5 + $0x4a8] sm:$0xff] }
  0x7f   :  { %v271_v33 = vld [vmem:[#allocation5 + $0x4e8] sm:$0xff] }
  0x80   :  { %3828 = vmatpush1.bf16.msra.mxu0 %v5408_v13  ;;  %4033 = vmatpush1.bf16.msra.mxu1 %v5410_v14  ;;  %v254_v13 = vld [vmem:[#allocation5 + $0x460] sm:$0xff]  ;;  %v95_v14 = vcombine.high %v6518_v7, %v6518_v7  ;;  %v279_v41 = vld [vmem:[#allocation5 + $0x528] sm:$0xff] }
  0x81   :  { %3829 = vmatprep.subr.bf16.mxu0 %v5417_v15  ;;  %4034 = vmatprep.subr.bf16.mxu1 %v5419_v16  ;;  %v6524_v15 = vpack.c.bf16 %v6510_v53, %v6510_v53  ;;  %v251_v16 = vld [vmem:[#allocation5 + $0x448] sm:$0xff]  ;;  %v5481_v20 = vcombine.high %v250_v12, %v254_v13  ;;  %v5480_v53 = vcombine.low %v250_v12, %v254_v13 }
  0x82   :  { %v6526_v26 = vpack.c.bf16 %v95_v14, %v95_v14  ;;  %v5482_v27 = vcombine.low %v251_v16, %v255_v17  ;;  %v287_v49 = vld [vmem:[#allocation5 + $0x568] sm:$0xff] }
  0x83   :  { %v295_v58 = vld [vmem:[#allocation5 + $0x5a8] sm:$0xff] }
  0x84   :  { %3830 = vmatpush1.bf16.msra.mxu0 %v5416_v21  ;;  %4035 = vmatpush1.bf16.msra.mxu1 %v5418_v22  ;;  %v258_v21 = vld [vmem:[#allocation5 + $0x480] sm:$0xff]  ;;  %v303_v3 = vld [vmem:[#allocation5 + $0x5e8] sm:$0xff] }
  0x85   :  { %3831 = vmatprep.subr.bf16.mxu0 %v5425_v23  ;;  %4036 = vmatprep.subr.bf16.mxu1 %v5427_v24  ;;  %v262_v22 = vld [vmem:[#allocation5 + $0x4a0] sm:$0xff]  ;;  %v259_v23 = vld [vmem:[#allocation5 + $0x488] sm:$0xff]  ;;  %v5483_v24 = vcombine.high %v251_v16, %v255_v17 }
  0x86   :  { %v5489_v28 = vcombine.high %v258_v21, %v262_v22  ;;  %v5488_v34 = vcombine.low %v258_v21, %v262_v22  ;;  %v5490_v35 = vcombine.low %v259_v23, %v263_v25  ;;  %v311_v12 = vld [vmem:[#allocation5 + $0x628] sm:$0xff]  ;;  %v314_v17 = vld [vmem:[#allocation5 + $0x640] sm:$0xff] }
  0x87   :  { %v319_v21 = vld [vmem:[#allocation5 + $0x668] sm:$0xff] }
  0x88   :  { %3832 = vmatpush1.bf16.msra.mxu0 %v5424_v29  ;;  %4037 = vmatpush1.bf16.msra.mxu1 %v5426_v30  ;;  %v266_v29 = vld [vmem:[#allocation5 + $0x4c0] sm:$0xff] }
  0x89   :  { %3833 = vmatprep.subr.bf16.mxu0 %v5433_v31  ;;  %4038 = vmatprep.subr.bf16.mxu1 %v5435_v32  ;;  %v270_v30 = vld [vmem:[#allocation5 + $0x4e0] sm:$0xff]  ;;  %v267_v31 = vld [vmem:[#allocation5 + $0x4c8] sm:$0xff]  ;;  %v5491_v32 = vcombine.high %v259_v23, %v263_v25 }
  0x8a   :  { %v5497_v36 = vcombine.high %v266_v29, %v270_v30  ;;  %v5496_v42 = vcombine.low %v266_v29, %v270_v30  ;;  %v5498_v43 = vcombine.low %v267_v31, %v271_v33  ;;  %v322_v25 = vld [vmem:[#allocation5 + $0x680] sm:$0xff]  ;;  %v327_v29 = vld [vmem:[#allocation5 + $0x6a8] sm:$0xff] }
  0x8c   :  { %3834 = vmatpush1.bf16.msra.mxu0 %v5432_v37  ;;  %4039 = vmatpush1.bf16.msra.mxu1 %v5434_v38  ;;  %v274_v37 = vld [vmem:[#allocation5 + $0x500] sm:$0xff] }
  0x8d   :  { %3835 = vmatprep.subr.bf16.mxu0 %v5441_v39  ;;  %4040 = vmatprep.subr.bf16.mxu1 %v5443_v40  ;;  %v278_v38 = vld [vmem:[#allocation5 + $0x520] sm:$0xff]  ;;  %v275_v39 = vld [vmem:[#allocation5 + $0x508] sm:$0xff]  ;;  %v5499_v40 = vcombine.high %v267_v31, %v271_v33 }
  0x8e   :  { %v5505_v44 = vcombine.high %v274_v37, %v278_v38  ;;  %v5504_v50 = vcombine.low %v274_v37, %v278_v38  ;;  %v5506_v51 = vcombine.low %v275_v39, %v279_v41  ;;  %v330_v33 = vld [vmem:[#allocation5 + $0x6c0] sm:$0xff]  ;;  %v335_v37 = vld [vmem:[#allocation5 + $0x6e8] sm:$0xff] }
  0x90   :  { %3836 = vmatpush1.bf16.msra.mxu0 %v5440_v45  ;;  %4041 = vmatpush1.bf16.msra.mxu1 %v5442_v46  ;;  %v282_v45 = vld [vmem:[#allocation5 + $0x540] sm:$0xff] }
  0x91   :  { %3837 = vmatprep.subr.bf16.mxu0 %v5449_v47  ;;  %4042 = vmatprep.subr.bf16.mxu1 %v5451_v48  ;;  %v286_v46 = vld [vmem:[#allocation5 + $0x560] sm:$0xff]  ;;  %v283_v47 = vld [vmem:[#allocation5 + $0x548] sm:$0xff]  ;;  %v5507_v48 = vcombine.high %v275_v39, %v279_v41 }
  0x92   :  { %v5513_v52 = vcombine.high %v282_v45, %v286_v46  ;;  %v5512_v59 = vcombine.low %v282_v45, %v286_v46  ;;  %v5514_v60 = vcombine.low %v283_v47, %v287_v49  ;;  %v338_v41 = vld [vmem:[#allocation5 + $0x700] sm:$0xff]  ;;  %v343_v45 = vld [vmem:[#allocation5 + $0x728] sm:$0xff] }
  0x94   :  { %3838 = vmatpush1.bf16.msra.mxu0 %v5448_v54  ;;  %4043 = vmatpush1.bf16.msra.mxu1 %v5450_v55  ;;  %v290_v54 = vld [vmem:[#allocation5 + $0x580] sm:$0xff] }
  0x95   :  { %3839 = vmatprep.subr.bf16.mxu0 %v5457_v56  ;;  %4044 = vmatprep.subr.bf16.mxu1 %v5459_v57  ;;  %v294_v55 = vld [vmem:[#allocation5 + $0x5a0] sm:$0xff]  ;;  %v291_v56 = vld [vmem:[#allocation5 + $0x588] sm:$0xff]  ;;  %v5515_v57 = vcombine.high %v283_v47, %v287_v49 }
  0x96   :  { %v5521_v62 = vcombine.high %v290_v54, %v294_v55  ;;  %v5520_v4 = vcombine.low %v290_v54, %v294_v55  ;;  %v5522_v5 = vcombine.low %v291_v56, %v295_v58  ;;  %v346_v49 = vld [vmem:[#allocation5 + $0x740] sm:$0xff]  ;;  %v351_v54 = vld [vmem:[#allocation5 + $0x768] sm:$0xff] }
  0x98   :  { %3840 = vmatpush1.bf16.msra.mxu0 %v5456_v63  ;;  %4045 = vmatpush1.bf16.msra.mxu1 %v5458_v0  ;;  %v298_v63 = vld [vmem:[#allocation5 + $0x5c0] sm:$0xff] }
  0x99   :  { %3841 = vmatprep.subr.bf16.mxu0 %v5465_v1  ;;  %4046 = vmatprep.subr.bf16.mxu1 %v5467_v2  ;;  %v302_v0 = vld [vmem:[#allocation5 + $0x5e0] sm:$0xff]  ;;  %v299_v1 = vld [vmem:[#allocation5 + $0x5c8] sm:$0xff]  ;;  %v5523_v2 = vcombine.high %v291_v56, %v295_v58 }
  0x9a   :  { %v5529_v6 = vcombine.high %v298_v63, %v302_v0  ;;  %v5528_v13 = vcombine.low %v298_v63, %v302_v0  ;;  %v5530_v14 = vcombine.low %v299_v1, %v303_v3  ;;  %v354_v58 = vld [vmem:[#allocation5 + $0x780] sm:$0xff]  ;;  %v359_v63 = vld [vmem:[#allocation5 + $0x7a8] sm:$0xff] }
  0x9c   :  { %3842 = vmatpush1.bf16.msra.mxu0 %v5464_v8  ;;  %4047 = vmatpush1.bf16.msra.mxu1 %v5466_v9  ;;  %v306_v8 = vld [vmem:[#allocation5 + $0x600] sm:$0xff] }
  0x9d   :  { %3852 = vmatprep.subr.bf16.mxu0 %v5473_v10  ;;  %4057 = vmatprep.subr.bf16.mxu1 %v5475_v11  ;;  %v310_v9 = vld [vmem:[#allocation5 + $0x620] sm:$0xff]  ;;  %v307_v10 = vld [vmem:[#allocation5 + $0x608] sm:$0xff]  ;;  %v5531_v11 = vcombine.high %v299_v1, %v303_v3 }
  0x9e   :  { %v5537_v16 = vcombine.high %v306_v8, %v310_v9  ;;  %v5536_v22 = vcombine.low %v306_v8, %v310_v9  ;;  %v5538_v23 = vcombine.low %v307_v10, %v311_v12  ;;  %v362_v3 = vld [vmem:[#allocation5 + $0x7c0] sm:$0xff]  ;;  %v367_v8 = vld [vmem:[#allocation5 + $0x7e8] sm:$0xff] }
  0x9f   :  { %3844 = vmatmul.mubr.bf16.vlgmr.msra.gmra.mrb[0].mxu0 %v6524_v15  ;;  %4049 = vmatmul.mubr.bf16.vlgmr.msra.gmra.mrb[0].mxu1 %v6524_v15 }
  0xa0   :  { %3853 = vmatpush1.bf16.msra.mxu0 %v5472_v18  ;;  %4058 = vmatpush1.bf16.msra.mxu1 %v5474_v19  ;;  %v318_v18 = vld [vmem:[#allocation5 + $0x660] sm:$0xff]  ;;  %v315_v19 = vld [vmem:[#allocation5 + $0x648] sm:$0xff] }
  0xa1   :  { %3854 = vmatprep.subr.bf16.mxu0 %v5481_v20  ;;  %4059 = vmatprep.subr.bf16.mxu1 %v5483_v24  ;;  %v5539_v20 = vcombine.high %v307_v10, %v311_v12  ;;  %v5545_v24 = vcombine.high %v314_v17, %v318_v18  ;;  %v5544_v30 = vcombine.low %v314_v17, %v318_v18  ;;  %v370_v10 = vld [vmem:[#allocation5 + $0x800] sm:$0xff]  ;;  %v6532_v18 = vld [vmem:[#allocation2 + $0x10] sm:$0xff] }
  0xa2   :  { %3884 = vmatprep.mubr.bf16.mxu0 %v6526_v26  ;;  %4089 = vmatprep.mubr.bf16.mxu1 %v6526_v26  ;;  %v5546_v31 = vcombine.low %v315_v19, %v319_v21 }
  0xa4   :  { %3855 = vmatpush1.bf16.msra.mxu0 %v5480_v53  ;;  %4060 = vmatpush1.bf16.msra.mxu1 %v5482_v27  ;;  %v326_v53 = vld [vmem:[#allocation5 + $0x6a0] sm:$0xff]  ;;  %v323_v27 = vld [vmem:[#allocation5 + $0x688] sm:$0xff] }
  0xa5   :  { %3856 = vmatprep.subr.bf16.mxu0 %v5489_v28  ;;  %4061 = vmatprep.subr.bf16.mxu1 %v5491_v32  ;;  %v5547_v28 = vcombine.high %v315_v19, %v319_v21  ;;  %v5553_v32 = vcombine.high %v322_v25, %v326_v53  ;;  %v5552_v38 = vcombine.low %v322_v25, %v326_v53  ;;  %v379_v25 = vld [vmem:[#allocation5 + $0x848] sm:$0xff] }
  0xa6   :  { %v5554_v39 = vcombine.low %v323_v27, %v327_v29  ;;  %v96_v53 = vcombine.high %v6532_v18, %v6532_v18 }
  0xa8   :  { %3857 = vmatpush1.bf16.msra.mxu0 %v5488_v34  ;;  %4062 = vmatpush1.bf16.msra.mxu1 %v5490_v35  ;;  %v334_v34 = vld [vmem:[#allocation5 + $0x6e0] sm:$0xff]  ;;  %v331_v35 = vld [vmem:[#allocation5 + $0x6c8] sm:$0xff] }
  0xa9   :  { %3858 = vmatprep.subr.bf16.mxu0 %v5497_v36  ;;  %4063 = vmatprep.subr.bf16.mxu1 %v5499_v40  ;;  %v5555_v36 = vcombine.high %v323_v27, %v327_v29  ;;  %v5561_v40 = vcombine.high %v330_v33, %v334_v34  ;;  %v5560_v46 = vcombine.low %v330_v33, %v334_v34  ;;  %v386_v33 = vld [vmem:[#allocation5 + $0x880] sm:$0xff] }
  0xaa   :  { %v5562_v47 = vcombine.low %v331_v35, %v335_v37  ;;  %v6538_v27 = vpack.c.bf16 %v6518_v7, %v6518_v7  ;;  %v390_v34 = vld [vmem:[#allocation5 + $0x8a0] sm:$0xff] }
  0xac   :  { %3859 = vmatpush1.bf16.msra.mxu0 %v5496_v42  ;;  %4064 = vmatpush1.bf16.msra.mxu1 %v5498_v43  ;;  %v342_v42 = vld [vmem:[#allocation5 + $0x720] sm:$0xff]  ;;  %v339_v43 = vld [vmem:[#allocation5 + $0x708] sm:$0xff] }
  0xad   :  { %3860 = vmatprep.subr.bf16.mxu0 %v5505_v44  ;;  %4065 = vmatprep.subr.bf16.mxu1 %v5507_v48  ;;  %v5563_v44 = vcombine.high %v331_v35, %v335_v37  ;;  %v5569_v48 = vcombine.high %v338_v41, %v342_v42  ;;  %v5568_v55 = vcombine.low %v338_v41, %v342_v42  ;;  %v391_v37 = vld [vmem:[#allocation5 + $0x8a8] sm:$0xff]  ;;  %v394_v41 = vld [vmem:[#allocation5 + $0x8c0] sm:$0xff] }
  0xae   :  { %v5570_v56 = vcombine.low %v339_v43, %v343_v45  ;;  %v6540_v35 = vpack.c.bf16 %v96_v53, %v96_v53  ;;  %v398_v42 = vld [vmem:[#allocation5 + $0x8e0] sm:$0xff] }
  0xb0   :  { %3861 = vmatpush1.bf16.msra.mxu0 %v5504_v50  ;;  %4066 = vmatpush1.bf16.msra.mxu1 %v5506_v51  ;;  %v350_v50 = vld [vmem:[#allocation5 + $0x760] sm:$0xff]  ;;  %v347_v51 = vld [vmem:[#allocation5 + $0x748] sm:$0xff] }
  0xb1   :  { %3862 = vmatprep.subr.bf16.mxu0 %v5513_v52  ;;  %4067 = vmatprep.subr.bf16.mxu1 %v5515_v57  ;;  %v5571_v52 = vcombine.high %v339_v43, %v343_v45  ;;  %v5577_v57 = vcombine.high %v346_v49, %v350_v50  ;;  %v5576_v0 = vcombine.low %v346_v49, %v350_v50  ;;  %v395_v43 = vld [vmem:[#allocation5 + $0x8c8] sm:$0xff]  ;;  %v402_v49 = vld [vmem:[#allocation5 + $0x900] sm:$0xff] }
  0xb2   :  { %v5578_v1 = vcombine.low %v347_v51, %v351_v54  ;;  %v5616_v45 = vcombine.low %v386_v33, %v390_v34  ;;  %v406_v50 = vld [vmem:[#allocation5 + $0x920] sm:$0xff] }
  0xb4   :  { %3863 = vmatpush1.bf16.msra.mxu0 %v5512_v59  ;;  %4068 = vmatpush1.bf16.msra.mxu1 %v5514_v60  ;;  %v358_v59 = vld [vmem:[#allocation5 + $0x7a0] sm:$0xff]  ;;  %v355_v60 = vld [vmem:[#allocation5 + $0x788] sm:$0xff] }
  0xb5   :  { %3864 = vmatprep.subr.bf16.mxu0 %v5521_v62  ;;  %4069 = vmatprep.subr.bf16.mxu1 %v5523_v2  ;;  %v5579_v62 = vcombine.high %v347_v51, %v351_v54  ;;  %v5585_v2 = vcombine.high %v354_v58, %v358_v59  ;;  %v5584_v9 = vcombine.low %v354_v58, %v358_v59  ;;  %v403_v51 = vld [vmem:[#allocation5 + $0x908] sm:$0xff]  ;;  %v410_v58 = vld [vmem:[#allocation5 + $0x940] sm:$0xff] }
  0xb6   :  { %v5624_v54 = vcombine.low %v394_v41, %v398_v42  ;;  %v414_v59 = vld [vmem:[#allocation5 + $0x960] sm:$0xff] }
  0xb8   :  { %3865 = vmatpush1.bf16.msra.mxu0 %v5520_v4  ;;  %4070 = vmatpush1.bf16.msra.mxu1 %v5522_v5  ;;  %v366_v4 = vld [vmem:[#allocation5 + $0x7e0] sm:$0xff]  ;;  %v363_v5 = vld [vmem:[#allocation5 + $0x7c8] sm:$0xff] }
  0xb9   :  { %3866 = vmatprep.subr.bf16.mxu0 %v5529_v6  ;;  %4071 = vmatprep.subr.bf16.mxu1 %v5531_v11  ;;  %v5587_v6 = vcombine.high %v355_v60, %v359_v63  ;;  %v5586_v11 = vcombine.low %v355_v60, %v359_v63  ;;  %v5593_v12 = vcombine.high %v362_v3, %v366_v4  ;;  %v411_v60 = vld [vmem:[#allocation5 + $0x948] sm:$0xff] }
  0xba   :  { %v5595_v17 = vcombine.high %v363_v5, %v367_v8  ;;  %v5592_v19 = vcombine.low %v362_v3, %v366_v4  ;;  %v5632_v63 = vcombine.low %v402_v49, %v406_v50  ;;  %v418_v3 = vld [vmem:[#allocation5 + $0x980] sm:$0xff] }
  0xbb   :  { %v422_v4 = vld [vmem:[#allocation5 + $0x9a0] sm:$0xff] }
  0xbc   :  { %3867 = vmatpush1.bf16.msra.mxu0 %v5528_v13  ;;  %4072 = vmatpush1.bf16.msra.mxu1 %v5530_v14  ;;  %v374_v13 = vld [vmem:[#allocation5 + $0x820] sm:$0xff]  ;;  %v371_v14 = vld [vmem:[#allocation5 + $0x808] sm:$0xff] }
  0xbd   :  { %3868 = vmatprep.subr.bf16.mxu0 %v5537_v16  ;;  %4073 = vmatprep.subr.bf16.mxu1 %v5539_v20  ;;  %v375_v16 = vld [vmem:[#allocation5 + $0x828] sm:$0xff]  ;;  %v5594_v20 = vcombine.low %v363_v5, %v367_v8  ;;  %v5601_v21 = vcombine.high %v370_v10, %v374_v13  ;;  %v5600_v29 = vcombine.low %v370_v10, %v374_v13  ;;  %v430_v13 = vld [vmem:[#allocation5 + $0x9e0] sm:$0xff] }
  0xbe   :  { %v419_v5 = vld [vmem:[#allocation5 + $0x988] sm:$0xff]  ;;  %v5640_v8 = vcombine.low %v410_v58, %v414_v59  ;;  %v5649_v10 = vcombine.high %v418_v3, %v422_v4 }
  0xc0   :  { %3869 = vmatpush1.bf16.msra.mxu0 %v5536_v22  ;;  %4074 = vmatpush1.bf16.msra.mxu1 %v5538_v23  ;;  %v378_v22 = vld [vmem:[#allocation5 + $0x840] sm:$0xff] }
  0xc1   :  { %3870 = vmatprep.subr.bf16.mxu0 %v5545_v24  ;;  %4075 = vmatprep.subr.bf16.mxu1 %v5547_v28  ;;  %v382_v23 = vld [vmem:[#allocation5 + $0x860] sm:$0xff]  ;;  %v5603_v24 = vcombine.high %v371_v14, %v375_v16  ;;  %v383_v28 = vld [vmem:[#allocation5 + $0x868] sm:$0xff] }
  0xc2   :  { %v5608_v7 = vcombine.low %v378_v22, %v382_v23 }
  0xc4   :  { %3871 = vmatpush1.bf16.msra.mxu0 %v5544_v30  ;;  %4076 = vmatpush1.bf16.msra.mxu1 %v5546_v31  ;;  %v5602_v30 = vcombine.low %v371_v14, %v375_v16  ;;  %v5609_v31 = vcombine.high %v378_v22, %v382_v23  ;;  %v427_v14 = vld [vmem:[#allocation5 + $0x9c8] sm:$0xff]  ;;  %v434_v22 = vld [vmem:[#allocation5 + $0xa00] sm:$0xff] }
  0xc5   :  { %3872 = vmatprep.subr.bf16.mxu0 %v5553_v32  ;;  %4077 = vmatprep.subr.bf16.mxu1 %v5555_v36  ;;  %v5611_v32 = vcombine.high %v379_v25, %v383_v28  ;;  %v387_v36 = vld [vmem:[#allocation5 + $0x888] sm:$0xff]  ;;  %v438_v23 = vld [vmem:[#allocation5 + $0xa20] sm:$0xff] }
  0xc6   :  { %v431_v16 = vld [vmem:[#allocation5 + $0x9e8] sm:$0xff] }
  0xc8   :  { %3873 = vmatpush1.bf16.msra.mxu0 %v5552_v38  ;;  %4078 = vmatpush1.bf16.msra.mxu1 %v5554_v39  ;;  %v5610_v38 = vcombine.low %v379_v25, %v383_v28  ;;  %v5617_v39 = vcombine.high %v386_v33, %v390_v34  ;;  %v439_v25 = vld [vmem:[#allocation5 + $0xa28] sm:$0xff]  ;;  %v5658_v28 = vcombine.low %v427_v14, %v431_v16 }
  0xc9   :  { %3874 = vmatprep.subr.bf16.mxu0 %v5561_v40  ;;  %4079 = vmatprep.subr.bf16.mxu1 %v5563_v44  ;;  %v5619_v40 = vcombine.high %v387_v36, %v391_v37  ;;  %v399_v44 = vld [vmem:[#allocation5 + $0x8e8] sm:$0xff] }
  0xca   :  { %v443_v33 = vld [vmem:[#allocation5 + $0xa48] sm:$0xff] }
  0xcb   :  { %v447_v34 = vld [vmem:[#allocation5 + $0xa68] sm:$0xff] }
  0xcc   :  { %3875 = vmatpush1.bf16.msra.mxu0 %v5560_v46  ;;  %4080 = vmatpush1.bf16.msra.mxu1 %v5562_v47  ;;  %v5618_v46 = vcombine.low %v387_v36, %v391_v37  ;;  %v5625_v47 = vcombine.high %v394_v41, %v398_v42  ;;  %v5664_v36 = vcombine.low %v434_v22, %v438_v23  ;;  %v451_v41 = vld [vmem:[#allocation5 + $0xa88] sm:$0xff] }
  0xcd   :  { %3876 = vmatprep.subr.bf16.mxu0 %v5569_v48  ;;  %4081 = vmatprep.subr.bf16.mxu1 %v5571_v52  ;;  %v5627_v48 = vcombine.high %v395_v43, %v399_v44  ;;  %v407_v52 = vld [vmem:[#allocation5 + $0x928] sm:$0xff] }
  0xce   :  { %v455_v42 = vld [vmem:[#allocation5 + $0xaa8] sm:$0xff] }
  0xd0   :  { %3877 = vmatpush1.bf16.msra.mxu0 %v5568_v55  ;;  %4082 = vmatpush1.bf16.msra.mxu1 %v5570_v56  ;;  %v5626_v55 = vcombine.low %v395_v43, %v399_v44  ;;  %v5633_v56 = vcombine.high %v402_v49, %v406_v50  ;;  %v5674_v44 = vcombine.low %v443_v33, %v447_v34  ;;  %v459_v49 = vld [vmem:[#allocation5 + $0xac8] sm:$0xff] }
  0xd1   :  { %3878 = vmatprep.subr.bf16.mxu0 %v5577_v57  ;;  %4083 = vmatprep.subr.bf16.mxu1 %v5579_v62  ;;  %v5635_v57 = vcombine.high %v403_v51, %v407_v52  ;;  %v415_v62 = vld [vmem:[#allocation5 + $0x968] sm:$0xff] }
  0xd2   :  { %v463_v50 = vld [vmem:[#allocation5 + $0xae8] sm:$0xff] }
  0xd4   :  { %3879 = vmatpush1.bf16.msra.mxu0 %v5576_v0  ;;  %4084 = vmatpush1.bf16.msra.mxu1 %v5578_v1  ;;  %v5634_v0 = vcombine.low %v403_v51, %v407_v52  ;;  %v5641_v1 = vcombine.high %v410_v58, %v414_v59  ;;  %v5682_v52 = vcombine.low %v451_v41, %v455_v42  ;;  %v467_v58 = vld [vmem:[#allocation5 + $0xb08] sm:$0xff] }
  0xd5   :  { %3880 = vmatprep.subr.bf16.mxu0 %v5585_v2  ;;  %4085 = vmatprep.subr.bf16.mxu1 %v5587_v6  ;;  %v5643_v2 = vcombine.high %v411_v60, %v415_v62  ;;  %v423_v6 = vld [vmem:[#allocation5 + $0x9a8] sm:$0xff] }
  0xd6   :  { %v471_v59 = vld [vmem:[#allocation5 + $0xb28] sm:$0xff] }
  0xd8   :  { %3881 = vmatpush1.bf16.msra.mxu0 %v5584_v9  ;;  %4086 = vmatpush1.bf16.msra.mxu1 %v5586_v11  ;;  %v5642_v9 = vcombine.low %v411_v60, %v415_v62  ;;  %v5651_v11 = vcombine.high %v419_v5, %v423_v6  ;;  %v5690_v62 = vcombine.low %v459_v49, %v463_v50 }
  0xd9   :  { %3882 = vmatprep.subr.bf16.mxu0 %v5593_v12  ;;  %4087 = vmatprep.subr.bf16.mxu1 %v5595_v17  ;;  %v426_v12 = vld [vmem:[#allocation5 + $0x9c0] sm:$0xff]  ;;  %v5648_v17 = vcombine.low %v418_v3, %v422_v4  ;;  %v475_v3 = vld [vmem:[#allocation5 + $0xb48] sm:$0xff] }
  0xda   :  { %v5656_v53 = vcombine.low %v426_v12, %v430_v13  ;;  %v479_v4 = vld [vmem:[#allocation5 + $0xb68] sm:$0xff] }
  0xdc   :  { %3883 = vmatpush1.bf16.msra.mxu0 %v5592_v19  ;;  %4088 = vmatpush1.bf16.msra.mxu1 %v5594_v20  ;;  %v5650_v19 = vcombine.low %v419_v5, %v423_v6  ;;  %v5657_v20 = vcombine.high %v426_v12, %v430_v13  ;;  %v5698_v6 = vcombine.low %v467_v58, %v471_v59  ;;  %v483_v12 = vld [vmem:[#allocation5 + $0xb88] sm:$0xff] }
  0xdd   :  { %3893 = vmatprep.subr.bf16.mxu0 %v5601_v21  ;;  %4098 = vmatprep.subr.bf16.mxu1 %v5603_v24  ;;  %v5659_v21 = vcombine.high %v427_v14, %v431_v16  ;;  %v435_v24 = vld [vmem:[#allocation5 + $0xa08] sm:$0xff]  ;;  %v5706_v16 = vcombine.low %v475_v3, %v479_v4 }
  0xde   :  { %v5666_v37 = vcombine.low %v435_v24, %v439_v25  ;;  %v487_v13 = vld [vmem:[#allocation5 + $0xba8] sm:$0xff] }
  0xdf   :  { %3885 = vmatmul.mubr.bf16.vlgmr.msra.gmra.mrb[0].mxu0 %v6538_v27  ;;  %4090 = vmatmul.mubr.bf16.vlgmr.msra.gmra.mrb[0].mxu1 %v6538_v27 }
  0xe0   :  { %3894 = vmatpush1.bf16.msra.mxu0 %v5600_v29  ;;  %4099 = vmatpush1.bf16.msra.mxu1 %v5602_v30  ;;  %v5665_v29 = vcombine.high %v434_v22, %v438_v23  ;;  %v5667_v30 = vcombine.high %v435_v24, %v439_v25  ;;  %v491_v22 = vld [vmem:[#allocation5 + $0xbc8] sm:$0xff]  ;;  %v5714_v25 = vcombine.low %v483_v12, %v487_v13 }
  0xe1   :  { %3895 = vmatprep.subr.bf16.mxu0 %v5609_v31  ;;  %4100 = vmatprep.subr.bf16.mxu1 %v5611_v32  ;;  %v442_v31 = vld [vmem:[#allocation5 + $0xa40] sm:$0xff]  ;;  %v495_v23 = vld [vmem:[#allocation5 + $0xbe8] sm:$0xff] }
  0xe2   :  { %3925 = vmatprep.mubr.bf16.mxu0 %v6540_v35  ;;  %4130 = vmatprep.mubr.bf16.mxu1 %v6540_v35  ;;  %v446_v32 = vld [vmem:[#allocation5 + $0xa60] sm:$0xff] }
  0xe3   :  { %v5672_v43 = vcombine.low %v442_v31, %v446_v32 }
  0xe4   :  { %3896 = vmatpush1.bf16.msra.mxu0 %v5608_v7  ;;  %4101 = vmatpush1.bf16.msra.mxu1 %v5610_v38  ;;  %v5673_v7 = vcombine.high %v442_v31, %v446_v32  ;;  %v5675_v38 = vcombine.high %v443_v33, %v447_v34  ;;  %v499_v31 = vld [vmem:[#allocation5 + $0xc08] sm:$0xff]  ;;  %v6546_v33 = vld [vmem:[#allocation2 + $0x18] sm:$0xff] }
  0xe5   :  { %3897 = vmatprep.subr.bf16.mxu0 %v5617_v39  ;;  %4102 = vmatprep.subr.bf16.mxu1 %v5619_v40  ;;  %v450_v39 = vld [vmem:[#allocation5 + $0xa80] sm:$0xff]  ;;  %v503_v32 = vld [vmem:[#allocation5 + $0xc28] sm:$0xff] }
  0xe6   :  { %v454_v40 = vld [vmem:[#allocation5 + $0xaa0] sm:$0xff] }
  0xe7   :  { %v5680_v51 = vcombine.low %v450_v39, %v454_v40 }
  0xe8   :  { %3898 = vmatpush1.bf16.msra.mxu0 %v5616_v45  ;;  %4103 = vmatpush1.bf16.msra.mxu1 %v5618_v46  ;;  %v5681_v45 = vcombine.high %v450_v39, %v454_v40  ;;  %v5683_v46 = vcombine.high %v451_v41, %v455_v42  ;;  %v510_v39 = vld [vmem:[#allocation5 + $0xc60] sm:$0xff]  ;;  %v97_v40 = vcombine.high %v6546_v33, %v6546_v33  ;;  %v507_v42 = vld [vmem:[#allocation5 + $0xc48] sm:$0xff] }
  0xe9   :  { %3899 = vmatprep.subr.bf16.mxu0 %v5625_v47  ;;  %4104 = vmatprep.subr.bf16.mxu1 %v5627_v48  ;;  %v458_v47 = vld [vmem:[#allocation5 + $0xac0] sm:$0xff]  ;;  %v6552_v41 = vpack.c.bf16 %v6532_v18, %v6532_v18 }
  0xea   :  { %v462_v48 = vld [vmem:[#allocation5 + $0xae0] sm:$0xff] }
  0xeb   :  { %v5688_v60 = vcombine.low %v458_v47, %v462_v48 }
  0xec   :  { %3900 = vmatpush1.bf16.msra.mxu0 %v5624_v54  ;;  %4105 = vmatpush1.bf16.msra.mxu1 %v5626_v55  ;;  %v5689_v54 = vcombine.high %v458_v47, %v462_v48  ;;  %v5691_v55 = vcombine.high %v459_v49, %v463_v50  ;;  %v514_v48 = vld [vmem:[#allocation5 + $0xc80] sm:$0xff]  ;;  %v6554_v50 = vpack.c.bf16 %v97_v40, %v97_v40 }
  0xed   :  { %3901 = vmatprep.subr.bf16.mxu0 %v5633_v56  ;;  %4106 = vmatprep.subr.bf16.mxu1 %v5635_v57  ;;  %v466_v56 = vld [vmem:[#allocation5 + $0xb00] sm:$0xff] }
  0xee   :  { %v470_v57 = vld [vmem:[#allocation5 + $0xb20] sm:$0xff] }
  0xef   :  { %v5696_v5 = vcombine.low %v466_v56, %v470_v57  ;;  %v518_v49 = vld [vmem:[#allocation5 + $0xca0] sm:$0xff] }
  0xf0   :  { %3902 = vmatpush1.bf16.msra.mxu0 %v5632_v63  ;;  %4107 = vmatpush1.bf16.msra.mxu1 %v5634_v0  ;;  %v5697_v63 = vcombine.high %v466_v56, %v470_v57  ;;  %v5699_v0 = vcombine.high %v467_v58, %v471_v59  ;;  %v522_v57 = vld [vmem:[#allocation5 + $0xcc0] sm:$0xff]  ;;  %v523_v59 = vld [vmem:[#allocation5 + $0xcc8] sm:$0xff] }
  0xf1   :  { %3903 = vmatprep.subr.bf16.mxu0 %v5641_v1  ;;  %4108 = vmatprep.subr.bf16.mxu1 %v5643_v2  ;;  %v474_v1 = vld [vmem:[#allocation5 + $0xb40] sm:$0xff] }
  0xf2   :  { %v478_v2 = vld [vmem:[#allocation5 + $0xb60] sm:$0xff] }
  0xf3   :  { %v5704_v14 = vcombine.low %v474_v1, %v478_v2  ;;  %v526_v58 = vld [vmem:[#allocation5 + $0xce0] sm:$0xff] }
  0xf4   :  { %3904 = vmatpush1.bf16.msra.mxu0 %v5640_v8  ;;  %4109 = vmatpush1.bf16.msra.mxu1 %v5642_v9  ;;  %v5705_v8 = vcombine.high %v474_v1, %v478_v2  ;;  %v5707_v9 = vcombine.high %v475_v3, %v479_v4  ;;  %v530_v2 = vld [vmem:[#allocation5 + $0xd00] sm:$0xff]  ;;  %v531_v4 = vld [vmem:[#allocation5 + $0xd08] sm:$0xff] }
  0xf5   :  { %3905 = vmatprep.subr.bf16.mxu0 %v5649_v10  ;;  %4110 = vmatprep.subr.bf16.mxu1 %v5651_v11  ;;  %v482_v10 = vld [vmem:[#allocation5 + $0xb80] sm:$0xff] }
  0xf6   :  { %v486_v11 = vld [vmem:[#allocation5 + $0xba0] sm:$0xff] }
  0xf7   :  { %v5712_v24 = vcombine.low %v482_v10, %v486_v11  ;;  %v534_v3 = vld [vmem:[#allocation5 + $0xd20] sm:$0xff] }
  0xf8   :  { %3906 = vmatpush1.bf16.msra.mxu0 %v5648_v17  ;;  %4111 = vmatpush1.bf16.msra.mxu1 %v5650_v19  ;;  %v5713_v17 = vcombine.high %v482_v10, %v486_v11  ;;  %v5715_v19 = vcombine.high %v483_v12, %v487_v13  ;;  %v538_v11 = vld [vmem:[#allocation5 + $0xd40] sm:$0xff]  ;;  %v539_v13 = vld [vmem:[#allocation5 + $0xd48] sm:$0xff] }
  0xf9   :  { %3907 = vmatprep.subr.bf16.mxu0 %v5657_v20  ;;  %4112 = vmatprep.subr.bf16.mxu1 %v5659_v21  ;;  %v490_v20 = vld [vmem:[#allocation5 + $0xbc0] sm:$0xff] }
  0xfa   :  { %v494_v21 = vld [vmem:[#allocation5 + $0xbe0] sm:$0xff] }
  0xfb   :  { %v5720_v34 = vcombine.low %v490_v20, %v494_v21  ;;  %v542_v12 = vld [vmem:[#allocation5 + $0xd60] sm:$0xff] }
  0xfc   :  { %3908 = vmatpush1.bf16.msra.mxu0 %v5656_v53  ;;  %4113 = vmatpush1.bf16.msra.mxu1 %v5658_v28  ;;  %v5721_v53 = vcombine.high %v490_v20, %v494_v21  ;;  %v5723_v28 = vcombine.high %v491_v22, %v495_v23  ;;  %v546_v21 = vld [vmem:[#allocation5 + $0xd80] sm:$0xff] }
  0xfd   :  { %3909 = vmatprep.subr.bf16.mxu0 %v5665_v29  ;;  %4114 = vmatprep.subr.bf16.mxu1 %v5667_v30  ;;  %v498_v29 = vld [vmem:[#allocation5 + $0xc00] sm:$0xff] }
  0xfe   :  { %v502_v30 = vld [vmem:[#allocation5 + $0xc20] sm:$0xff] }
  0xff   :  { %v566_v40 = vld [vmem:[#allocation5 + $0xe20] sm:$0xff] }
 0x100   :  { %3910 = vmatpush1.bf16.msra.mxu0 %v5664_v36  ;;  %4115 = vmatpush1.bf16.msra.mxu1 %v5666_v37  ;;  %v5722_v36 = vcombine.low %v491_v22, %v495_v23  ;;  %v5729_v37 = vcombine.high %v498_v29, %v502_v30  ;;  %v550_v22 = vld [vmem:[#allocation5 + $0xda0] sm:$0xff]  ;;  %v547_v23 = vld [vmem:[#allocation5 + $0xd88] sm:$0xff] }
 0x101   :  { %3911 = vmatprep.subr.bf16.mxu0 %v5673_v7  ;;  %4116 = vmatprep.subr.bf16.mxu1 %v5675_v38  ;;  %v5731_v7 = vcombine.high %v499_v31, %v503_v32  ;;  %v506_v38 = vld [vmem:[#allocation5 + $0xc40] sm:$0xff] }
 0x102   :  { %v5736_v18 = vcombine.low %v506_v38, %v510_v39 }
 0x104   :  { %3912 = vmatpush1.bf16.msra.mxu0 %v5672_v43  ;;  %4117 = vmatpush1.bf16.msra.mxu1 %v5674_v44  ;;  %v511_v43 = vld [vmem:[#allocation5 + $0xc68] sm:$0xff]  ;;  %v5728_v44 = vcombine.low %v498_v29, %v502_v30  ;;  %v554_v30 = vld [vmem:[#allocation5 + $0xdc0] sm:$0xff] }
 0x105   :  { %3913 = vmatprep.subr.bf16.mxu0 %v5681_v45  ;;  %4118 = vmatprep.subr.bf16.mxu1 %v5683_v46  ;;  %v5730_v45 = vcombine.low %v499_v31, %v503_v32  ;;  %v5737_v46 = vcombine.high %v506_v38, %v510_v39  ;;  %v5739_v47 = vcombine.high %v507_v42, %v511_v43  ;;  %v558_v31 = vld [vmem:[#allocation5 + $0xde0] sm:$0xff]  ;;  %v555_v32 = vld [vmem:[#allocation5 + $0xdc8] sm:$0xff] }
 0x106   :  { %v562_v39 = vld [vmem:[#allocation5 + $0xe00] sm:$0xff] }
 0x108   :  { %3914 = vmatpush1.bf16.msra.mxu0 %v5680_v51  ;;  %4119 = vmatpush1.bf16.msra.mxu1 %v5682_v52  ;;  %v515_v51 = vld [vmem:[#allocation5 + $0xc88] sm:$0xff] }
 0x109   :  { %3915 = vmatprep.subr.bf16.mxu0 %v5689_v54  ;;  %4120 = vmatprep.subr.bf16.mxu1 %v5691_v55  ;;  %v519_v52 = vld [vmem:[#allocation5 + $0xca8] sm:$0xff]  ;;  %v5738_v54 = vcombine.low %v507_v42, %v511_v43  ;;  %v5745_v55 = vcombine.high %v514_v48, %v518_v49 }
 0x10a   :  { %v5747_v56 = vcombine.high %v515_v51, %v519_v52  ;;  %v563_v42 = vld [vmem:[#allocation5 + $0xe08] sm:$0xff] }
 0x10b   :  { %v567_v43 = vld [vmem:[#allocation5 + $0xe28] sm:$0xff] }
 0x10c   :  { %3916 = vmatpush1.bf16.msra.mxu0 %v5688_v60  ;;  %4121 = vmatpush1.bf16.msra.mxu1 %v5690_v62  ;;  %v527_v60 = vld [vmem:[#allocation5 + $0xce8] sm:$0xff]  ;;  %v5744_v62 = vcombine.low %v514_v48, %v518_v49  ;;  %v570_v48 = vld [vmem:[#allocation5 + $0xe40] sm:$0xff] }
 0x10d   :  { %3917 = vmatprep.subr.bf16.mxu0 %v5697_v63  ;;  %4122 = vmatprep.subr.bf16.mxu1 %v5699_v0  ;;  %v5746_v63 = vcombine.low %v515_v51, %v519_v52  ;;  %v5753_v0 = vcombine.high %v522_v57, %v526_v58  ;;  %v5755_v1 = vcombine.high %v523_v59, %v527_v60  ;;  %v574_v49 = vld [vmem:[#allocation5 + $0xe60] sm:$0xff]  ;;  %v571_v51 = vld [vmem:[#allocation5 + $0xe48] sm:$0xff] }
 0x10e   :  { %v575_v52 = vld [vmem:[#allocation5 + $0xe68] sm:$0xff] }
 0x110   :  { %3918 = vmatpush1.bf16.msra.mxu0 %v5696_v5  ;;  %4123 = vmatpush1.bf16.msra.mxu1 %v5698_v6  ;;  %v535_v5 = vld [vmem:[#allocation5 + $0xd28] sm:$0xff]  ;;  %v5752_v6 = vcombine.low %v522_v57, %v526_v58  ;;  %v578_v57 = vld [vmem:[#allocation5 + $0xe80] sm:$0xff] }
 0x111   :  { %3919 = vmatprep.subr.bf16.mxu0 %v5705_v8  ;;  %4124 = vmatprep.subr.bf16.mxu1 %v5707_v9  ;;  %v5754_v8 = vcombine.low %v523_v59, %v527_v60  ;;  %v5761_v9 = vcombine.high %v530_v2, %v534_v3  ;;  %v5763_v10 = vcombine.high %v531_v4, %v535_v5  ;;  %v582_v58 = vld [vmem:[#allocation5 + $0xea0] sm:$0xff]  ;;  %v579_v59 = vld [vmem:[#allocation5 + $0xe88] sm:$0xff] }
 0x112   :  { %v583_v60 = vld [vmem:[#allocation5 + $0xea8] sm:$0xff] }
 0x114   :  { %3920 = vmatpush1.bf16.msra.mxu0 %v5704_v14  ;;  %4125 = vmatpush1.bf16.msra.mxu1 %v5706_v16  ;;  %v543_v14 = vld [vmem:[#allocation5 + $0xd68] sm:$0xff]  ;;  %v5760_v16 = vcombine.low %v530_v2, %v534_v3  ;;  %v586_v2 = vld [vmem:[#allocation5 + $0xec0] sm:$0xff] }
 0x115   :  { %3921 = vmatprep.subr.bf16.mxu0 %v5713_v17  ;;  %4126 = vmatprep.subr.bf16.mxu1 %v5715_v19  ;;  %v5762_v17 = vcombine.low %v531_v4, %v535_v5  ;;  %v5769_v19 = vcombine.high %v538_v11, %v542_v12  ;;  %v5771_v20 = vcombine.high %v539_v13, %v543_v14  ;;  %v590_v3 = vld [vmem:[#allocation5 + $0xee0] sm:$0xff]  ;;  %v587_v4 = vld [vmem:[#allocation5 + $0xec8] sm:$0xff] }
 0x116   :  { %v591_v5 = vld [vmem:[#allocation5 + $0xee8] sm:$0xff] }
 0x118   :  { %3922 = vmatpush1.bf16.msra.mxu0 %v5712_v24  ;;  %4127 = vmatpush1.bf16.msra.mxu1 %v5714_v25  ;;  %v551_v24 = vld [vmem:[#allocation5 + $0xda8] sm:$0xff]  ;;  %v5768_v25 = vcombine.low %v538_v11, %v542_v12  ;;  %v594_v11 = vld [vmem:[#allocation5 + $0xf00] sm:$0xff] }
 0x119   :  { %3923 = vmatprep.subr.bf16.mxu0 %v5721_v53  ;;  %4128 = vmatprep.subr.bf16.mxu1 %v5723_v28  ;;  %v5770_v53 = vcombine.low %v539_v13, %v543_v14  ;;  %v5777_v28 = vcombine.high %v546_v21, %v550_v22  ;;  %v5779_v29 = vcombine.high %v547_v23, %v551_v24  ;;  %v598_v12 = vld [vmem:[#allocation5 + $0xf20] sm:$0xff]  ;;  %v595_v13 = vld [vmem:[#allocation5 + $0xf08] sm:$0xff] }
 0x11a   :  { %v599_v14 = vld [vmem:[#allocation5 + $0xf28] sm:$0xff] }
 0x11c   :  { %3924 = vmatpush1.bf16.msra.mxu0 %v5720_v34  ;;  %4129 = vmatpush1.bf16.msra.mxu1 %v5722_v36  ;;  %v559_v34 = vld [vmem:[#allocation5 + $0xde8] sm:$0xff]  ;;  %v5776_v36 = vcombine.low %v546_v21, %v550_v22  ;;  %v602_v21 = vld [vmem:[#allocation5 + $0xf40] sm:$0xff] }
 0x11d   :  { %3934 = vmatprep.subr.bf16.mxu0 %v5729_v37  ;;  %4139 = vmatprep.subr.bf16.mxu1 %v5731_v7  ;;  %v5778_v37 = vcombine.low %v547_v23, %v551_v24  ;;  %v5785_v7 = vcombine.high %v554_v30, %v558_v31  ;;  %v5787_v38 = vcombine.high %v555_v32, %v559_v34  ;;  %v606_v22 = vld [vmem:[#allocation5 + $0xf60] sm:$0xff]  ;;  %v603_v23 = vld [vmem:[#allocation5 + $0xf48] sm:$0xff] }
 0x11e   :  { %v607_v24 = vld [vmem:[#allocation5 + $0xf68] sm:$0xff] }
 0x11f   :  { %3926 = vmatmul.mubr.bf16.vlgmr.msra.gmra.mrb[0].mxu0 %v6552_v41  ;;  %4131 = vmatmul.mubr.bf16.vlgmr.msra.gmra.mrb[0].mxu1 %v6552_v41 }
 0x120   :  { %3935 = vmatpush1.bf16.msra.mxu0 %v5728_v44  ;;  %4140 = vmatpush1.bf16.msra.mxu1 %v5730_v45  ;;  %v5784_v44 = vcombine.low %v554_v30, %v558_v31  ;;  %v5786_v45 = vcombine.low %v555_v32, %v559_v34  ;;  %v610_v30 = vld [vmem:[#allocation5 + $0xf80] sm:$0xff]  ;;  %v611_v32 = vld [vmem:[#allocation5 + $0xf88] sm:$0xff] }
 0x121   :  { %3936 = vmatprep.subr.bf16.mxu0 %v5737_v46  ;;  %4141 = vmatprep.subr.bf16.mxu1 %v5739_v47  ;;  %v5793_v46 = vcombine.high %v562_v39, %v566_v40  ;;  %v5795_v47 = vcombine.high %v563_v42, %v567_v43  ;;  %v614_v31 = vld [vmem:[#allocation5 + $0xfa0] sm:$0xff]  ;;  %v615_v34 = vld [vmem:[#allocation5 + $0xfa8] sm:$0xff] }
 0x122   :  { %3966 = vmatprep.mubr.bf16.mxu0 %v6554_v50  ;;  %4171 = vmatprep.mubr.bf16.mxu1 %v6554_v50 }
 0x124   :  { %3937 = vmatpush1.bf16.msra.mxu0 %v5736_v18  ;;  %4142 = vmatpush1.bf16.msra.mxu1 %v5738_v54  ;;  %v5792_v18 = vcombine.low %v562_v39, %v566_v40  ;;  %v5794_v54 = vcombine.low %v563_v42, %v567_v43  ;;  %v618_v39 = vld [vmem:[#allocation5 + $0xfc0] sm:$0xff]  ;;  %v619_v42 = vld [vmem:[#allocation5 + $0xfc8] sm:$0xff] }
 0x125   :  { %3938 = vmatprep.subr.bf16.mxu0 %v5745_v55  ;;  %4143 = vmatprep.subr.bf16.mxu1 %v5747_v56  ;;  %v5801_v55 = vcombine.high %v570_v48, %v574_v49  ;;  %v5803_v56 = vcombine.high %v571_v51, %v575_v52  ;;  %v622_v40 = vld [vmem:[#allocation5 + $0xfe0] sm:$0xff]  ;;  %v623_v43 = vld [vmem:[#allocation5 + $0xfe8] sm:$0xff] }
 0x128   :  { %3939 = vmatpush1.bf16.msra.mxu0 %v5744_v62  ;;  %4144 = vmatpush1.bf16.msra.mxu1 %v5746_v63  ;;  %v5800_v62 = vcombine.low %v570_v48, %v574_v49  ;;  %v5802_v63 = vcombine.low %v571_v51, %v575_v52  ;;  %v626_v48 = vld [vmem:[#allocation5 + $0x1000] sm:$0xff]  ;;  %v627_v51 = vld [vmem:[#allocation5 + $0x1008] sm:$0xff] }
 0x129   :  { %3940 = vmatprep.subr.bf16.mxu0 %v5753_v0  ;;  %4145 = vmatprep.subr.bf16.mxu1 %v5755_v1  ;;  %v5809_v0 = vcombine.high %v578_v57, %v582_v58  ;;  %v5811_v1 = vcombine.high %v579_v59, %v583_v60  ;;  %v630_v49 = vld [vmem:[#allocation5 + $0x1020] sm:$0xff]  ;;  %v631_v52 = vld [vmem:[#allocation5 + $0x1028] sm:$0xff] }
 0x12c   :  { %3941 = vmatpush1.bf16.msra.mxu0 %v5752_v6  ;;  %4146 = vmatpush1.bf16.msra.mxu1 %v5754_v8  ;;  %v5808_v6 = vcombine.low %v578_v57, %v582_v58  ;;  %v5810_v8 = vcombine.low %v579_v59, %v583_v60  ;;  %v5859_v57 = vcombine.high %v627_v51, %v631_v52  ;;  %v634_v58 = vld [vmem:[#allocation5 + $0x1040] sm:$0xff] }
 0x12d   :  { %3942 = vmatprep.subr.bf16.mxu0 %v5761_v9  ;;  %4147 = vmatprep.subr.bf16.mxu1 %v5763_v10  ;;  %v5817_v9 = vcombine.high %v586_v2, %v590_v3  ;;  %v5819_v10 = vcombine.high %v587_v4, %v591_v5  ;;  %v638_v59 = vld [vmem:[#allocation5 + $0x1060] sm:$0xff] }
 0x130   :  { %3943 = vmatpush1.bf16.msra.mxu0 %v5760_v16  ;;  %4148 = vmatpush1.bf16.msra.mxu1 %v5762_v17  ;;  %v5816_v16 = vcombine.low %v586_v2, %v590_v3  ;;  %v5818_v17 = vcombine.low %v587_v4, %v591_v5  ;;  %v5858_v2 = vcombine.low %v627_v51, %v631_v52  ;;  %v642_v5 = vld [vmem:[#allocation5 + $0x1080] sm:$0xff] }
 0x131   :  { %3944 = vmatprep.subr.bf16.mxu0 %v5769_v19  ;;  %4149 = vmatprep.subr.bf16.mxu1 %v5771_v20  ;;  %v5825_v19 = vcombine.high %v594_v11, %v598_v12  ;;  %v5827_v20 = vcombine.high %v595_v13, %v599_v14  ;;  %v5865_v3 = vcombine.high %v634_v58, %v638_v59  ;;  %v682_v52 = vld [vmem:[#allocation5 + $0x11c0] sm:$0xff] }
 0x134   :  { %3945 = vmatpush1.bf16.msra.mxu0 %v5768_v25  ;;  %4150 = vmatpush1.bf16.msra.mxu1 %v5770_v53  ;;  %v5824_v25 = vcombine.low %v594_v11, %v598_v12  ;;  %v5826_v53 = vcombine.low %v595_v13, %v599_v14  ;;  %v650_v14 = vld [vmem:[#allocation5 + $0x10c0] sm:$0xff] }
 0x135   :  { %3946 = vmatprep.subr.bf16.mxu0 %v5777_v28  ;;  %4151 = vmatprep.subr.bf16.mxu1 %v5779_v29  ;;  %v5833_v28 = vcombine.high %v602_v21, %v606_v22  ;;  %v5835_v29 = vcombine.high %v603_v23, %v607_v24 }
 0x138   :  { %3947 = vmatpush1.bf16.msra.mxu0 %v5776_v36  ;;  %4152 = vmatpush1.bf16.msra.mxu1 %v5778_v37  ;;  %v5832_v36 = vcombine.low %v602_v21, %v606_v22  ;;  %v5834_v37 = vcombine.low %v603_v23, %v607_v24  ;;  %v658_v24 = vld [vmem:[#allocation5 + $0x1100] sm:$0xff] }
 0x139   :  { %3948 = vmatprep.subr.bf16.mxu0 %v5785_v7  ;;  %4153 = vmatprep.subr.bf16.mxu1 %v5787_v38  ;;  %v5841_v7 = vcombine.high %v610_v30, %v614_v31  ;;  %v5843_v38 = vcombine.high %v611_v32, %v615_v34 }
 0x13c   :  { %3949 = vmatpush1.bf16.msra.mxu0 %v5784_v44  ;;  %4154 = vmatpush1.bf16.msra.mxu1 %v5786_v45  ;;  %v5840_v44 = vcombine.low %v610_v30, %v614_v31  ;;  %v5842_v45 = vcombine.low %v611_v32, %v615_v34  ;;  %v666_v34 = vld [vmem:[#allocation5 + $0x1140] sm:$0xff] }
 0x13d   :  { %3950 = vmatprep.subr.bf16.mxu0 %v5793_v46  ;;  %4155 = vmatprep.subr.bf16.mxu1 %v5795_v47  ;;  %v5849_v46 = vcombine.high %v618_v39, %v622_v40  ;;  %v5851_v47 = vcombine.high %v619_v42, %v623_v43 }
 0x140   :  { %3951 = vmatpush1.bf16.msra.mxu0 %v5792_v18  ;;  %4156 = vmatpush1.bf16.msra.mxu1 %v5794_v54  ;;  %v6560_v18 = vld [vmem:[#allocation2 + $0x20] sm:$0xff]  ;;  %v5848_v54 = vcombine.low %v618_v39, %v622_v40 }
 0x141   :  { %3952 = vmatprep.subr.bf16.mxu0 %v5801_v55  ;;  %4157 = vmatprep.subr.bf16.mxu1 %v5803_v56  ;;  %v5850_v55 = vcombine.low %v619_v42, %v623_v43  ;;  %v5857_v56 = vcombine.high %v626_v48, %v630_v49  ;;  %v98_v60 = vcombine.high %v6560_v18, %v6560_v18  ;;  %v674_v43 = vld [vmem:[#allocation5 + $0x1180] sm:$0xff] }
 0x144   :  { %3953 = vmatpush1.bf16.msra.mxu0 %v5800_v62  ;;  %4158 = vmatpush1.bf16.msra.mxu1 %v5802_v63  ;;  %v6566_v62 = vpack.c.bf16 %v6546_v33, %v6546_v33  ;;  %v635_v63 = vld [vmem:[#allocation5 + $0x1048] sm:$0xff]  ;;  %v5864_v33 = vcombine.low %v634_v58, %v638_v59 }
 0x145   :  { %3954 = vmatprep.subr.bf16.mxu0 %v5809_v0  ;;  %4159 = vmatprep.subr.bf16.mxu1 %v5811_v1  ;;  %v639_v0 = vld [vmem:[#allocation5 + $0x1068] sm:$0xff]  ;;  %v5856_v1 = vcombine.low %v626_v48, %v630_v49 }
 0x146   :  { %v5867_v4 = vcombine.high %v635_v63, %v639_v0  ;;  %v5866_v11 = vcombine.low %v635_v63, %v639_v0  ;;  %v690_v63 = vld [vmem:[#allocation5 + $0x1200] sm:$0xff] }
 0x147   :  { %v694_v0 = vld [vmem:[#allocation5 + $0x1220] sm:$0xff] }
 0x148   :  { %3955 = vmatpush1.bf16.msra.mxu0 %v5808_v6  ;;  %4160 = vmatpush1.bf16.msra.mxu1 %v5810_v8  ;;  %v646_v6 = vld [vmem:[#allocation5 + $0x10a0] sm:$0xff]  ;;  %v6568_v8 = vpack.c.bf16 %v98_v60, %v98_v60 }
 0x149   :  { %3956 = vmatprep.subr.bf16.mxu0 %v5817_v9  ;;  %4161 = vmatprep.subr.bf16.mxu1 %v5819_v10  ;;  %v643_v9 = vld [vmem:[#allocation5 + $0x1088] sm:$0xff]  ;;  %v5873_v12 = vcombine.high %v642_v5, %v646_v6 }
 0x14a   :  { %v647_v10 = vld [vmem:[#allocation5 + $0x10a8] sm:$0xff] }
 0x14b   :  { %v5875_v13 = vcombine.high %v643_v9, %v647_v10  ;;  %v5874_v21 = vcombine.low %v643_v9, %v647_v10  ;;  %v698_v9 = vld [vmem:[#allocation5 + $0x1240] sm:$0xff] }
 0x14c   :  { %3957 = vmatpush1.bf16.msra.mxu0 %v5816_v16  ;;  %4162 = vmatpush1.bf16.msra.mxu1 %v5818_v17  ;;  %v654_v16 = vld [vmem:[#allocation5 + $0x10e0] sm:$0xff]  ;;  %v651_v17 = vld [vmem:[#allocation5 + $0x10c8] sm:$0xff] }
 0x14d   :  { %3958 = vmatprep.subr.bf16.mxu0 %v5825_v19  ;;  %4163 = vmatprep.subr.bf16.mxu1 %v5827_v20  ;;  %v655_v19 = vld [vmem:[#allocation5 + $0x10e8] sm:$0xff]  ;;  %v5872_v20 = vcombine.low %v642_v5, %v646_v6  ;;  %v5881_v22 = vcombine.high %v650_v14, %v654_v16  ;;  %v5921_v5 = vcombine.high %v690_v63, %v694_v0  ;;  %v702_v10 = vld [vmem:[#allocation5 + $0x1260] sm:$0xff] }
 0x14e   :  { %v5883_v23 = vcombine.high %v651_v17, %v655_v19  ;;  %v5882_v30 = vcombine.low %v651_v17, %v655_v19  ;;  %v706_v17 = vld [vmem:[#allocation5 + $0x1280] sm:$0xff] }
 0x14f   :  { %v710_v19 = vld [vmem:[#allocation5 + $0x12a0] sm:$0xff] }
 0x150   :  { %3959 = vmatpush1.bf16.msra.mxu0 %v5824_v25  ;;  %4164 = vmatpush1.bf16.msra.mxu1 %v5826_v53  ;;  %v662_v25 = vld [vmem:[#allocation5 + $0x1120] sm:$0xff]  ;;  %v659_v53 = vld [vmem:[#allocation5 + $0x1108] sm:$0xff] }
 0x151   :  { %3960 = vmatprep.subr.bf16.mxu0 %v5833_v28  ;;  %4165 = vmatprep.subr.bf16.mxu1 %v5835_v29  ;;  %v663_v28 = vld [vmem:[#allocation5 + $0x1128] sm:$0xff]  ;;  %v5880_v29 = vcombine.low %v650_v14, %v654_v16  ;;  %v5889_v31 = vcombine.high %v658_v24, %v662_v25  ;;  %v5929_v14 = vcombine.high %v698_v9, %v702_v10 }
 0x152   :  { %v5891_v32 = vcombine.high %v659_v53, %v663_v28  ;;  %v5890_v39 = vcombine.low %v659_v53, %v663_v28  ;;  %v5937_v53 = vcombine.high %v706_v17, %v710_v19 }
 0x154   :  { %3961 = vmatpush1.bf16.msra.mxu0 %v5832_v36  ;;  %4166 = vmatpush1.bf16.msra.mxu1 %v5834_v37  ;;  %v670_v36 = vld [vmem:[#allocation5 + $0x1160] sm:$0xff]  ;;  %v667_v37 = vld [vmem:[#allocation5 + $0x1148] sm:$0xff] }
 0x155   :  { %3962 = vmatprep.subr.bf16.mxu0 %v5841_v7  ;;  %4167 = vmatprep.subr.bf16.mxu1 %v5843_v38  ;;  %v671_v7 = vld [vmem:[#allocation5 + $0x1168] sm:$0xff]  ;;  %v5888_v38 = vcombine.low %v658_v24, %v662_v25  ;;  %v5897_v40 = vcombine.high %v666_v34, %v670_v36  ;;  %v5928_v24 = vcombine.low %v698_v9, %v702_v10  ;;  %v141_v9 = vld [vmem:[#allocation5 + $0xd8] sm:$0xff] }
 0x156   :  { %v5899_v42 = vcombine.high %v667_v37, %v671_v7  ;;  %v5898_v48 = vcombine.low %v667_v37, %v671_v7  ;;  %v145_v10 = vld [vmem:[#allocation5 + $0xf8] sm:$0xff] }
 0x158   :  { %3963 = vmatpush1.bf16.msra.mxu0 %v5840_v44  ;;  %4168 = vmatpush1.bf16.msra.mxu1 %v5842_v45  ;;  %v678_v44 = vld [vmem:[#allocation5 + $0x11a0] sm:$0xff]  ;;  %v675_v45 = vld [vmem:[#allocation5 + $0x1188] sm:$0xff] }
 0x159   :  { %3964 = vmatprep.subr.bf16.mxu0 %v5849_v46  ;;  %4169 = vmatprep.subr.bf16.mxu1 %v5851_v47  ;;  %v679_v46 = vld [vmem:[#allocation5 + $0x11a8] sm:$0xff]  ;;  %v5896_v47 = vcombine.low %v666_v34, %v670_v36  ;;  %v5905_v49 = vcombine.high %v674_v43, %v678_v44  ;;  %v5936_v34 = vcombine.low %v706_v17, %v710_v19  ;;  %v149_v17 = vld [vmem:[#allocation5 + $0x118] sm:$0xff] }
 0x15a   :  { %v5907_v51 = vcombine.high %v675_v45, %v679_v46  ;;  %v5906_v58 = vcombine.low %v675_v45, %v679_v46  ;;  %v153_v19 = vld [vmem:[#allocation5 + $0x138] sm:$0xff] }
 0x15c   :  { %3965 = vmatpush1.bf16.msra.mxu0 %v5848_v54  ;;  %4170 = vmatpush1.bf16.msra.mxu1 %v5850_v55  ;;  %v686_v54 = vld [vmem:[#allocation5 + $0x11e0] sm:$0xff]  ;;  %v683_v55 = vld [vmem:[#allocation5 + $0x11c8] sm:$0xff] }
 0x15d   :  { %3975 = vmatprep.subr.bf16.mxu0 %v5857_v56  ;;  %4180 = vmatprep.subr.bf16.mxu1 %v5859_v57  ;;  %v687_v56 = vld [vmem:[#allocation5 + $0x11e8] sm:$0xff]  ;;  %v5904_v57 = vcombine.low %v674_v43, %v678_v44  ;;  %v5913_v59 = vcombine.high %v682_v52, %v686_v54  ;;  %v117_v43 = vld [vmem:[#allocation5 + $0x18] sm:$0xff] }
 0x15e   :  { %v5915_v60 = vcombine.high %v683_v55, %v687_v56  ;;  %v121_v44 = vld [vmem:[#allocation5 + $0x38] sm:$0xff] }
 0x15f   :  { %3967 = vmatmul.mubr.bf16.vlgmr.msra.gmra.mrb[0].mxu0 %v6566_v62  ;;  %4172 = vmatmul.mubr.bf16.vlgmr.msra.gmra.mrb[0].mxu1 %v6566_v62 }
 0x160   :  { %3976 = vmatpush1.bf16.msra.mxu0 %v5856_v1  ;;  %4181 = vmatpush1.bf16.msra.mxu1 %v5858_v2  ;;  %v691_v1 = vld [vmem:[#allocation5 + $0x1208] sm:$0xff] }
 0x161   :  { %3977 = vmatprep.subr.bf16.mxu0 %v5865_v3  ;;  %4182 = vmatprep.subr.bf16.mxu1 %v5867_v4  ;;  %v695_v2 = vld [vmem:[#allocation5 + $0x1228] sm:$0xff]  ;;  %v5912_v3 = vcombine.low %v682_v52, %v686_v54  ;;  %v5914_v4 = vcombine.low %v683_v55, %v687_v56  ;;  %v6584_v52 = vpack.c.bf16 %v6560_v18, %v6560_v18  ;;  %v125_v54 = vld [vmem:[#allocation5 + $0x58] sm:$0xff] }
 0x162   :  { %5952 = vmatprep.mubr.msk.bf16.mxu0 %vm3780_vm0, %v6568_v8  ;;  %5953 = vmatprep.mubr.msk.bf16.mxu1 %vm3780_vm0, %v6568_v8  ;;  %v5923_v6 = vcombine.high %v691_v1, %v695_v2  ;;  %v129_v55 = vld [vmem:[#allocation5 + $0x78] sm:$0xff] }
 0x164   :  { %3978 = vmatpush1.bf16.msra.mxu0 %v5864_v33  ;;  %4183 = vmatpush1.bf16.msra.mxu1 %v5866_v11  ;;  %v699_v33 = vld [vmem:[#allocation5 + $0x1248] sm:$0xff] }
 0x165   :  { %3979 = vmatprep.subr.bf16.mxu0 %v5873_v12  ;;  %4184 = vmatprep.subr.bf16.mxu1 %v5875_v13  ;;  %v703_v11 = vld [vmem:[#allocation5 + $0x1268] sm:$0xff]  ;;  %v5920_v12 = vcombine.low %v690_v63, %v694_v0  ;;  %v5922_v13 = vcombine.low %v691_v1, %v695_v2  ;;  %v136_v63 = vld [vmem:[#allocation5 + $0xb0] sm:$0xff]  ;;  %v133_v0 = vld [vmem:[#allocation5 + $0x98] sm:$0xff]  ;;  %v5358_v2 = vcombine.low %v125_v54, %v129_v55 }
 0x166   :  { %v5931_v16 = vcombine.high %v699_v33, %v703_v11  ;;  %v5930_v25 = vcombine.low %v699_v33, %v703_v11  ;;  %v137_v1 = vld [vmem:[#allocation5 + $0xb8] sm:$0xff] }
 0x167   :  { %v5366_v11 = vcombine.low %v133_v0, %v137_v1 }
 0x168   :  { %3980 = vmatpush1.bf16.msra.mxu0 %v5872_v20  ;;  %4185 = vmatpush1.bf16.msra.mxu1 %v5874_v21  ;;  %v714_v20 = vld [vmem:[#allocation5 + $0x12c0] sm:$0x11]  ;;  %v707_v21 = vld [vmem:[#allocation5 + $0x1288] sm:$0xff] }
 0x169   :  { %3981 = vmatprep.subr.bf16.mxu0 %v5881_v22  ;;  %4186 = vmatprep.subr.bf16.mxu1 %v5883_v23  ;;  %v711_v22 = vld [vmem:[#allocation5 + $0x12a8] sm:$0xff]  ;;  %v5945_v28 = vcombine.high %v714_v20, %v714_v20  ;;  %v5944_v36 = vcombine.low %v714_v20, %v714_v20 }
 0x16a   :  { %v715_v23 = vld [vmem:[#allocation5 + $0x12c8] sm:$0x11]  ;;  %v5938_v37 = vcombine.low %v707_v21, %v711_v22 }
 0x16c   :  { %3982 = vmatpush1.bf16.msra.mxu0 %v5880_v29  ;;  %4187 = vmatpush1.bf16.msra.mxu1 %v5882_v30  ;;  %v5939_v29 = vcombine.high %v707_v21, %v711_v22  ;;  %v6418_v30 = vmov 0   ;;  %v5374_v21 = vcombine.low %v141_v9, %v145_v10 }
 0x16d   :  { %3983 = vmatprep.subr.bf16.mxu0 %v5889_v31  ;;  %4188 = vmatprep.subr.bf16.mxu1 %v5891_v32  ;;  %v6576_v31 = vsel %vm3784_vm1, 65535, %v6418_v30  ;;  %v5947_v32 = vcombine.high %v715_v23, %v715_v23 }
 0x16e   :  { %v3791_v7 = vand.u32 %v5945_v28, %v6576_v31  ;;  %v3788_v45 = vand.u32 %v5944_v36, %v6576_v31  ;;  %v168_v36 = vld [vmem:[#allocation5 + $0x1b0] sm:$0xff] }
 0x170   :  { %3984 = vmatpush1.bf16.msra.mxu0 %v5888_v38  ;;  %4189 = vmatpush1.bf16.msra.mxu1 %v5890_v39  ;;  %v5946_v38 = vcombine.low %v715_v23, %v715_v23  ;;  %v3797_v39 = vand.u32 %v5947_v32, %v6576_v31  ;;  %v156_v23 = vld [vmem:[#allocation5 + $0x150] sm:$0xff] }
 0x171   :  { %3985 = vmatprep.subr.bf16.mxu0 %v5897_v40  ;;  %4190 = vmatprep.subr.bf16.mxu1 %v5899_v42  ;;  %v116_v40 = vld [vmem:[#allocation5 + $0x10] sm:$0xff] }
 0x172   :  { %v120_v42 = vld [vmem:[#allocation5 + $0x30] sm:$0xff]  ;;  %v3794_v46 = vand.u32 %v5946_v38, %v6576_v31 }
 0x173   :  { %v5348_v56 = vcombine.low %v116_v40, %v120_v42 }
 0x174   :  { %3986 = vmatpush1.bf16.msra.mxu0 %v5896_v47  ;;  %4191 = vmatpush1.bf16.msra.mxu1 %v5898_v48  ;;  %v5349_v47 = vcombine.high %v116_v40, %v120_v42  ;;  %v5351_v48 = vcombine.high %v117_v43, %v121_v44 }
 0x175   :  { %3987 = vmatprep.subr.bf16.mxu0 %v5905_v49  ;;  %4192 = vmatprep.subr.bf16.mxu1 %v5907_v51  ;;  %v124_v49 = vld [vmem:[#allocation5 + $0x50] sm:$0xff] }
 0x176   :  { %v128_v51 = vld [vmem:[#allocation5 + $0x70] sm:$0xff] }
 0x177   :  { %v5356_v18 = vcombine.low %v124_v49, %v128_v51 }
 0x178   :  { %3988 = vmatpush1.bf16.msra.mxu0 %v5904_v57  ;;  %4193 = vmatpush1.bf16.msra.mxu1 %v5906_v58  ;;  %v5350_v57 = vcombine.low %v117_v43, %v121_v44  ;;  %v5357_v58 = vcombine.high %v124_v49, %v128_v51  ;;  %v172_v43 = vld [vmem:[#allocation5 + $0x1d0] sm:$0xff] }
 0x179   :  { %3989 = vmatprep.subr.bf16.mxu0 %v5913_v59  ;;  %4194 = vmatprep.subr.bf16.mxu1 %v5915_v60  ;;  %v5359_v59 = vcombine.high %v125_v54, %v129_v55  ;;  %v132_v60 = vld [vmem:[#allocation5 + $0x90] sm:$0xff] }
 0x17a   :  { %v5364_v33 = vcombine.low %v132_v60, %v136_v63  ;;  %v176_v44 = vld [vmem:[#allocation5 + $0x1f0] sm:$0xff] }
 0x17b   :  { %v5405_v49 = vcombine.high %v172_v43, %v176_v44  ;;  %v180_v54 = vld [vmem:[#allocation5 + $0x210] sm:$0xff] }
 0x17c   :  { %3990 = vmatpush1.bf16.msra.mxu0 %v5912_v3  ;;  %4195 = vmatpush1.bf16.msra.mxu1 %v5914_v4  ;;  %v5365_v3 = vcombine.high %v132_v60, %v136_v63  ;;  %v5367_v4 = vcombine.high %v133_v0, %v137_v1  ;;  %v184_v55 = vld [vmem:[#allocation5 + $0x230] sm:$0xff] }
 0x17d   :  { %3991 = vmatprep.subr.bf16.mxu0 %v5921_v5  ;;  %4196 = vmatprep.subr.bf16.mxu1 %v5923_v6  ;;  %v140_v5 = vld [vmem:[#allocation5 + $0xd0] sm:$0xff]  ;;  %v5413_v60 = vcombine.high %v180_v54, %v184_v55 }
 0x17e   :  { %v144_v6 = vld [vmem:[#allocation5 + $0xf0] sm:$0xff] }
 0x17f   :  { %v5372_v20 = vcombine.low %v140_v5, %v144_v6  ;;  %v188_v0 = vld [vmem:[#allocation5 + $0x250] sm:$0xff] }
 0x180   :  { %3992 = vmatpush1.bf16.msra.mxu0 %v5920_v12  ;;  %4197 = vmatpush1.bf16.msra.mxu1 %v5922_v13  ;;  %v5373_v12 = vcombine.high %v140_v5, %v144_v6  ;;  %v5375_v13 = vcombine.high %v141_v9, %v145_v10  ;;  %v192_v1 = vld [vmem:[#allocation5 + $0x270] sm:$0xff] }
 0x181   :  { %3993 = vmatprep.subr.bf16.mxu0 %v5929_v14  ;;  %4198 = vmatprep.subr.bf16.mxu1 %v5931_v16  ;;  %v148_v14 = vld [vmem:[#allocation5 + $0x110] sm:$0xff]  ;;  %v5421_v5 = vcombine.high %v188_v0, %v192_v1 }
 0x182   :  { %v152_v16 = vld [vmem:[#allocation5 + $0x130] sm:$0xff] }
 0x183   :  { %v5381_v22 = vcombine.high %v148_v14, %v152_v16  ;;  %v5380_v28 = vcombine.low %v148_v14, %v152_v16  ;;  %v196_v9 = vld [vmem:[#allocation5 + $0x290] sm:$0xff] }
 0x184   :  { %3994 = vmatpush1.bf16.msra.mxu0 %v5928_v24  ;;  %4199 = vmatpush1.bf16.msra.mxu1 %v5930_v25  ;;  %v160_v24 = vld [vmem:[#allocation5 + $0x170] sm:$0xff]  ;;  %v157_v25 = vld [vmem:[#allocation5 + $0x158] sm:$0xff] }
 0x185   :  { %3995 = vmatprep.subr.bf16.mxu0 %v5937_v53  ;;  %4200 = vmatprep.subr.bf16.mxu1 %v5939_v29  ;;  %v161_v53 = vld [vmem:[#allocation5 + $0x178] sm:$0xff]  ;;  %v5382_v29 = vcombine.low %v149_v17, %v153_v19  ;;  %v5389_v30 = vcombine.high %v156_v23, %v160_v24  ;;  %v5388_v38 = vcombine.low %v156_v23, %v160_v24  ;;  %v200_v10 = vld [vmem:[#allocation5 + $0x2b0] sm:$0xff] }
 0x186   :  { %v5391_v32 = vcombine.high %v157_v25, %v161_v53  ;;  %v5429_v14 = vcombine.high %v196_v9, %v200_v10 }
 0x188   :  { %3996 = vmatpush1.bf16.msra.mxu0 %v5936_v34  ;;  %4201 = vmatpush1.bf16.msra.mxu1 %v5938_v37  ;;  %v164_v34 = vld [vmem:[#allocation5 + $0x190] sm:$0xff]  ;;  %v165_v37 = vld [vmem:[#allocation5 + $0x198] sm:$0xff] }
 0x189   :  { %3997 = vmatprep.subr.bf16.mxu0 %v3791_v7  ;;  %4202 = vmatprep.subr.bf16.mxu1 %v3797_v39  ;;  %v169_v7 = vld [vmem:[#allocation5 + $0x1b8] sm:$0xff]  ;;  %v5390_v39 = vcombine.low %v157_v25, %v161_v53  ;;  %v5397_v40 = vcombine.high %v164_v34, %v168_v36  ;;  %v212_v25 = vld [vmem:[#allocation5 + $0x310] sm:$0xff] }
 0x18a   :  { %v5399_v42 = vcombine.high %v165_v37, %v169_v7  ;;  %v216_v53 = vld [vmem:[#allocation5 + $0x330] sm:$0xff] }
 0x18c   :  { %3998 = vmatpush1.bf16.msra.mxu0 %v3788_v45  ;;  %4203 = vmatpush1.bf16.msra.mxu1 %v3794_v46  ;;  %v173_v45 = vld [vmem:[#allocation5 + $0x1d8] sm:$0xff] }
 0x18d   :  { %4221 = vmatprep.subr.bf16.mxu0 %v5349_v47  ;;  %4426 = vmatprep.subr.bf16.mxu1 %v5351_v48  ;;  %v177_v46 = vld [vmem:[#allocation5 + $0x1f8] sm:$0xff]  ;;  %v5396_v47 = vcombine.low %v164_v34, %v168_v36  ;;  %v5398_v48 = vcombine.low %v165_v37, %v169_v7  ;;  %v5445_v34 = vcombine.high %v212_v25, %v216_v53  ;;  %v220_v37 = vld [vmem:[#allocation5 + $0x350] sm:$0xff] }
 0x18e   :  { %v5407_v51 = vcombine.high %v173_v45, %v177_v46  ;;  %v224_v7 = vld [vmem:[#allocation5 + $0x370] sm:$0xff] }
 0x18f   :  { %4008 = vmatmul.mubr.bf16.vlgmr.msra.gmra.mrb[0].mxu0 %v6584_v52  ;;  %4213 = vmatmul.mubr.bf16.vlgmr.msra.gmra.mrb[0].mxu1 %v6584_v52 }
 0x190   :  { %4222 = vmatpush1.bf16.msra.mxu0 %v5348_v56  ;;  %4427 = vmatpush1.bf16.msra.mxu1 %v5350_v57  ;;  %v181_v56 = vld [vmem:[#allocation5 + $0x218] sm:$0xff] }
 0x191   :  { %4223 = vmatprep.subr.bf16.mxu0 %v5357_v58  ;;  %4428 = vmatprep.subr.bf16.mxu1 %v5359_v59  ;;  %v185_v57 = vld [vmem:[#allocation5 + $0x238] sm:$0xff]  ;;  %v5404_v58 = vcombine.low %v172_v43, %v176_v44  ;;  %v5406_v59 = vcombine.low %v173_v45, %v177_v46  ;;  %v5453_v43 = vcombine.high %v220_v37, %v224_v7  ;;  %v228_v45 = vld [vmem:[#allocation5 + $0x390] sm:$0xff] }
 0x192   :  { %4253 = vmatprep.mubr.bf16.mxu0 %v6514_v61  ;;  %4458 = vmatprep.mubr.bf16.mxu1 %v6514_v61  ;;  %v5383_v61 = vcombine.high %v149_v17, %v153_v19  ;;  %v5415_v63 = vcombine.high %v181_v56, %v185_v57  ;;  %v204_v17 = vld [vmem:[#allocation5 + $0x2d0] sm:$0xff] }
 0x193   :  { %v208_v19 = vld [vmem:[#allocation5 + $0x2f0] sm:$0xff] }
 0x194   :  { %4224 = vmatpush1.bf16.msra.mxu0 %v5356_v18  ;;  %4429 = vmatpush1.bf16.msra.mxu1 %v5358_v2  ;;  %v189_v18 = vld [vmem:[#allocation5 + $0x258] sm:$0xff]  ;;  %v5437_v23 = vcombine.high %v204_v17, %v208_v19  ;;  %v232_v46 = vld [vmem:[#allocation5 + $0x3b0] sm:$0xff] }
 0x195   :  { %4225 = vmatprep.subr.bf16.mxu0 %v5365_v3  ;;  %4430 = vmatprep.subr.bf16.mxu1 %v5367_v4  ;;  %v193_v2 = vld [vmem:[#allocation5 + $0x278] sm:$0xff]  ;;  %v5412_v3 = vcombine.low %v180_v54, %v184_v55  ;;  %v5414_v4 = vcombine.low %v181_v56, %v185_v57  ;;  %v5461_v54 = vcombine.high %v228_v45, %v232_v46  ;;  %v236_v56 = vld [vmem:[#allocation5 + $0x3d0] sm:$0xff] }
 0x196   :  { %v5423_v6 = vcombine.high %v189_v18, %v193_v2  ;;  %v240_v57 = vld [vmem:[#allocation5 + $0x3f0] sm:$0xff] }
 0x198   :  { %4226 = vmatpush1.bf16.msra.mxu0 %v5364_v33  ;;  %4431 = vmatpush1.bf16.msra.mxu1 %v5366_v11  ;;  %v197_v33 = vld [vmem:[#allocation5 + $0x298] sm:$0xff] }
 0x199   :  { %4227 = vmatprep.subr.bf16.mxu0 %v5373_v12  ;;  %4432 = vmatprep.subr.bf16.mxu1 %v5375_v13  ;;  %v201_v11 = vld [vmem:[#allocation5 + $0x2b8] sm:$0xff]  ;;  %v5420_v12 = vcombine.low %v188_v0, %v192_v1  ;;  %v5422_v13 = vcombine.low %v189_v18, %v193_v2  ;;  %v5469_v0 = vcombine.high %v236_v56, %v240_v57  ;;  %v244_v18 = vld [vmem:[#allocation5 + $0x410] sm:$0xff] }
 0x19a   :  { %v5431_v16 = vcombine.high %v197_v33, %v201_v11  ;;  %v248_v2 = vld [vmem:[#allocation5 + $0x430] sm:$0xff] }
 0x19c   :  { %4228 = vmatpush1.bf16.msra.mxu0 %v5372_v20  ;;  %4433 = vmatpush1.bf16.msra.mxu1 %v5374_v21  ;;  %v205_v20 = vld [vmem:[#allocation5 + $0x2d8] sm:$0xff] }
 0x19d   :  { %4229 = vmatprep.subr.bf16.mxu0 %v5381_v22  ;;  %4434 = vmatprep.subr.bf16.mxu1 %v5383_v61  ;;  %v209_v21 = vld [vmem:[#allocation5 + $0x2f8] sm:$0xff]  ;;  %v5428_v22 = vcombine.low %v196_v9, %v200_v10  ;;  %v5430_v61 = vcombine.low %v197_v33, %v201_v11  ;;  %v5477_v9 = vcombine.high %v244_v18, %v248_v2  ;;  %v252_v33 = vld [vmem:[#allocation5 + $0x450] sm:$0xff] }
 0x19e   :  { %v5439_v24 = vcombine.high %v205_v20, %v209_v21  ;;  %v256_v11 = vld [vmem:[#allocation5 + $0x470] sm:$0xff] }
 0x1a0   :  { %4230 = vmatpush1.bf16.msra.mxu0 %v5380_v28  ;;  %4435 = vmatpush1.bf16.msra.mxu1 %v5382_v29  ;;  %v213_v28 = vld [vmem:[#allocation5 + $0x318] sm:$0xff] }
 0x1a1   :  { %4231 = vmatprep.subr.bf16.mxu0 %v5389_v30  ;;  %4436 = vmatprep.subr.bf16.mxu1 %v5391_v32  ;;  %v217_v29 = vld [vmem:[#allocation5 + $0x338] sm:$0xff]  ;;  %v5436_v30 = vcombine.low %v204_v17, %v208_v19  ;;  %v5438_v32 = vcombine.low %v205_v20, %v209_v21  ;;  %v5485_v17 = vcombine.high %v252_v33, %v256_v11  ;;  %v260_v20 = vld [vmem:[#allocation5 + $0x490] sm:$0xff] }
 0x1a2   :  { %v5447_v36 = vcombine.high %v213_v28, %v217_v29  ;;  %v264_v21 = vld [vmem:[#allocation5 + $0x4b0] sm:$0xff] }
 0x1a4   :  { %4232 = vmatpush1.bf16.msra.mxu0 %v5388_v38  ;;  %4437 = vmatpush1.bf16.msra.mxu1 %v5390_v39  ;;  %v221_v38 = vld [vmem:[#allocation5 + $0x358] sm:$0xff] }
 0x1a5   :  { %4233 = vmatprep.subr.bf16.mxu0 %v5397_v40  ;;  %4438 = vmatprep.subr.bf16.mxu1 %v5399_v42  ;;  %v225_v39 = vld [vmem:[#allocation5 + $0x378] sm:$0xff]  ;;  %v5444_v40 = vcombine.low %v212_v25, %v216_v53  ;;  %v5446_v42 = vcombine.low %v213_v28, %v217_v29  ;;  %v5493_v25 = vcombine.high %v260_v20, %v264_v21  ;;  %v268_v28 = vld [vmem:[#allocation5 + $0x4d0] sm:$0xff] }
 0x1a6   :  { %v5455_v44 = vcombine.high %v221_v38, %v225_v39  ;;  %v272_v29 = vld [vmem:[#allocation5 + $0x4f0] sm:$0xff] }
 0x1a8   :  { %4234 = vmatpush1.bf16.msra.mxu0 %v5396_v47  ;;  %4439 = vmatpush1.bf16.msra.mxu1 %v5398_v48  ;;  %v229_v47 = vld [vmem:[#allocation5 + $0x398] sm:$0xff] }
 0x1a9   :  { %4235 = vmatprep.subr.bf16.mxu0 %v5405_v49  ;;  %4440 = vmatprep.subr.bf16.mxu1 %v5407_v51  ;;  %v233_v48 = vld [vmem:[#allocation5 + $0x3b8] sm:$0xff]  ;;  %v5452_v49 = vcombine.low %v220_v37, %v224_v7  ;;  %v5454_v51 = vcombine.low %v221_v38, %v225_v39  ;;  %v276_v7 = vld [vmem:[#allocation5 + $0x510] sm:$0xff] }
 0x1aa   :  { %v5463_v55 = vcombine.high %v229_v47, %v233_v48  ;;  %v280_v38 = vld [vmem:[#allocation5 + $0x530] sm:$0xff]  ;;  %v277_v39 = vld [vmem:[#allocation5 + $0x518] sm:$0xff] }
 0x1ac   :  { %4236 = vmatpush1.bf16.msra.mxu0 %v5404_v58  ;;  %4441 = vmatpush1.bf16.msra.mxu1 %v5406_v59  ;;  %v237_v58 = vld [vmem:[#allocation5 + $0x3d8] sm:$0xff] }
 0x1ad   :  { %4237 = vmatprep.subr.bf16.mxu0 %v5413_v60  ;;  %4442 = vmatprep.subr.bf16.mxu1 %v5415_v63  ;;  %v241_v59 = vld [vmem:[#allocation5 + $0x3f8] sm:$0xff]  ;;  %v5460_v60 = vcombine.low %v228_v45, %v232_v46  ;;  %v5462_v63 = vcombine.low %v229_v47, %v233_v48  ;;  %v284_v45 = vld [vmem:[#allocation5 + $0x550] sm:$0xff] }
 0x1ae   :  { %v5471_v1 = vcombine.high %v237_v58, %v241_v59  ;;  %v288_v46 = vld [vmem:[#allocation5 + $0x570] sm:$0xff]  ;;  %v285_v47 = vld [vmem:[#allocation5 + $0x558] sm:$0xff] }
 0x1af   :  { %v289_v48 = vld [vmem:[#allocation5 + $0x578] sm:$0xff] }
 0x1b0   :  { %4238 = vmatpush1.bf16.msra.mxu0 %v5412_v3  ;;  %4443 = vmatpush1.bf16.msra.mxu1 %v5414_v4  ;;  %v245_v3 = vld [vmem:[#allocation5 + $0x418] sm:$0xff] }
 0x1b1   :  { %4239 = vmatprep.subr.bf16.mxu0 %v5421_v5  ;;  %4444 = vmatprep.subr.bf16.mxu1 %v5423_v6  ;;  %v249_v4 = vld [vmem:[#allocation5 + $0x438] sm:$0xff]  ;;  %v5468_v5 = vcombine.low %v236_v56, %v240_v57  ;;  %v5470_v6 = vcombine.low %v237_v58, %v241_v59  ;;  %v292_v56 = vld [vmem:[#allocation5 + $0x590] sm:$0xff] }
 0x1b2   :  { %v5479_v10 = vcombine.high %v245_v3, %v249_v4  ;;  %v296_v57 = vld [vmem:[#allocation5 + $0x5b0] sm:$0xff]  ;;  %v293_v58 = vld [vmem:[#allocation5 + $0x598] sm:$0xff] }
 0x1b3   :  { %v297_v59 = vld [vmem:[#allocation5 + $0x5b8] sm:$0xff] }
 0x1b4   :  { %4240 = vmatpush1.bf16.msra.mxu0 %v5420_v12  ;;  %4445 = vmatpush1.bf16.msra.mxu1 %v5422_v13  ;;  %v253_v12 = vld [vmem:[#allocation5 + $0x458] sm:$0xff] }
 0x1b5   :  { %4241 = vmatprep.subr.bf16.mxu0 %v5429_v14  ;;  %4446 = vmatprep.subr.bf16.mxu1 %v5431_v16  ;;  %v257_v13 = vld [vmem:[#allocation5 + $0x478] sm:$0xff]  ;;  %v5476_v14 = vcombine.low %v244_v18, %v248_v2  ;;  %v5478_v16 = vcombine.low %v245_v3, %v249_v4  ;;  %v300_v18 = vld [vmem:[#allocation5 + $0x5d0] sm:$0xff] }
 0x1b6   :  { %v5487_v19 = vcombine.high %v253_v12, %v257_v13  ;;  %v304_v2 = vld [vmem:[#allocation5 + $0x5f0] sm:$0xff]  ;;  %v301_v3 = vld [vmem:[#allocation5 + $0x5d8] sm:$0xff] }
 0x1b7   :  { %v305_v4 = vld [vmem:[#allocation5 + $0x5f8] sm:$0xff] }
 0x1b8   :  { %4242 = vmatpush1.bf16.msra.mxu0 %v5428_v22  ;;  %4447 = vmatpush1.bf16.msra.mxu1 %v5430_v61  ;;  %v261_v22 = vld [vmem:[#allocation5 + $0x498] sm:$0xff] }
 0x1b9   :  { %4243 = vmatprep.subr.bf16.mxu0 %v5437_v23  ;;  %4448 = vmatprep.subr.bf16.mxu1 %v5439_v24  ;;  %v265_v61 = vld [vmem:[#allocation5 + $0x4b8] sm:$0xff]  ;;  %v5484_v23 = vcombine.low %v252_v33, %v256_v11  ;;  %v5486_v24 = vcombine.low %v253_v12, %v257_v13  ;;  %v308_v33 = vld [vmem:[#allocation5 + $0x610] sm:$0xff] }
 0x1ba   :  { %v5495_v53 = vcombine.high %v261_v22, %v265_v61  ;;  %v312_v11 = vld [vmem:[#allocation5 + $0x630] sm:$0xff]  ;;  %v309_v12 = vld [vmem:[#allocation5 + $0x618] sm:$0xff] }
 0x1bb   :  { %v313_v13 = vld [vmem:[#allocation5 + $0x638] sm:$0xff] }
 0x1bc   :  { %4244 = vmatpush1.bf16.msra.mxu0 %v5436_v30  ;;  %4449 = vmatpush1.bf16.msra.mxu1 %v5438_v32  ;;  %v269_v30 = vld [vmem:[#allocation5 + $0x4d8] sm:$0xff] }
 0x1bd   :  { %4245 = vmatprep.subr.bf16.mxu0 %v5445_v34  ;;  %4450 = vmatprep.subr.bf16.mxu1 %v5447_v36  ;;  %v273_v32 = vld [vmem:[#allocation5 + $0x4f8] sm:$0xff]  ;;  %v5492_v34 = vcombine.low %v260_v20, %v264_v21  ;;  %v5501_v36 = vcombine.high %v268_v28, %v272_v29  ;;  %v316_v20 = vld [vmem:[#allocation5 + $0x650] sm:$0xff] }
 0x1be   :  { %v5503_v37 = vcombine.high %v269_v30, %v273_v32  ;;  %v320_v21 = vld [vmem:[#allocation5 + $0x670] sm:$0xff] }
 0x1c0   :  { %4246 = vmatpush1.bf16.msra.mxu0 %v5444_v40  ;;  %4451 = vmatpush1.bf16.msra.mxu1 %v5446_v42  ;;  %v281_v40 = vld [vmem:[#allocation5 + $0x538] sm:$0xff]  ;;  %v5500_v42 = vcombine.low %v268_v28, %v272_v29  ;;  %v324_v28 = vld [vmem:[#allocation5 + $0x690] sm:$0xff] }
 0x1c1   :  { %4247 = vmatprep.subr.bf16.mxu0 %v5453_v43  ;;  %4452 = vmatprep.subr.bf16.mxu1 %v5455_v44  ;;  %v5502_v43 = vcombine.low %v269_v30, %v273_v32  ;;  %v5509_v44 = vcombine.high %v276_v7, %v280_v38  ;;  %v328_v29 = vld [vmem:[#allocation5 + $0x6b0] sm:$0xff]  ;;  %v325_v30 = vld [vmem:[#allocation5 + $0x698] sm:$0xff] }
 0x1c2   :  { %v329_v32 = vld [vmem:[#allocation5 + $0x6b8] sm:$0xff] }
 0x1c4   :  { %4248 = vmatpush1.bf16.msra.mxu0 %v5452_v49  ;;  %4453 = vmatpush1.bf16.msra.mxu1 %v5454_v51  ;;  %v5508_v49 = vcombine.low %v276_v7, %v280_v38  ;;  %v5510_v51 = vcombine.low %v277_v39, %v281_v40  ;;  %v332_v7 = vld [vmem:[#allocation5 + $0x6d0] sm:$0xff] }
 0x1c5   :  { %4249 = vmatprep.subr.bf16.mxu0 %v5461_v54  ;;  %4454 = vmatprep.subr.bf16.mxu1 %v5463_v55  ;;  %v5517_v54 = vcombine.high %v284_v45, %v288_v46  ;;  %v5519_v55 = vcombine.high %v285_v47, %v289_v48  ;;  %v336_v38 = vld [vmem:[#allocation5 + $0x6f0] sm:$0xff] }
 0x1c8   :  { %4250 = vmatpush1.bf16.msra.mxu0 %v5460_v60  ;;  %4455 = vmatpush1.bf16.msra.mxu1 %v5462_v63  ;;  %v5516_v60 = vcombine.low %v284_v45, %v288_v46  ;;  %v5518_v63 = vcombine.low %v285_v47, %v289_v48  ;;  %v340_v45 = vld [vmem:[#allocation5 + $0x710] sm:$0xff]  ;;  %v341_v47 = vld [vmem:[#allocation5 + $0x718] sm:$0xff] }
 0x1c9   :  { %4251 = vmatprep.subr.bf16.mxu0 %v5469_v0  ;;  %4456 = vmatprep.subr.bf16.mxu1 %v5471_v1  ;;  %v5525_v0 = vcombine.high %v292_v56, %v296_v57  ;;  %v5527_v1 = vcombine.high %v293_v58, %v297_v59  ;;  %v344_v46 = vld [vmem:[#allocation5 + $0x730] sm:$0xff]  ;;  %v345_v48 = vld [vmem:[#allocation5 + $0x738] sm:$0xff] }
 0x1cc   :  { %4252 = vmatpush1.bf16.msra.mxu0 %v5468_v5  ;;  %4457 = vmatpush1.bf16.msra.mxu1 %v5470_v6  ;;  %v5524_v5 = vcombine.low %v292_v56, %v296_v57  ;;  %v5526_v6 = vcombine.low %v293_v58, %v297_v59  ;;  %v348_v56 = vld [vmem:[#allocation5 + $0x750] sm:$0xff]  ;;  %v349_v58 = vld [vmem:[#allocation5 + $0x758] sm:$0xff] }
 0x1cd   :  { %4262 = vmatprep.subr.bf16.mxu0 %v5477_v9  ;;  %4467 = vmatprep.subr.bf16.mxu1 %v5479_v10  ;;  %v5533_v9 = vcombine.high %v300_v18, %v304_v2  ;;  %v5535_v10 = vcombine.high %v301_v3, %v305_v4  ;;  %v352_v57 = vld [vmem:[#allocation5 + $0x770] sm:$0xff]  ;;  %v353_v59 = vld [vmem:[#allocation5 + $0x778] sm:$0xff] }
 0x1cf   :  { %4254 = vmatmul.mubr.bf16.vlgmr.msra.gmra.mrb[4].mxu0 %v6524_v15  ;;  %4459 = vmatmul.mubr.bf16.vlgmr.msra.gmra.mrb[4].mxu1 %v6524_v15  ;;  %v5494_v15 = vcombine.low %v261_v22, %v265_v61  ;;  %v317_v22 = vld [vmem:[#allocation5 + $0x658] sm:$0xff] }
 0x1d0   :  { %4263 = vmatpush1.bf16.msra.mxu0 %v5476_v14  ;;  %4468 = vmatpush1.bf16.msra.mxu1 %v5478_v16  ;;  %v5532_v14 = vcombine.low %v300_v18, %v304_v2  ;;  %v5534_v16 = vcombine.low %v301_v3, %v305_v4  ;;  %v321_v61 = vld [vmem:[#allocation5 + $0x678] sm:$0xff]  ;;  %v356_v18 = vld [vmem:[#allocation5 + $0x790] sm:$0xff] }
 0x1d1   :  { %4264 = vmatprep.subr.bf16.mxu0 %v5485_v17  ;;  %4469 = vmatprep.subr.bf16.mxu1 %v5487_v19  ;;  %v5541_v17 = vcombine.high %v308_v33, %v312_v11  ;;  %v5543_v19 = vcombine.high %v309_v12, %v313_v13  ;;  %v360_v2 = vld [vmem:[#allocation5 + $0x7b0] sm:$0xff]  ;;  %v357_v3 = vld [vmem:[#allocation5 + $0x798] sm:$0xff] }
 0x1d2   :  { %4294 = vmatprep.mubr.bf16.mxu0 %v6526_v26  ;;  %4499 = vmatprep.mubr.bf16.mxu1 %v6526_v26  ;;  %v5511_v26 = vcombine.high %v277_v39, %v281_v40  ;;  %v333_v39 = vld [vmem:[#allocation5 + $0x6d8] sm:$0xff] }
 0x1d3   :  { %v337_v40 = vld [vmem:[#allocation5 + $0x6f8] sm:$0xff] }
 0x1d4   :  { %4265 = vmatpush1.bf16.msra.mxu0 %v5484_v23  ;;  %4470 = vmatpush1.bf16.msra.mxu1 %v5486_v24  ;;  %v5540_v23 = vcombine.low %v308_v33, %v312_v11  ;;  %v5542_v24 = vcombine.low %v309_v12, %v313_v13  ;;  %v361_v4 = vld [vmem:[#allocation5 + $0x7b8] sm:$0xff]  ;;  %v364_v33 = vld [vmem:[#allocation5 + $0x7d0] sm:$0xff] }
 0x1d5   :  { %4266 = vmatprep.subr.bf16.mxu0 %v5493_v25  ;;  %4471 = vmatprep.subr.bf16.mxu1 %v5495_v53  ;;  %v5549_v25 = vcombine.high %v316_v20, %v320_v21  ;;  %v5551_v53 = vcombine.high %v317_v22, %v321_v61  ;;  %v368_v11 = vld [vmem:[#allocation5 + $0x7f0] sm:$0xff]  ;;  %v365_v12 = vld [vmem:[#allocation5 + $0x7d8] sm:$0xff] }
 0x1d6   :  { %v369_v13 = vld [vmem:[#allocation5 + $0x7f8] sm:$0xff] }
 0x1d8   :  { %4267 = vmatpush1.bf16.msra.mxu0 %v5492_v34  ;;  %4472 = vmatpush1.bf16.msra.mxu1 %v5494_v15  ;;  %v5548_v34 = vcombine.low %v316_v20, %v320_v21  ;;  %v5550_v15 = vcombine.low %v317_v22, %v321_v61  ;;  %v372_v20 = vld [vmem:[#allocation5 + $0x810] sm:$0xff]  ;;  %v373_v22 = vld [vmem:[#allocation5 + $0x818] sm:$0xff] }
 0x1d9   :  { %4268 = vmatprep.subr.bf16.mxu0 %v5501_v36  ;;  %4473 = vmatprep.subr.bf16.mxu1 %v5503_v37  ;;  %v5557_v36 = vcombine.high %v324_v28, %v328_v29  ;;  %v5559_v37 = vcombine.high %v325_v30, %v329_v32  ;;  %v376_v21 = vld [vmem:[#allocation5 + $0x830] sm:$0xff]  ;;  %v377_v61 = vld [vmem:[#allocation5 + $0x838] sm:$0xff] }
 0x1dc   :  { %4269 = vmatpush1.bf16.msra.mxu0 %v5500_v42  ;;  %4474 = vmatpush1.bf16.msra.mxu1 %v5502_v43  ;;  %v5556_v42 = vcombine.low %v324_v28, %v328_v29  ;;  %v5558_v43 = vcombine.low %v325_v30, %v329_v32  ;;  %v380_v28 = vld [vmem:[#allocation5 + $0x850] sm:$0xff]  ;;  %v381_v30 = vld [vmem:[#allocation5 + $0x858] sm:$0xff] }
 0x1dd   :  { %4270 = vmatprep.subr.bf16.mxu0 %v5509_v44  ;;  %4475 = vmatprep.subr.bf16.mxu1 %v5511_v26  ;;  %v5565_v44 = vcombine.high %v332_v7, %v336_v38  ;;  %v5567_v26 = vcombine.high %v333_v39, %v337_v40  ;;  %v384_v29 = vld [vmem:[#allocation5 + $0x870] sm:$0xff]  ;;  %v385_v32 = vld [vmem:[#allocation5 + $0x878] sm:$0xff] }
 0x1e0   :  { %4271 = vmatpush1.bf16.msra.mxu0 %v5508_v49  ;;  %4476 = vmatpush1.bf16.msra.mxu1 %v5510_v51  ;;  %v5564_v49 = vcombine.low %v332_v7, %v336_v38  ;;  %v5566_v51 = vcombine.low %v333_v39, %v337_v40  ;;  %v388_v7 = vld [vmem:[#allocation5 + $0x890] sm:$0xff]  ;;  %v389_v39 = vld [vmem:[#allocation5 + $0x898] sm:$0xff] }
 0x1e1   :  { %4272 = vmatprep.subr.bf16.mxu0 %v5517_v54  ;;  %4477 = vmatprep.subr.bf16.mxu1 %v5519_v55  ;;  %v5573_v54 = vcombine.high %v340_v45, %v344_v46  ;;  %v5575_v55 = vcombine.high %v341_v47, %v345_v48  ;;  %v392_v38 = vld [vmem:[#allocation5 + $0x8b0] sm:$0xff]  ;;  %v393_v40 = vld [vmem:[#allocation5 + $0x8b8] sm:$0xff] }
 0x1e4   :  { %4273 = vmatpush1.bf16.msra.mxu0 %v5516_v60  ;;  %4478 = vmatpush1.bf16.msra.mxu1 %v5518_v63  ;;  %v5572_v60 = vcombine.low %v340_v45, %v344_v46  ;;  %v5574_v63 = vcombine.low %v341_v47, %v345_v48  ;;  %v396_v45 = vld [vmem:[#allocation5 + $0x8d0] sm:$0xff]  ;;  %v397_v47 = vld [vmem:[#allocation5 + $0x8d8] sm:$0xff] }
 0x1e5   :  { %4274 = vmatprep.subr.bf16.mxu0 %v5525_v0  ;;  %4479 = vmatprep.subr.bf16.mxu1 %v5527_v1  ;;  %v5581_v0 = vcombine.high %v348_v56, %v352_v57  ;;  %v5583_v1 = vcombine.high %v349_v58, %v353_v59  ;;  %v400_v46 = vld [vmem:[#allocation5 + $0x8f0] sm:$0xff]  ;;  %v401_v48 = vld [vmem:[#allocation5 + $0x8f8] sm:$0xff] }
 0x1e8   :  { %4275 = vmatpush1.bf16.msra.mxu0 %v5524_v5  ;;  %4480 = vmatpush1.bf16.msra.mxu1 %v5526_v6  ;;  %v5580_v5 = vcombine.low %v348_v56, %v352_v57  ;;  %v5582_v6 = vcombine.low %v349_v58, %v353_v59  ;;  %v408_v56 = vld [vmem:[#allocation5 + $0x930] sm:$0xff]  ;;  %v405_v57 = vld [vmem:[#allocation5 + $0x918] sm:$0xff]  ;;  %v5628_v59 = vcombine.low %v396_v45, %v400_v46 }
 0x1e9   :  { %4276 = vmatprep.subr.bf16.mxu0 %v5533_v9  ;;  %4481 = vmatprep.subr.bf16.mxu1 %v5535_v10  ;;  %v5589_v9 = vcombine.high %v356_v18, %v360_v2  ;;  %v5591_v10 = vcombine.high %v357_v3, %v361_v4  ;;  %v409_v58 = vld [vmem:[#allocation5 + $0x938] sm:$0xff] }
 0x1ec   :  { %4277 = vmatpush1.bf16.msra.mxu0 %v5532_v14  ;;  %4482 = vmatpush1.bf16.msra.mxu1 %v5534_v16  ;;  %v5588_v14 = vcombine.low %v356_v18, %v360_v2  ;;  %v5590_v16 = vcombine.low %v357_v3, %v361_v4  ;;  %v413_v18 = vld [vmem:[#allocation5 + $0x958] sm:$0xff]  ;;  %v5638_v4 = vcombine.low %v405_v57, %v409_v58 }
 0x1ed   :  { %4278 = vmatprep.subr.bf16.mxu0 %v5541_v17  ;;  %4483 = vmatprep.subr.bf16.mxu1 %v5543_v19  ;;  %v5597_v17 = vcombine.high %v364_v33, %v368_v11  ;;  %v5599_v19 = vcombine.high %v365_v12, %v369_v13  ;;  %v417_v2 = vld [vmem:[#allocation5 + $0x978] sm:$0xff] }
 0x1f0   :  { %4279 = vmatpush1.bf16.msra.mxu0 %v5540_v23  ;;  %4484 = vmatpush1.bf16.msra.mxu1 %v5542_v24  ;;  %v5596_v23 = vcombine.low %v364_v33, %v368_v11  ;;  %v5598_v24 = vcombine.low %v365_v12, %v369_v13  ;;  %v421_v33 = vld [vmem:[#allocation5 + $0x998] sm:$0xff]  ;;  %v5646_v13 = vcombine.low %v413_v18, %v417_v2 }
 0x1f1   :  { %4280 = vmatprep.subr.bf16.mxu0 %v5549_v25  ;;  %4485 = vmatprep.subr.bf16.mxu1 %v5551_v53  ;;  %v5605_v25 = vcombine.high %v372_v20, %v376_v21  ;;  %v5607_v53 = vcombine.high %v373_v22, %v377_v61  ;;  %v425_v11 = vld [vmem:[#allocation5 + $0x9b8] sm:$0xff] }
 0x1f4   :  { %4281 = vmatpush1.bf16.msra.mxu0 %v5548_v34  ;;  %4486 = vmatpush1.bf16.msra.mxu1 %v5550_v15  ;;  %v5604_v34 = vcombine.low %v372_v20, %v376_v21  ;;  %v5606_v15 = vcombine.low %v373_v22, %v377_v61  ;;  %v429_v20 = vld [vmem:[#allocation5 + $0x9d8] sm:$0xff]  ;;  %v5654_v61 = vcombine.low %v421_v33, %v425_v11 }
 0x1f5   :  { %4282 = vmatprep.subr.bf16.mxu0 %v5557_v36  ;;  %4487 = vmatprep.subr.bf16.mxu1 %v5559_v37  ;;  %v5613_v36 = vcombine.high %v380_v28, %v384_v29  ;;  %v5615_v37 = vcombine.high %v381_v30, %v385_v32  ;;  %v433_v21 = vld [vmem:[#allocation5 + $0x9f8] sm:$0xff] }
 0x1f8   :  { %4283 = vmatpush1.bf16.msra.mxu0 %v5556_v42  ;;  %4488 = vmatpush1.bf16.msra.mxu1 %v5558_v43  ;;  %v5612_v42 = vcombine.low %v380_v28, %v384_v29  ;;  %v5614_v43 = vcombine.low %v381_v30, %v385_v32  ;;  %v437_v28 = vld [vmem:[#allocation5 + $0xa18] sm:$0xff]  ;;  %v5662_v32 = vcombine.low %v429_v20, %v433_v21 }
 0x1f9   :  { %4284 = vmatprep.subr.bf16.mxu0 %v5565_v44  ;;  %4489 = vmatprep.subr.bf16.mxu1 %v5567_v26  ;;  %v5621_v44 = vcombine.high %v388_v7, %v392_v38  ;;  %v5623_v26 = vcombine.high %v389_v39, %v393_v40  ;;  %v441_v29 = vld [vmem:[#allocation5 + $0xa38] sm:$0xff] }
 0x1fc   :  { %4285 = vmatpush1.bf16.msra.mxu0 %v5564_v49  ;;  %4490 = vmatpush1.bf16.msra.mxu1 %v5566_v51  ;;  %v5620_v49 = vcombine.low %v388_v7, %v392_v38  ;;  %v5629_v51 = vcombine.high %v396_v45, %v400_v46  ;;  %v445_v7 = vld [vmem:[#allocation5 + $0xa58] sm:$0xff] }
 0x1fd   :  { %4286 = vmatprep.subr.bf16.mxu0 %v5573_v54  ;;  %4491 = vmatprep.subr.bf16.mxu1 %v5575_v55  ;;  %v5631_v54 = vcombine.high %v397_v47, %v401_v48  ;;  %v404_v55 = vld [vmem:[#allocation5 + $0x910] sm:$0xff]  ;;  %v449_v38 = vld [vmem:[#allocation5 + $0xa78] sm:$0xff] }
 0x1fe   :  { %v5636_v3 = vcombine.low %v404_v55, %v408_v56  ;;  %v453_v45 = vld [vmem:[#allocation5 + $0xa98] sm:$0xff] }
 0x1ff   :  { %v457_v46 = vld [vmem:[#allocation5 + $0xab8] sm:$0xff] }
 0x200   :  { %4287 = vmatpush1.bf16.msra.mxu0 %v5572_v60  ;;  %4492 = vmatpush1.bf16.msra.mxu1 %v5574_v63  ;;  %v5630_v60 = vcombine.low %v397_v47, %v401_v48  ;;  %v5637_v63 = vcombine.high %v404_v55, %v408_v56  ;;  %v5678_v48 = vcombine.low %v445_v7, %v449_v38  ;;  %v461_v55 = vld [vmem:[#allocation5 + $0xad8] sm:$0xff] }
 0x201   :  { %4288 = vmatprep.subr.bf16.mxu0 %v5581_v0  ;;  %4493 = vmatprep.subr.bf16.mxu1 %v5583_v1  ;;  %v412_v0 = vld [vmem:[#allocation5 + $0x950] sm:$0xff]  ;;  %v465_v56 = vld [vmem:[#allocation5 + $0xaf8] sm:$0xff] }
 0x202   :  { %v416_v1 = vld [vmem:[#allocation5 + $0x970] sm:$0xff] }
 0x203   :  { %v5644_v12 = vcombine.low %v412_v0, %v416_v1 }
 0x204   :  { %4289 = vmatpush1.bf16.msra.mxu0 %v5580_v5  ;;  %4494 = vmatpush1.bf16.msra.mxu1 %v5582_v6  ;;  %v5645_v5 = vcombine.high %v412_v0, %v416_v1  ;;  %v5647_v6 = vcombine.high %v413_v18, %v417_v2  ;;  %v469_v0 = vld [vmem:[#allocation5 + $0xb18] sm:$0xff]  ;;  %v5694_v2 = vcombine.low %v461_v55, %v465_v56 }
 0x205   :  { %4290 = vmatprep.subr.bf16.mxu0 %v5589_v9  ;;  %4495 = vmatprep.subr.bf16.mxu1 %v5591_v10  ;;  %v420_v9 = vld [vmem:[#allocation5 + $0x990] sm:$0xff]  ;;  %v473_v1 = vld [vmem:[#allocation5 + $0xb38] sm:$0xff] }
 0x206   :  { %v424_v10 = vld [vmem:[#allocation5 + $0x9b0] sm:$0xff] }
 0x207   :  { %v5652_v22 = vcombine.low %v420_v9, %v424_v10 }
 0x208   :  { %4291 = vmatpush1.bf16.msra.mxu0 %v5588_v14  ;;  %4496 = vmatpush1.bf16.msra.mxu1 %v5590_v16  ;;  %v5653_v14 = vcombine.high %v420_v9, %v424_v10  ;;  %v5655_v16 = vcombine.high %v421_v33, %v425_v11  ;;  %v477_v9 = vld [vmem:[#allocation5 + $0xb58] sm:$0xff]  ;;  %v5702_v11 = vcombine.low %v469_v0, %v473_v1 }
 0x209   :  { %4292 = vmatprep.subr.bf16.mxu0 %v5597_v17  ;;  %4497 = vmatprep.subr.bf16.mxu1 %v5599_v19  ;;  %v428_v17 = vld [vmem:[#allocation5 + $0x9d0] sm:$0xff]  ;;  %v481_v10 = vld [vmem:[#allocation5 + $0xb78] sm:$0xff] }
 0x20a   :  { %v432_v19 = vld [vmem:[#allocation5 + $0x9f0] sm:$0xff] }
 0x20b   :  { %v5660_v30 = vcombine.low %v428_v17, %v432_v19 }
 0x20c   :  { %4293 = vmatpush1.bf16.msra.mxu0 %v5596_v23  ;;  %4498 = vmatpush1.bf16.msra.mxu1 %v5598_v24  ;;  %v5661_v23 = vcombine.high %v428_v17, %v432_v19  ;;  %v5663_v24 = vcombine.high %v429_v20, %v433_v21  ;;  %v485_v17 = vld [vmem:[#allocation5 + $0xb98] sm:$0xff]  ;;  %v5710_v21 = vcombine.low %v477_v9, %v481_v10 }
 0x20d   :  { %4303 = vmatprep.subr.bf16.mxu0 %v5605_v25  ;;  %4508 = vmatprep.subr.bf16.mxu1 %v5607_v53  ;;  %v436_v25 = vld [vmem:[#allocation5 + $0xa10] sm:$0xff]  ;;  %v489_v19 = vld [vmem:[#allocation5 + $0xbb8] sm:$0xff] }
 0x20e   :  { %v440_v53 = vld [vmem:[#allocation5 + $0xa30] sm:$0xff] }
 0x20f   :  { %4295 = vmatmul.mubr.bf16.vlgmr.msra.gmra.mrb[4].mxu0 %v6538_v27  ;;  %4500 = vmatmul.mubr.bf16.vlgmr.msra.gmra.mrb[4].mxu1 %v6538_v27  ;;  %v5622_v27 = vcombine.low %v389_v39, %v393_v40  ;;  %v5668_v39 = vcombine.low %v436_v25, %v440_v53  ;;  %v5670_v40 = vcombine.low %v437_v28, %v441_v29 }
 0x210   :  { %4304 = vmatpush1.bf16.msra.mxu0 %v5604_v34  ;;  %4509 = vmatpush1.bf16.msra.mxu1 %v5606_v15  ;;  %v5669_v34 = vcombine.high %v436_v25, %v440_v53  ;;  %v5671_v15 = vcombine.high %v437_v28, %v441_v29  ;;  %v493_v25 = vld [vmem:[#allocation5 + $0xbd8] sm:$0xff]  ;;  %v5718_v29 = vcombine.low %v485_v17, %v489_v19 }
 0x211   :  { %4305 = vmatprep.subr.bf16.mxu0 %v5613_v36  ;;  %4510 = vmatprep.subr.bf16.mxu1 %v5615_v37  ;;  %v444_v36 = vld [vmem:[#allocation5 + $0xa50] sm:$0xff]  ;;  %v497_v53 = vld [vmem:[#allocation5 + $0xbf8] sm:$0xff] }
 0x212   :  { %4335 = vmatprep.mubr.bf16.mxu0 %v6540_v35  ;;  %4540 = vmatprep.mubr.bf16.mxu1 %v6540_v35  ;;  %v5639_v35 = vcombine.high %v405_v57, %v409_v58  ;;  %v448_v37 = vld [vmem:[#allocation5 + $0xa70] sm:$0xff]  ;;  %v5686_v58 = vcombine.low %v453_v45, %v457_v46 }
 0x213   :  { %v5676_v47 = vcombine.low %v444_v36, %v448_v37 }
 0x214   :  { %4306 = vmatpush1.bf16.msra.mxu0 %v5612_v42  ;;  %4511 = vmatpush1.bf16.msra.mxu1 %v5614_v43  ;;  %v5677_v42 = vcombine.high %v444_v36, %v448_v37  ;;  %v5679_v43 = vcombine.high %v445_v7, %v449_v38  ;;  %v501_v36 = vld [vmem:[#allocation5 + $0xc18] sm:$0xff]  ;;  %v5726_v38 = vcombine.low %v493_v25, %v497_v53 }
 0x215   :  { %4307 = vmatprep.subr.bf16.mxu0 %v5621_v44  ;;  %4512 = vmatprep.subr.bf16.mxu1 %v5623_v26  ;;  %v452_v44 = vld [vmem:[#allocation5 + $0xa90] sm:$0xff]  ;;  %v505_v37 = vld [vmem:[#allocation5 + $0xc38] sm:$0xff] }
 0x216   :  { %v456_v26 = vld [vmem:[#allocation5 + $0xab0] sm:$0xff] }
 0x217   :  { %v5684_v57 = vcombine.low %v452_v44, %v456_v26 }
 0x218   :  { %4308 = vmatpush1.bf16.msra.mxu0 %v5620_v49  ;;  %4513 = vmatpush1.bf16.msra.mxu1 %v5622_v27  ;;  %v5685_v49 = vcombine.high %v452_v44, %v456_v26  ;;  %v5687_v27 = vcombine.high %v453_v45, %v457_v46  ;;  %v509_v44 = vld [vmem:[#allocation5 + $0xc58] sm:$0xff]  ;;  %v5734_v46 = vcombine.low %v501_v36, %v505_v37 }
 0x219   :  { %4309 = vmatprep.subr.bf16.mxu0 %v5629_v51  ;;  %4514 = vmatprep.subr.bf16.mxu1 %v5631_v54  ;;  %v460_v51 = vld [vmem:[#allocation5 + $0xad0] sm:$0xff]  ;;  %v513_v26 = vld [vmem:[#allocation5 + $0xc78] sm:$0xff] }
 0x21a   :  { %v464_v54 = vld [vmem:[#allocation5 + $0xaf0] sm:$0xff] }
 0x21b   :  { %v5692_v18 = vcombine.low %v460_v51, %v464_v54 }
 0x21c   :  { %4310 = vmatpush1.bf16.msra.mxu0 %v5628_v59  ;;  %4515 = vmatpush1.bf16.msra.mxu1 %v5630_v60  ;;  %v5693_v59 = vcombine.high %v460_v51, %v464_v54  ;;  %v5695_v60 = vcombine.high %v461_v55, %v465_v56  ;;  %v517_v51 = vld [vmem:[#allocation5 + $0xc98] sm:$0xff]  ;;  %v5742_v56 = vcombine.low %v509_v44, %v513_v26 }
 0x21d   :  { %4311 = vmatprep.subr.bf16.mxu0 %v5637_v63  ;;  %4516 = vmatprep.subr.bf16.mxu1 %v5639_v35  ;;  %v468_v63 = vld [vmem:[#allocation5 + $0xb10] sm:$0xff]  ;;  %v521_v54 = vld [vmem:[#allocation5 + $0xcb8] sm:$0xff] }
 0x21e   :  { %v472_v35 = vld [vmem:[#allocation5 + $0xb30] sm:$0xff] }
 0x21f   :  { %v5700_v33 = vcombine.low %v468_v63, %v472_v35 }
 0x220   :  { %4312 = vmatpush1.bf16.msra.mxu0 %v5636_v3  ;;  %4517 = vmatpush1.bf16.msra.mxu1 %v5638_v4  ;;  %v5701_v3 = vcombine.high %v468_v63, %v472_v35  ;;  %v5703_v4 = vcombine.high %v469_v0, %v473_v1  ;;  %v525_v63 = vld [vmem:[#allocation5 + $0xcd8] sm:$0xff] }
 0x221   :  { %4313 = vmatprep.subr.bf16.mxu0 %v5645_v5  ;;  %4518 = vmatprep.subr.bf16.mxu1 %v5647_v6  ;;  %v476_v5 = vld [vmem:[#allocation5 + $0xb50] sm:$0xff]  ;;  %v529_v35 = vld [vmem:[#allocation5 + $0xcf8] sm:$0xff] }
 0x222   :  { %v480_v6 = vld [vmem:[#allocation5 + $0xb70] sm:$0xff] }
 0x223   :  { %v5708_v20 = vcombine.low %v476_v5, %v480_v6 }
 0x224   :  { %4314 = vmatpush1.bf16.msra.mxu0 %v5644_v12  ;;  %4519 = vmatpush1.bf16.msra.mxu1 %v5646_v13  ;;  %v5709_v12 = vcombine.high %v476_v5, %v480_v6  ;;  %v5711_v13 = vcombine.high %v477_v9, %v481_v10  ;;  %v537_v5 = vld [vmem:[#allocation5 + $0xd38] sm:$0xff]  ;;  %v5758_v9 = vcombine.low %v525_v63, %v529_v35 }
 0x225   :  { %4315 = vmatprep.subr.bf16.mxu0 %v5653_v14  ;;  %4520 = vmatprep.subr.bf16.mxu1 %v5655_v16  ;;  %v484_v14 = vld [vmem:[#allocation5 + $0xb90] sm:$0xff] }
 0x226   :  { %v488_v16 = vld [vmem:[#allocation5 + $0xbb0] sm:$0xff] }
 0x227   :  { %v5716_v28 = vcombine.low %v484_v14, %v488_v16 }
 0x228   :  { %4316 = vmatpush1.bf16.msra.mxu0 %v5652_v22  ;;  %4521 = vmatpush1.bf16.msra.mxu1 %v5654_v61  ;;  %v5717_v22 = vcombine.high %v484_v14, %v488_v16  ;;  %v5719_v61 = vcombine.high %v485_v17, %v489_v19 }
 0x229   :  { %4317 = vmatprep.subr.bf16.mxu0 %v5661_v23  ;;  %4522 = vmatprep.subr.bf16.mxu1 %v5663_v24  ;;  %v492_v23 = vld [vmem:[#allocation5 + $0xbd0] sm:$0xff] }
 0x22a   :  { %v496_v24 = vld [vmem:[#allocation5 + $0xbf0] sm:$0xff] }
 0x22b   :  { %v5724_v7 = vcombine.low %v492_v23, %v496_v24 }
 0x22c   :  { %4318 = vmatpush1.bf16.msra.mxu0 %v5660_v30  ;;  %4523 = vmatpush1.bf16.msra.mxu1 %v5662_v32  ;;  %v5725_v30 = vcombine.high %v492_v23, %v496_v24  ;;  %v5727_v32 = vcombine.high %v493_v25, %v497_v53 }
 0x22d   :  { %4319 = vmatprep.subr.bf16.mxu0 %v5669_v34  ;;  %4524 = vmatprep.subr.bf16.mxu1 %v5671_v15  ;;  %v500_v34 = vld [vmem:[#allocation5 + $0xc10] sm:$0xff] }
 0x22e   :  { %v504_v15 = vld [vmem:[#allocation5 + $0xc30] sm:$0xff] }
 0x22f   :  { %v5732_v45 = vcombine.low %v500_v34, %v504_v15 }
 0x230   :  { %4320 = vmatpush1.bf16.msra.mxu0 %v5668_v39  ;;  %4525 = vmatpush1.bf16.msra.mxu1 %v5670_v40  ;;  %v5733_v39 = vcombine.high %v500_v34, %v504_v15  ;;  %v5735_v40 = vcombine.high %v501_v36, %v505_v37  ;;  %v557_v15 = vld [vmem:[#allocation5 + $0xdd8] sm:$0xff] }
 0x231   :  { %4321 = vmatprep.subr.bf16.mxu0 %v5677_v42  ;;  %4526 = vmatprep.subr.bf16.mxu1 %v5679_v43  ;;  %v508_v42 = vld [vmem:[#allocation5 + $0xc50] sm:$0xff]  ;;  %v561_v36 = vld [vmem:[#allocation5 + $0xdf8] sm:$0xff] }
 0x232   :  { %v512_v43 = vld [vmem:[#allocation5 + $0xc70] sm:$0xff] }
 0x233   :  { %v5740_v55 = vcombine.low %v508_v42, %v512_v43 }
 0x234   :  { %4322 = vmatpush1.bf16.msra.mxu0 %v5676_v47  ;;  %4527 = vmatpush1.bf16.msra.mxu1 %v5678_v48  ;;  %v5741_v47 = vcombine.high %v508_v42, %v512_v43  ;;  %v5743_v48 = vcombine.high %v509_v44, %v513_v26  ;;  %v5791_v26 = vcombine.high %v557_v15, %v561_v36 }
 0x235   :  { %4323 = vmatprep.subr.bf16.mxu0 %v5685_v49  ;;  %4528 = vmatprep.subr.bf16.mxu1 %v5687_v27  ;;  %v516_v49 = vld [vmem:[#allocation5 + $0xc90] sm:$0xff] }
 0x236   :  { %v520_v27 = vld [vmem:[#allocation5 + $0xcb0] sm:$0xff] }
 0x237   :  { %v5748_v0 = vcombine.low %v516_v49, %v520_v27 }
 0x238   :  { %4324 = vmatpush1.bf16.msra.mxu0 %v5684_v57  ;;  %4529 = vmatpush1.bf16.msra.mxu1 %v5686_v58  ;;  %v5749_v57 = vcombine.high %v516_v49, %v520_v27  ;;  %v5751_v58 = vcombine.high %v517_v51, %v521_v54  ;;  %v5790_v27 = vcombine.low %v557_v15, %v561_v36 }
 0x239   :  { %4325 = vmatprep.subr.bf16.mxu0 %v5693_v59  ;;  %4530 = vmatprep.subr.bf16.mxu1 %v5695_v60  ;;  %v524_v59 = vld [vmem:[#allocation5 + $0xcd0] sm:$0xff] }
 0x23a   :  { %v528_v60 = vld [vmem:[#allocation5 + $0xcf0] sm:$0xff] }
 0x23b   :  { %v5757_v1 = vcombine.high %v524_v59, %v528_v60  ;;  %v5756_v6 = vcombine.low %v524_v59, %v528_v60 }
 0x23c   :  { %4326 = vmatpush1.bf16.msra.mxu0 %v5692_v18  ;;  %4531 = vmatpush1.bf16.msra.mxu1 %v5694_v2  ;;  %v5759_v18 = vcombine.high %v525_v63, %v529_v35  ;;  %v532_v2 = vld [vmem:[#allocation5 + $0xd10] sm:$0xff] }
 0x23d   :  { %4327 = vmatprep.subr.bf16.mxu0 %v5701_v3  ;;  %4532 = vmatprep.subr.bf16.mxu1 %v5703_v4  ;;  %v536_v3 = vld [vmem:[#allocation5 + $0xd30] sm:$0xff]  ;;  %v533_v4 = vld [vmem:[#allocation5 + $0xd18] sm:$0xff] }
 0x23e   :  { %v5765_v10 = vcombine.high %v532_v2, %v536_v3  ;;  %v5764_v14 = vcombine.low %v532_v2, %v536_v3  ;;  %v5766_v16 = vcombine.low %v533_v4, %v537_v5 }
 0x240   :  { %4328 = vmatpush1.bf16.msra.mxu0 %v5700_v33  ;;  %4533 = vmatpush1.bf16.msra.mxu1 %v5702_v11  ;;  %v540_v33 = vld [vmem:[#allocation5 + $0xd50] sm:$0xff] }
 0x241   :  { %4329 = vmatprep.subr.bf16.mxu0 %v5709_v12  ;;  %4534 = vmatprep.subr.bf16.mxu1 %v5711_v13  ;;  %v544_v11 = vld [vmem:[#allocation5 + $0xd70] sm:$0xff]  ;;  %v541_v12 = vld [vmem:[#allocation5 + $0xd58] sm:$0xff] }
 0x242   :  { %v545_v13 = vld [vmem:[#allocation5 + $0xd78] sm:$0xff]  ;;  %v5773_v17 = vcombine.high %v540_v33, %v544_v11  ;;  %v5772_v23 = vcombine.low %v540_v33, %v544_v11 }
 0x243   :  { %v5775_v19 = vcombine.high %v541_v12, %v545_v13  ;;  %v5774_v24 = vcombine.low %v541_v12, %v545_v13 }
 0x244   :  { %4330 = vmatpush1.bf16.msra.mxu0 %v5708_v20  ;;  %4535 = vmatpush1.bf16.msra.mxu1 %v5710_v21  ;;  %v548_v20 = vld [vmem:[#allocation5 + $0xd90] sm:$0xff] }
 0x245   :  { %4331 = vmatprep.subr.bf16.mxu0 %v5717_v22  ;;  %4536 = vmatprep.subr.bf16.mxu1 %v5719_v61  ;;  %v552_v21 = vld [vmem:[#allocation5 + $0xdb0] sm:$0xff]  ;;  %v549_v22 = vld [vmem:[#allocation5 + $0xd98] sm:$0xff] }
 0x246   :  { %v553_v61 = vld [vmem:[#allocation5 + $0xdb8] sm:$0xff]  ;;  %v5781_v25 = vcombine.high %v548_v20, %v552_v21 }
 0x247   :  { %v5782_v42 = vcombine.low %v549_v22, %v553_v61 }
 0x248   :  { %4332 = vmatpush1.bf16.msra.mxu0 %v5716_v28  ;;  %4537 = vmatpush1.bf16.msra.mxu1 %v5718_v29  ;;  %v5783_v28 = vcombine.high %v549_v22, %v553_v61  ;;  %v556_v29 = vld [vmem:[#allocation5 + $0xdd0] sm:$0xff] }
 0x249   :  { %4333 = vmatprep.subr.bf16.mxu0 %v5725_v30  ;;  %4538 = vmatprep.subr.bf16.mxu1 %v5727_v32  ;;  %v560_v30 = vld [vmem:[#allocation5 + $0xdf0] sm:$0xff] }
 0x24a   :  { %v5789_v43 = vcombine.high %v556_v29, %v560_v30  ;;  %v5788_v49 = vcombine.low %v556_v29, %v560_v30 }
 0x24c   :  { %4334 = vmatpush1.bf16.msra.mxu0 %v5724_v7  ;;  %4539 = vmatpush1.bf16.msra.mxu1 %v5726_v38  ;;  %v5780_v38 = vcombine.low %v548_v20, %v552_v21 }
 0x24d   :  { %4344 = vmatprep.subr.bf16.mxu0 %v5733_v39  ;;  %4549 = vmatprep.subr.bf16.mxu1 %v5735_v40 }
 0x24f   :  { %4336 = vmatmul.mubr.bf16.vlgmr.msra.gmra.mrb[4].mxu0 %v6552_v41  ;;  %4541 = vmatmul.mubr.bf16.vlgmr.msra.gmra.mrb[4].mxu1 %v6552_v41  ;;  %v5750_v41 = vcombine.low %v517_v51, %v521_v54 }
 0x250   :  { %4345 = vmatpush1.bf16.msra.mxu0 %v5732_v45  ;;  %4550 = vmatpush1.bf16.msra.mxu1 %v5734_v46  ;;  %v564_v45 = vld [vmem:[#allocation5 + $0xe10] sm:$0xff] }
 0x251   :  { %4346 = vmatprep.subr.bf16.mxu0 %v5741_v47  ;;  %4551 = vmatprep.subr.bf16.mxu1 %v5743_v48  ;;  %v568_v46 = vld [vmem:[#allocation5 + $0xe30] sm:$0xff]  ;;  %v565_v47 = vld [vmem:[#allocation5 + $0xe18] sm:$0xff] }
 0x252   :  { %4376 = vmatprep.mubr.bf16.mxu0 %v6554_v50  ;;  %4581 = vmatprep.mubr.bf16.mxu1 %v6554_v50  ;;  %v5767_v50 = vcombine.high %v533_v4, %v537_v5  ;;  %v569_v48 = vld [vmem:[#allocation5 + $0xe38] sm:$0xff]  ;;  %v5797_v51 = vcombine.high %v564_v45, %v568_v46  ;;  %v5796_v59 = vcombine.low %v564_v45, %v568_v46  ;;  %v620_v45 = vld [vmem:[#allocation5 + $0xfd0] sm:$0xff] }
 0x253   :  { %v5799_v54 = vcombine.high %v565_v47, %v569_v48  ;;  %v5798_v60 = vcombine.low %v565_v47, %v569_v48  ;;  %v624_v46 = vld [vmem:[#allocation5 + $0xff0] sm:$0xff]  ;;  %v621_v47 = vld [vmem:[#allocation5 + $0xfd8] sm:$0xff] }
 0x254   :  { %4347 = vmatpush1.bf16.msra.mxu0 %v5740_v55  ;;  %4552 = vmatpush1.bf16.msra.mxu1 %v5742_v56  ;;  %v572_v55 = vld [vmem:[#allocation5 + $0xe50] sm:$0xff]  ;;  %v625_v48 = vld [vmem:[#allocation5 + $0xff8] sm:$0xff] }
 0x255   :  { %4348 = vmatprep.subr.bf16.mxu0 %v5749_v57  ;;  %4553 = vmatprep.subr.bf16.mxu1 %v5751_v58  ;;  %v576_v56 = vld [vmem:[#allocation5 + $0xe70] sm:$0xff]  ;;  %v573_v57 = vld [vmem:[#allocation5 + $0xe58] sm:$0xff] }
 0x256   :  { %v577_v58 = vld [vmem:[#allocation5 + $0xe78] sm:$0xff]  ;;  %v5805_v63 = vcombine.high %v572_v55, %v576_v56  ;;  %v5804_v2 = vcombine.low %v572_v55, %v576_v56  ;;  %v628_v55 = vld [vmem:[#allocation5 + $0x1010] sm:$0xff] }
 0x257   :  { %v5807_v35 = vcombine.high %v573_v57, %v577_v58  ;;  %v5806_v3 = vcombine.low %v573_v57, %v577_v58  ;;  %v632_v56 = vld [vmem:[#allocation5 + $0x1030] sm:$0xff]  ;;  %v629_v57 = vld [vmem:[#allocation5 + $0x1018] sm:$0xff] }
 0x258   :  { %4349 = vmatpush1.bf16.msra.mxu0 %v5748_v0  ;;  %4554 = vmatpush1.bf16.msra.mxu1 %v5750_v41  ;;  %v580_v0 = vld [vmem:[#allocation5 + $0xe90] sm:$0xff]  ;;  %v633_v58 = vld [vmem:[#allocation5 + $0x1038] sm:$0xff] }
 0x259   :  { %4350 = vmatprep.subr.bf16.mxu0 %v5757_v1  ;;  %4555 = vmatprep.subr.bf16.mxu1 %v5759_v18  ;;  %v584_v41 = vld [vmem:[#allocation5 + $0xeb0] sm:$0xff]  ;;  %v581_v1 = vld [vmem:[#allocation5 + $0xe98] sm:$0xff] }
 0x25a   :  { %v585_v18 = vld [vmem:[#allocation5 + $0xeb8] sm:$0xff]  ;;  %v5813_v4 = vcombine.high %v580_v0, %v584_v41  ;;  %v5812_v33 = vcombine.low %v580_v0, %v584_v41  ;;  %v636_v0 = vld [vmem:[#allocation5 + $0x1050] sm:$0xff] }
 0x25b   :  { %v5815_v5 = vcombine.high %v581_v1, %v585_v18  ;;  %v5814_v11 = vcombine.low %v581_v1, %v585_v18  ;;  %v640_v41 = vld [vmem:[#allocation5 + $0x1070] sm:$0xff]  ;;  %v637_v1 = vld [vmem:[#allocation5 + $0x1058] sm:$0xff] }
 0x25c   :  { %4351 = vmatpush1.bf16.msra.mxu0 %v5756_v6  ;;  %4556 = vmatpush1.bf16.msra.mxu1 %v5758_v9  ;;  %v588_v6 = vld [vmem:[#allocation5 + $0xed0] sm:$0xff]  ;;  %v641_v18 = vld [vmem:[#allocation5 + $0x1078] sm:$0xff] }
 0x25d   :  { %4352 = vmatprep.subr.bf16.mxu0 %v5765_v10  ;;  %4557 = vmatprep.subr.bf16.mxu1 %v5767_v50  ;;  %v592_v9 = vld [vmem:[#allocation5 + $0xef0] sm:$0xff]  ;;  %v589_v10 = vld [vmem:[#allocation5 + $0xed8] sm:$0xff] }
 0x25e   :  { %v593_v50 = vld [vmem:[#allocation5 + $0xef8] sm:$0xff]  ;;  %v5821_v12 = vcombine.high %v588_v6, %v592_v9  ;;  %v5820_v20 = vcombine.low %v588_v6, %v592_v9  ;;  %v644_v6 = vld [vmem:[#allocation5 + $0x1090] sm:$0xff] }
 0x25f   :  { %v5823_v13 = vcombine.high %v589_v10, %v593_v50  ;;  %v5822_v21 = vcombine.low %v589_v10, %v593_v50  ;;  %v648_v9 = vld [vmem:[#allocation5 + $0x10b0] sm:$0xff]  ;;  %v645_v10 = vld [vmem:[#allocation5 + $0x1098] sm:$0xff] }
 0x260   :  { %4353 = vmatpush1.bf16.msra.mxu0 %v5764_v14  ;;  %4558 = vmatpush1.bf16.msra.mxu1 %v5766_v16  ;;  %v596_v14 = vld [vmem:[#allocation5 + $0xf10] sm:$0xff]  ;;  %v649_v50 = vld [vmem:[#allocation5 + $0x10b8] sm:$0xff] }
 0x261   :  { %4354 = vmatprep.subr.bf16.mxu0 %v5773_v17  ;;  %4559 = vmatprep.subr.bf16.mxu1 %v5775_v19  ;;  %v600_v16 = vld [vmem:[#allocation5 + $0xf30] sm:$0xff]  ;;  %v597_v17 = vld [vmem:[#allocation5 + $0xf18] sm:$0xff] }
 0x262   :  { %v6602_v53 = vpop.f32.mrb[0].mxu0  ;;  %v6604_v32 = vpop.f32.mrb[0].mxu1  ;;  %v601_v19 = vld [vmem:[#allocation5 + $0xf38] sm:$0xff]  ;;  %v5829_v22 = vcombine.high %v596_v14, %v600_v16  ;;  %v5828_v29 = vcombine.low %v596_v14, %v600_v16  ;;  %v652_v14 = vld [vmem:[#allocation5 + $0x10d0] sm:$0xff] }
 0x263   :  { %v6606_v34 = vpop.f32.mrb[1].mxu0  ;;  %v6608_v37 = vpop.f32.mrb[1].mxu1  ;;  %v5831_v61 = vcombine.high %v597_v17, %v601_v19  ;;  %v5830_v30 = vcombine.low %v597_v17, %v601_v19  ;;  %v656_v16 = vld [vmem:[#allocation5 + $0x10f0] sm:$0xff]  ;;  %v653_v17 = vld [vmem:[#allocation5 + $0x10d8] sm:$0xff] }
 0x264   :  { %v4013_v7 = vpop.f32.mrb[2].mxu0  ;;  %4355 = vmatpush1.bf16.msra.mxu0 %v5772_v23  ;;  %v4218_v39 = vpop.f32.mrb[2].mxu1  ;;  %4560 = vmatpush1.bf16.msra.mxu1 %v5774_v24  ;;  %v604_v23 = vld [vmem:[#allocation5 + $0xf50] sm:$0xff]  ;;  %v657_v19 = vld [vmem:[#allocation5 + $0x10f8] sm:$0xff] }
 0x265   :  { %v4014_v40 = vpop.f32.mrb[3].mxu0  ;;  %4356 = vmatprep.subr.bf16.mxu0 %v5781_v25  ;;  %v4219_v44 = vpop.f32.mrb[3].mxu1  ;;  %4561 = vmatprep.subr.bf16.mxu1 %v5783_v28  ;;  %v608_v24 = vld [vmem:[#allocation5 + $0xf70] sm:$0xff]  ;;  %v605_v25 = vld [vmem:[#allocation5 + $0xf58] sm:$0xff] }
 0x266   :  { %v609_v28 = vld [vmem:[#allocation5 + $0xf78] sm:$0xff]  ;;  %v5837_v15 = vcombine.high %v604_v23, %v608_v24  ;;  %v612_v7 = vld [vmem:[#allocation5 + $0xf90] sm:$0xff] }
 0x267   :  { %v5839_v36 = vcombine.high %v605_v25, %v609_v28  ;;  %v613_v39 = vld [vmem:[#allocation5 + $0xf98] sm:$0xff] }
 0x268   :  { %4357 = vmatpush1.bf16.msra.mxu0 %v5780_v38  ;;  %4562 = vmatpush1.bf16.msra.mxu1 %v5782_v42  ;;  %v616_v38 = vld [vmem:[#allocation5 + $0xfb0] sm:$0xff]  ;;  %v617_v40 = vld [vmem:[#allocation5 + $0xfb8] sm:$0xff]  ;;  %v5836_v42 = vcombine.low %v604_v23, %v608_v24 }
 0x269   :  { %4358 = vmatprep.subr.bf16.mxu0 %v5789_v43  ;;  %4563 = vmatprep.subr.bf16.mxu1 %v5791_v26  ;;  %v5838_v43 = vcombine.low %v605_v25, %v609_v28  ;;  %v5845_v44 = vcombine.high %v612_v7, %v616_v38  ;;  %v5847_v26 = vcombine.high %v613_v39, %v617_v40  ;;  %v664_v23 = vld [vmem:[#allocation5 + $0x1130] sm:$0xff]  ;;  %v661_v24 = vld [vmem:[#allocation5 + $0x1118] sm:$0xff] }
 0x26a   :  { %v665_v25 = vld [vmem:[#allocation5 + $0x1138] sm:$0xff]  ;;  %v5884_v28 = vcombine.low %v652_v14, %v656_v16 }
 0x26c   :  { %4359 = vmatpush1.bf16.msra.mxu0 %v5788_v49  ;;  %4564 = vmatpush1.bf16.msra.mxu1 %v5790_v27  ;;  %v5844_v49 = vcombine.low %v612_v7, %v616_v38  ;;  %v5846_v27 = vcombine.low %v613_v39, %v617_v40  ;;  %v669_v7 = vld [vmem:[#allocation5 + $0x1158] sm:$0xff]  ;;  %v5894_v40 = vcombine.low %v661_v24, %v665_v25 }
 0x26d   :  { %4360 = vmatprep.subr.bf16.mxu0 %v5797_v51  ;;  %4565 = vmatprep.subr.bf16.mxu1 %v5799_v54  ;;  %v5853_v51 = vcombine.high %v620_v45, %v624_v46  ;;  %v5855_v54 = vcombine.high %v621_v47, %v625_v48  ;;  %v673_v38 = vld [vmem:[#allocation5 + $0x1178] sm:$0xff] }
 0x270   :  { %4361 = vmatpush1.bf16.msra.mxu0 %v5796_v59  ;;  %4566 = vmatpush1.bf16.msra.mxu1 %v5798_v60  ;;  %v5852_v59 = vcombine.low %v620_v45, %v624_v46  ;;  %v5854_v60 = vcombine.low %v621_v47, %v625_v48  ;;  %v677_v45 = vld [vmem:[#allocation5 + $0x1198] sm:$0xff]  ;;  %v5902_v48 = vcombine.low %v669_v7, %v673_v38 }
 0x271   :  { %4362 = vmatprep.subr.bf16.mxu0 %v5805_v63  ;;  %4567 = vmatprep.subr.bf16.mxu1 %v5807_v35  ;;  %v5861_v63 = vcombine.high %v628_v55, %v632_v56  ;;  %v5863_v35 = vcombine.high %v629_v57, %v633_v58  ;;  %v681_v46 = vld [vmem:[#allocation5 + $0x11b8] sm:$0xff] }
 0x274   :  { %4363 = vmatpush1.bf16.msra.mxu0 %v5804_v2  ;;  %4568 = vmatpush1.bf16.msra.mxu1 %v5806_v3  ;;  %v5860_v2 = vcombine.low %v628_v55, %v632_v56  ;;  %v5862_v3 = vcombine.low %v629_v57, %v633_v58  ;;  %v685_v55 = vld [vmem:[#allocation5 + $0x11d8] sm:$0xff]  ;;  %v5910_v58 = vcombine.low %v677_v45, %v681_v46 }
 0x275   :  { %4364 = vmatprep.subr.bf16.mxu0 %v5813_v4  ;;  %4569 = vmatprep.subr.bf16.mxu1 %v5815_v5  ;;  %v5869_v4 = vcombine.high %v636_v0, %v640_v41  ;;  %v5871_v5 = vcombine.high %v637_v1, %v641_v18  ;;  %v689_v56 = vld [vmem:[#allocation5 + $0x11f8] sm:$0xff] }
 0x278   :  { %4365 = vmatpush1.bf16.msra.mxu0 %v5812_v33  ;;  %4570 = vmatpush1.bf16.msra.mxu1 %v5814_v11  ;;  %v5868_v33 = vcombine.low %v636_v0, %v640_v41  ;;  %v5870_v11 = vcombine.low %v637_v1, %v641_v18  ;;  %v720_v0 = vlaneseq  ;;  %v693_v41 = vld [vmem:[#allocation5 + $0x1218] sm:$0xff] }
 0x279   :  { %4366 = vmatprep.subr.bf16.mxu0 %v5821_v12  ;;  %4571 = vmatprep.subr.bf16.mxu1 %v5823_v13  ;;  %v5877_v12 = vcombine.high %v644_v6, %v648_v9  ;;  %v5879_v13 = vcombine.high %v645_v10, %v649_v50  ;;  %v697_v1 = vld [vmem:[#allocation5 + $0x1238] sm:$0xff] }
 0x27c   :  { %4367 = vmatpush1.bf16.msra.mxu0 %v5820_v20  ;;  %4572 = vmatpush1.bf16.msra.mxu1 %v5822_v21  ;;  %v5876_v20 = vcombine.low %v644_v6, %v648_v9  ;;  %v5885_v21 = vcombine.high %v652_v14, %v656_v16  ;;  %v704_v6 = vld [vmem:[#allocation5 + $0x1270] sm:$0xff]  ;;  %v6616_v9 = vshrl.u32 %v720_v0, 7  ;;  %v6220_v0 = vld [vmem:[#allocation8 + $0x98] sm:$0xff]  }
 0x27d   :  { %4368 = vmatprep.subr.bf16.mxu0 %v5829_v22  ;;  %4573 = vmatprep.subr.bf16.mxu1 %v5831_v61  ;;  %v5887_v22 = vcombine.high %v653_v17, %v657_v19  ;;  %v660_v61 = vld [vmem:[#allocation5 + $0x1110] sm:$0xff] }
 0x27e   :  { %v5892_v39 = vcombine.low %v660_v61, %v664_v23  ;;  %v708_v14 = vld [vmem:[#allocation5 + $0x1290] sm:$0xff] }
 0x27f   :  { %v712_v16 = vld [vmem:[#allocation5 + $0x12b0] sm:$0xff] }
 0x280   :  { %4369 = vmatpush1.bf16.msra.mxu0 %v5828_v29  ;;  %4574 = vmatpush1.bf16.msra.mxu1 %v5830_v30  ;;  %v5886_v29 = vcombine.low %v653_v17, %v657_v19  ;;  %v5893_v30 = vcombine.high %v660_v61, %v664_v23  ;;  %v716_v17 = vld [vmem:[#allocation5 + $0x12d0] sm:$0x11]  ;;  %v726_v19 = vsub.s32 1, %v6616_v9  ;;  %v734_v61 = vsub.s32 3, %v6616_v9 }
 0x281   :  { %4370 = vmatprep.subr.bf16.mxu0 %v5837_v15  ;;  %4575 = vmatprep.subr.bf16.mxu1 %v5839_v36  ;;  %v668_v15 = vld [vmem:[#allocation5 + $0x1150] sm:$0xff] }
 0x282   :  { %v672_v36 = vld [vmem:[#allocation5 + $0x1170] sm:$0xff] }
 0x283   :  { %v5900_v47 = vcombine.low %v668_v15, %v672_v36 }
 0x284   :  { %4371 = vmatpush1.bf16.msra.mxu0 %v5836_v42  ;;  %4576 = vmatpush1.bf16.msra.mxu1 %v5838_v43  ;;  %v5901_v42 = vcombine.high %v668_v15, %v672_v36  ;;  %v5903_v43 = vcombine.high %v669_v7, %v673_v38  ;;  %v5940_v36 = vcombine.low %v708_v14, %v712_v16 }
 0x285   :  { %4372 = vmatprep.subr.bf16.mxu0 %v5845_v44  ;;  %4577 = vmatprep.subr.bf16.mxu1 %v5847_v26  ;;  %v676_v44 = vld [vmem:[#allocation5 + $0x1190] sm:$0xff]  ;;  %v5948_v7 = vcombine.low %v716_v17, %v716_v17 }
 0x286   :  { %v680_v26 = vld [vmem:[#allocation5 + $0x11b0] sm:$0xff] }
 0x287   :  { %v5908_v57 = vcombine.low %v676_v44, %v680_v26 }
 0x288   :  { %4373 = vmatpush1.bf16.msra.mxu0 %v5844_v49  ;;  %4578 = vmatpush1.bf16.msra.mxu1 %v5846_v27  ;;  %v5909_v49 = vcombine.high %v676_v44, %v680_v26  ;;  %v5911_v27 = vcombine.high %v677_v45, %v681_v46  ;;  %v3800_v26 = vand.u32 %v5948_v7, %v6576_v31  ;;  %v6205_v46 = vld [vmem:[#allocation8 + $0x40] sm:$0xff]   ;;  %v6244_v7 = vld [vmem:[#allocation8 + $0x188] sm:$0xff]  }
 0x289   :  { %4374 = vmatprep.subr.bf16.mxu0 %v5853_v51  ;;  %4579 = vmatprep.subr.bf16.mxu1 %v5855_v54  ;;  %v684_v51 = vld [vmem:[#allocation5 + $0x11d0] sm:$0xff] }
 0x28a   :  { %v688_v54 = vld [vmem:[#allocation5 + $0x11f0] sm:$0xff] }
 0x28b   :  { %v5916_v18 = vcombine.low %v684_v51, %v688_v54 }
 0x28c   :  { %4375 = vmatpush1.bf16.msra.mxu0 %v5852_v59  ;;  %4580 = vmatpush1.bf16.msra.mxu1 %v5854_v60  ;;  %v5917_v59 = vcombine.high %v684_v51, %v688_v54  ;;  %v5919_v60 = vcombine.high %v685_v55, %v689_v56  ;;  %v6208_v51 = vld [vmem:[#allocation8 + $0x80] sm:$0xff]   ;;  %v6210_v54 = vld [vmem:[#allocation8 + $0xc8] sm:$0xff]  }
 0x28d   :  { %4385 = vmatprep.subr.bf16.mxu0 %v5861_v63  ;;  %4590 = vmatprep.subr.bf16.mxu1 %v5863_v35  ;;  %v692_v63 = vld [vmem:[#allocation5 + $0x1210] sm:$0xff] }
 0x28e   :  { %v696_v35 = vld [vmem:[#allocation5 + $0x1230] sm:$0xff] }
 0x28f   :  { %4377 = vmatmul.mubr.bf16.vlgmr.msra.gmra.mrb[4].mxu0 %v6566_v62  ;;  %4582 = vmatmul.mubr.bf16.vlgmr.msra.gmra.mrb[4].mxu1 %v6566_v62  ;;  %v5878_v62 = vcombine.low %v645_v10, %v649_v50  ;;  %v701_v10 = vld [vmem:[#allocation5 + $0x1258] sm:$0xff] }
 0x290   :  { %4386 = vmatpush1.bf16.msra.mxu0 %v5860_v2  ;;  %4591 = vmatpush1.bf16.msra.mxu1 %v5862_v3  ;;  %v5918_v2 = vcombine.low %v685_v55, %v689_v56  ;;  %v5925_v3 = vcombine.high %v692_v63, %v696_v35  ;;  %v705_v50 = vld [vmem:[#allocation5 + $0x1278] sm:$0xff]  ;;  %v6212_v56 = vld [vmem:[#allocation8 + $0x88] sm:$0xff]  }
 0x291   :  { %4387 = vmatprep.subr.bf16.mxu0 %v5869_v4  ;;  %4592 = vmatprep.subr.bf16.mxu1 %v5871_v5  ;;  %v5927_v4 = vcombine.high %v693_v41, %v697_v1  ;;  %v700_v5 = vld [vmem:[#allocation5 + $0x1250] sm:$0xff] }
 0x292   :  { %5954 = vmatprep.mubr.msk.bf16.mxu0 %vm3780_vm0, %v6568_v8  ;;  %5955 = vmatprep.mubr.msk.bf16.mxu1 %vm3780_vm0, %v6568_v8  ;;  %v5895_v8 = vcombine.high %v661_v24, %v665_v25  ;;  %v5932_v23 = vcombine.low %v700_v5, %v704_v6  ;;  %v5934_v24 = vcombine.low %v701_v10, %v705_v50 }
 0x293   :  { %v5941_v25 = vcombine.high %v708_v14, %v712_v16  ;;  %v6231_v14 = vld [vmem:[#allocation8 + $0x30] sm:$0xff]  }
 0x294   :  { %4388 = vmatpush1.bf16.msra.mxu0 %v5868_v33  ;;  %4593 = vmatpush1.bf16.msra.mxu1 %v5870_v11  ;;  %v5924_v33 = vcombine.low %v692_v63, %v696_v35  ;;  %v5926_v11 = vcombine.low %v693_v41, %v697_v1  ;;  %v6217_v63 = vld [vmem:[#allocation8 + $0x58] sm:$0xff]   ;;  %v6221_v41 = vld [vmem:[#allocation8 + $0x60] sm:$0xff]  }
 0x295   :  { %4389 = vmatprep.subr.bf16.mxu0 %v5877_v12  ;;  %4594 = vmatprep.subr.bf16.mxu1 %v5879_v13  ;;  %v5933_v12 = vcombine.high %v700_v5, %v704_v6  ;;  %v5935_v13 = vcombine.high %v701_v10, %v705_v50  ;;  %v6218_v35 = vld [vmem:[#allocation8 + $0xd8] sm:$0xff]   ;;  %v6222_v1 = vld [vmem:[#allocation8 + $0xe0] sm:$0xff]   ;;  %v730_v5 = vsub.s32 2, %v6616_v9  ;;  %v6226_v6 = vld [vmem:[#allocation8 + $0xe8] sm:$0xff]  }
 0x296   :  { %v6227_v10 = vld [vmem:[#allocation8 + $0x28] sm:$0xff]  }
 0x298   :  { %4390 = vmatpush1.bf16.msra.mxu0 %v5876_v20  ;;  %4595 = vmatpush1.bf16.msra.mxu1 %v5878_v62  ;;  %v709_v20 = vld [vmem:[#allocation5 + $0x1298] sm:$0xff] }
 0x299   :  { %4391 = vmatprep.subr.bf16.mxu0 %v5885_v21  ;;  %4596 = vmatprep.subr.bf16.mxu1 %v5887_v22  ;;  %v713_v62 = vld [vmem:[#allocation5 + $0x12b8] sm:$0xff]  ;;  %v6619_v22 = vld [vmem:[#allocation7] sm:$0xff] }
 0x29a   :  { %v717_v21 = vld [vmem:[#allocation5 + $0x12d8] sm:$0x11]  ;;  %v735_v15 = vrot.slane %v6619_v22, %v734_v61  ;;  %v5942_v38 = vcombine.low %v709_v20, %v713_v62 }
 0x29c   :  { %4392 = vmatpush1.bf16.msra.mxu0 %v5884_v28  ;;  %4597 = vmatpush1.bf16.msra.mxu1 %v5886_v29  ;;  %v5949_v28 = vcombine.high %v716_v17, %v716_v17  ;;  %v5943_v29 = vcombine.high %v709_v20, %v713_v62  ;;  %v6112_v44 = vadd.f32 %v6608_v37, %v735_v15  ;;  %v6232_v17 = vld [vmem:[#allocation8 + $0xb0] sm:$0xff]   ;;  %v6234_v62 = vld [vmem:[#allocation8 + $0xf8] sm:$0xff]   ;;  %v6242_v15 = vld [vmem:[#allocation8 + $0x1c8] sm:$0xff]  }
 0x29d   :  { %4393 = vmatprep.subr.bf16.mxu0 %v5893_v30  ;;  %4598 = vmatprep.subr.bf16.mxu1 %v5895_v8  ;;  %v5951_v30 = vcombine.high %v717_v21, %v717_v21  ;;  %v727_v8 = vrot.slane %v6619_v22, %v726_v19  ;;  %v6233_v19 = vld [vmem:[#allocation8 + $0x78] sm:$0xff]  }
 0x2a0   :  { %4394 = vmatpush1.bf16.msra.mxu0 %v5892_v39  ;;  %4599 = vmatpush1.bf16.msra.mxu1 %v5894_v40  ;;  %v3803_v39 = vand.u32 %v5949_v28, %v6576_v31  ;;  %v5950_v40 = vcombine.low %v717_v21, %v717_v21  ;;  %v6235_v21 = vld [vmem:[#allocation8 + $0x38] sm:$0xff]   ;;  %v6238_v28 = vld [vmem:[#allocation8 + $0x1c0] sm:$0xff]  }
 0x2a1   :  { %4395 = vmatprep.subr.bf16.mxu0 %v5901_v42  ;;  %4600 = vmatprep.subr.bf16.mxu1 %v5903_v43  ;;  %v3809_v42 = vand.u32 %v5951_v30, %v6576_v31  ;;  %v6110_v43 = vadd.f32 %v6606_v34, %v727_v8  ;;  %v6209_v34 = vld [vmem:[#allocation8 + $0x48] sm:$0xff]   ;;  %v6240_v30 = vld [vmem:[#allocation8 + $0x180] sm:$0xff]  }
 0x2a2   :  { %v3806_v45 = vand.u32 %v5950_v40, %v6576_v31  ;;  %v6211_v31 = vld [vmem:[#allocation8 + $0x8] sm:$0xff]   ;;  %v6247_v40 = vld [vmem:[#allocation8 + $0x110] sm:$0xff]  }
 0x2a3   :  { %v6241_v8 = vld [vmem:[#allocation8 + $0x148] sm:$0xff]  }
 0x2a4   :  { %4396 = vmatpush1.bf16.msra.mxu0 %v5900_v47  ;;  %4601 = vmatpush1.bf16.msra.mxu1 %v5902_v48  ;;  %v6206_v47 = vld [vmem:[#allocation8 + $0xc0] sm:$0xff]   ;;  %v4632_v48 = vmax.f32 %v6110_v43, 0.0  ;;  %v6249_v43 = vld [vmem:[#allocation8 + $0x158] sm:$0xff]  }
 0x2a5   :  { %4397 = vmatprep.subr.bf16.mxu0 %v5909_v49  ;;  %4602 = vmatprep.subr.bf16.mxu1 %v5911_v27  ;;  %v4634_v49 = vmax.f32 %v6112_v44, 0.0  ;;  %v6207_v27 = vld [vmem:[#allocation8] sm:$0xff]   ;;  %v6250_v44 = vld [vmem:[#allocation8 + $0x1d8] sm:$0xff]  }
 0x2a6   :  { %v4640_v37 = vpack.c.bf16 %v4632_v48, %v4632_v48  ;;  %v6255_v48 = vld [vmem:[#allocation8 + $0x120] sm:$0xff]  }
 0x2a7   :  { %v4642_v55 = vpack.c.bf16 %v4634_v49, %v4634_v49  ;;  %v6256_v49 = vld [vmem:[#allocation8 + $0x1a0] sm:$0xff]  }
 0x2a8   :  { %4398 = vmatpush1.bf16.msra.mxu0 %v5908_v57  ;;  %4603 = vmatpush1.bf16.msra.mxu1 %v5910_v58  ;;  %v6213_v57 = vld [vmem:[#allocation8 + $0x50] sm:$0xff]  }
 0x2a9   :  { %4399 = vmatprep.subr.bf16.mxu0 %v5917_v59  ;;  %4604 = vmatprep.subr.bf16.mxu1 %v5919_v60  ;;  %v6214_v58 = vld [vmem:[#allocation8 + $0xd0] sm:$0xff]  }
 0x2aa   :  { %v6215_v59 = vld [vmem:[#allocation8 + $0x10] sm:$0xff]  }
 0x2ab   :  { %v6216_v60 = vld [vmem:[#allocation8 + $0x90] sm:$0xff]  }
 0x2ac   :  { %4400 = vmatpush1.bf16.msra.mxu0 %v5916_v18  ;;  %4605 = vmatpush1.bf16.msra.mxu1 %v5918_v2  ;;  %v6223_v18 = vld [vmem:[#allocation8 + $0x20] sm:$0xff]   ;;  %v722_v2 = vsub.s32 0, %v6616_v9 }
 0x2ad   :  { %4401 = vmatprep.subr.bf16.mxu0 %v5925_v3  ;;  %4606 = vmatprep.subr.bf16.mxu1 %v5927_v4  ;;  %v6224_v3 = vld [vmem:[#allocation8 + $0xa0] sm:$0xff]   ;;  %v6225_v4 = vld [vmem:[#allocation8 + $0x68] sm:$0xff]  }
 0x2ae   :  { %v723_v50 = vrot.slane %v6619_v22, %v722_v2 }
 0x2b0   :  { %4402 = vmatpush1.bf16.msra.mxu0 %v5924_v33  ;;  %4607 = vmatpush1.bf16.msra.mxu1 %v5926_v11  ;;  %v6228_v33 = vld [vmem:[#allocation8 + $0xa8] sm:$0xff]   ;;  %v6229_v11 = vld [vmem:[#allocation8 + $0x70] sm:$0xff]   ;;  %v6109_v16 = vadd.f32 %v6602_v53, %v723_v50  ;;  %v6239_v53 = vld [vmem:[#allocation8 + $0x100] sm:$0xff]  }
 0x2b1   :  { %4403 = vmatprep.subr.bf16.mxu0 %v5933_v12  ;;  %4608 = vmatprep.subr.bf16.mxu1 %v5935_v13  ;;  %v731_v12 = vrot.slane %v6619_v22, %v730_v5  ;;  %v6230_v13 = vld [vmem:[#allocation8 + $0xf0] sm:$0xff]  }
 0x2b2   :  { %v4631_v61 = vmax.f32 %v6109_v16, 0.0 }
 0x2b3   :  { %v6111_v20 = vadd.f32 %v6604_v32, %v731_v12 }
 0x2b4   :  { %4404 = vmatpush1.bf16.msra.mxu0 %v5932_v23  ;;  %4609 = vmatpush1.bf16.msra.mxu1 %v5934_v24  ;;  %v6236_v23 = vld [vmem:[#allocation8 + $0xb8] sm:$0xff]   ;;  %v6237_v24 = vld [vmem:[#allocation8 + $0x140] sm:$0xff]  }
 0x2b5   :  { %4405 = vmatprep.subr.bf16.mxu0 %v5941_v25  ;;  %4610 = vmatprep.subr.bf16.mxu1 %v5943_v29  ;;  %v4633_v25 = vmax.f32 %v6111_v20, 0.0  ;;  %v4639_v29 = vpack.c.bf16 %v4631_v61, %v4631_v61 }
 0x2b7   :  { %v4641_v32 = vpack.c.bf16 %v4633_v25, %v4633_v25  ;;  %v5956_v25 = vld [vmem:[#allocation10] ss:$0 sm:$0xff] }
 0x2b8   :  { %4406 = vmatpush1.bf16.msra.mxu0 %v5940_v36  ;;  %4611 = vmatpush1.bf16.msra.mxu1 %v5942_v38  ;;  %v6243_v36 = vld [vmem:[#allocation8 + $0x108] sm:$0xff]   ;;  %v6245_v38 = vld [vmem:[#allocation8 + $0x150] sm:$0xff]  }
 0x2b9   :  { %4407 = vmatprep.subr.bf16.mxu0 %v3803_v39  ;;  %4612 = vmatprep.subr.bf16.mxu1 %v3809_v42  ;;  %v6246_v39 = vld [vmem:[#allocation8 + $0x1d0] sm:$0xff]  }
 0x2ba   :  { %v6248_v42 = vld [vmem:[#allocation8 + $0x190] sm:$0xff]  }
 0x2bc   :  { %4408 = vmatpush1.bf16.msra.mxu0 %v3800_v26  ;;  %4613 = vmatpush1.bf16.msra.mxu1 %v3806_v45  ;;  %v6251_v26 = vld [vmem:[#allocation8 + $0x118] sm:$0xff]  }
 0x2bd   :  { %6021 = vmatprep.subr.bf16.mxu0 %v6205_v46  ;;  %6043 = vmatprep.subr.bf16.mxu1 %v6206_v47  ;;  %v6252_v45 = vld [vmem:[#allocation8 + $0x198] sm:$0xff]   ;;  %v6253_v46 = vld [vmem:[#allocation8 + $0x160] sm:$0xff]  }
 0x2be   :  { %v6254_v47 = vld [vmem:[#allocation8 + $0x1e0] sm:$0xff]  }
 0x2bf   :  { %4418 = vmatmul.mubr.bf16.vlgmr.msra.gmra.mrb[4].mxu0 %v6584_v52  ;;  %4623 = vmatmul.mubr.bf16.vlgmr.msra.gmra.mrb[4].mxu1 %v6584_v52  ;;  %v6219_v52 = vld [vmem:[#allocation8 + $0x18] sm:$0xff]  }
 0x2c0   :  { %6022 = vmatpush3.bf16.msra.mxu0 %v6207_v27  ;;  %5198 = vmatprep.mubr.bf16.mxu0 %v4640_v37  ;;  %v6257_v27 = vld [vmem:[#allocation8 + $0x168] sm:$0xff]  }
 0x2c1   :  { %6044 = vmatpush3.bf16.msra.mxu1 %v6208_v51  ;;  %5238 = vmatprep.mubr.bf16.mxu1 %v4642_v55  ;;  %v6258_v51 = vld [vmem:[#allocation8 + $0x1e8] sm:$0xff]   ;;  %v6262_v55 = vld [vmem:[#allocation8 + $0x1f0] sm:$0xff]  }
 0x2c2   :  { %6023 = vmatprep.subr.bf16.mxu0 %v6209_v34  ;;  %6045 = vmatprep.subr.bf16.mxu1 %v6210_v54  ;;  %v6259_v34 = vld [vmem:[#allocation8 + $0x128] sm:$0xff]   ;;  %v6261_v54 = vld [vmem:[#allocation8 + $0x170] sm:$0xff]  }
 0x2c3   :  { %v6260_v37 = vld [vmem:[#allocation8 + $0x1a8] sm:$0xff]  }
 0x2c4   :  { %6024 = vmatpush3.bf16.msra.mxu0 %v6211_v31  ;;  %v6263_v31 = vld [vmem:[#allocation8 + $0x130] sm:$0xff]  }
 0x2c5   :  { %6046 = vmatpush3.bf16.msra.mxu1 %v6212_v56  ;;  %6025 = vmatprep.subr.bf16.mxu0 %v6213_v57  ;;  %v6264_v56 = vld [vmem:[#allocation8 + $0x1b0] sm:$0xff]   ;;  %v6265_v57 = vld [vmem:[#allocation8 + $0x178] sm:$0xff]  }
 0x2c6   :  { %6047 = vmatprep.subr.bf16.mxu1 %v6214_v58  ;;  %v6266_v58 = vld [vmem:[#allocation8 + $0x1f8] sm:$0xff]  }
 0x2c8   :  { %6026 = vmatpush3.bf16.msra.mxu0 %v6215_v59  ;;  %v6267_v59 = vld [vmem:[#allocation8 + $0x138] sm:$0xff]  }
 0x2c9   :  { %6048 = vmatpush3.bf16.msra.mxu1 %v6216_v60  ;;  %6027 = vmatprep.subr.bf16.mxu0 %v6217_v63  ;;  %v6268_v60 = vld [vmem:[#allocation8 + $0x1b8] sm:$0xff]   ;;  %v738_v63 = vsub.s32 4, %v6616_v9 }
 0x2ca   :  { %6049 = vmatprep.subr.bf16.mxu1 %v6218_v35  ;;  %v746_v35 = vsub.s32 6, %v6616_v9 }
 0x2cc   :  { %6028 = vmatpush3.bf16.msra.mxu0 %v6219_v52  ;;  %v742_v52 = vsub.s32 5, %v6616_v9 }
 0x2cd   :  { %6050 = vmatpush3.bf16.msra.mxu1 %v6220_v0  ;;  %6029 = vmatprep.subr.bf16.mxu0 %v6221_v41  ;;  %v750_v0 = vsub.s32 7, %v6616_v9  ;;  %v739_v41 = vrot.slane %v6619_v22, %v738_v63 }
 0x2ce   :  { %6051 = vmatprep.subr.bf16.mxu1 %v6222_v1  ;;  %v747_v1 = vrot.slane %v6619_v22, %v746_v35 }
 0x2cf   :  { %v751_v2 = vrot.slane %v6619_v22, %v750_v0 }
 0x2d0   :  { %6030 = vmatpush3.bf16.msra.mxu0 %v6223_v18  ;;  %v743_v18 = vrot.slane %v6619_v22, %v742_v52 }
 0x2d1   :  { %6052 = vmatpush3.bf16.msra.mxu1 %v6224_v3  ;;  %6031 = vmatprep.subr.bf16.mxu0 %v6225_v4 }
 0x2d2   :  { %6053 = vmatprep.subr.bf16.mxu1 %v6226_v6 }
 0x2d4   :  { %6032 = vmatpush3.bf16.msra.mxu0 %v6227_v10 }
 0x2d5   :  { %6054 = vmatpush3.bf16.msra.mxu1 %v6228_v33  ;;  %6033 = vmatprep.subr.bf16.mxu0 %v6229_v11 }
 0x2d6   :  { %6055 = vmatprep.subr.bf16.mxu1 %v6230_v13 }
 0x2d8   :  { %6034 = vmatpush3.bf16.msra.mxu0 %v6231_v14 }
 0x2d9   :  { %6056 = vmatpush3.bf16.msra.mxu1 %v6232_v17  ;;  %6035 = vmatprep.subr.bf16.mxu0 %v6233_v19 }
 0x2da   :  { %6057 = vmatprep.subr.bf16.mxu1 %v6234_v62 }
 0x2dc   :  { %6036 = vmatpush3.bf16.msra.mxu0 %v6235_v21 }
 0x2dd   :  { %6058 = vmatpush3.bf16.msra.mxu1 %v6236_v23  ;;  %6065 = vmatprep.subr.bf16.mxu0 %v6237_v24 }
 0x2de   :  { %6087 = vmatprep.subr.bf16.mxu1 %v6238_v28 }
 0x2df   :  { %5199 = vmatmul.mubr.bf16.vlgmr.msra.gmra.mrb[8].mxu0 %v4639_v29 }
 0x2e0   :  { %5239 = vmatmul.mubr.bf16.vlgmr.msra.gmra.mrb[8].mxu1 %v4641_v32  ;;  %6066 = vmatpush3.bf16.msra.mxu0 %v6239_v53 }
 0x2e1   :  { %6088 = vmatpush3.bf16.msra.mxu1 %v6240_v30  ;;  %6067 = vmatprep.subr.bf16.mxu0 %v6241_v8 }
 0x2e2   :  { %6089 = vmatprep.subr.bf16.mxu1 %v6242_v15 }
 0x2e4   :  { %6068 = vmatpush3.bf16.msra.mxu0 %v6243_v36 }
 0x2e5   :  { %6090 = vmatpush3.bf16.msra.mxu1 %v6244_v7  ;;  %6069 = vmatprep.subr.bf16.mxu0 %v6245_v38 }
 0x2e6   :  { %6091 = vmatprep.subr.bf16.mxu1 %v6246_v39 }
 0x2e8   :  { %6070 = vmatpush3.bf16.msra.mxu0 %v6247_v40 }
 0x2e9   :  { %6092 = vmatpush3.bf16.msra.mxu1 %v6248_v42  ;;  %6071 = vmatprep.subr.bf16.mxu0 %v6249_v43 }
 0x2ea   :  { %6093 = vmatprep.subr.bf16.mxu1 %v6250_v44 }
 0x2ec   :  { %6072 = vmatpush3.bf16.msra.mxu0 %v6251_v26 }
 0x2ed   :  { %6094 = vmatpush3.bf16.msra.mxu1 %v6252_v45  ;;  %6073 = vmatprep.subr.bf16.mxu0 %v6253_v46 }
 0x2ee   :  { %6095 = vmatprep.subr.bf16.mxu1 %v6254_v47 }
 0x2f0   :  { %6074 = vmatpush3.bf16.msra.mxu0 %v6255_v48 }
 0x2f1   :  { %6096 = vmatpush3.bf16.msra.mxu1 %v6256_v49  ;;  %6075 = vmatprep.subr.bf16.mxu0 %v6257_v27 }
 0x2f2   :  { %6097 = vmatprep.subr.bf16.mxu1 %v6258_v51 }
 0x2f4   :  { %6076 = vmatpush3.bf16.msra.mxu0 %v6259_v34 }
 0x2f5   :  { %6098 = vmatpush3.bf16.msra.mxu1 %v6260_v37  ;;  %6077 = vmatprep.subr.bf16.mxu0 %v6261_v54 }
 0x2f6   :  { %6099 = vmatprep.subr.bf16.mxu1 %v6262_v55 }
 0x2f8   :  { %6078 = vmatpush3.bf16.msra.mxu0 %v6263_v31 }
 0x2f9   :  { %6100 = vmatpush3.bf16.msra.mxu1 %v6264_v56  ;;  %6079 = vmatprep.subr.bf16.mxu0 %v6265_v57 }
 0x2fa   :  { %6101 = vmatprep.subr.bf16.mxu1 %v6266_v58 }
 0x2fc   :  { %6080 = vmatpush3.bf16.msra.mxu0 %v6267_v59 }
 0x2fd   :  { %6102 = vmatpush3.bf16.msra.mxu1 %v6268_v60 }
 0x392   :  { %v4419_v3 = vpop.f32.mrb[4].mxu0  ;;  %v4624_v5 = vpop.f32.mrb[4].mxu1 }
 0x393   :  { %v6113_v4 = vadd.f32 %v4419_v3, %v739_v41  ;;  %v4421_v6 = vpop.f32.mrb[5].mxu0  ;;  %v6115_v10 = vadd.f32 %v4624_v5, %v747_v1  ;;  %v4626_v33 = vpop.f32.mrb[5].mxu1 }
 0x394   :  { %v6114_v50 = vadd.f32 %v4421_v6, %v743_v18  ;;  %v4423_v11 = vpop.f32.mrb[6].mxu0  ;;  %v6116_v13 = vadd.f32 %v4626_v33, %v751_v2  ;;  %v4628_v14 = vpop.f32.mrb[6].mxu1 }
 0x395   :  { %v4635_v12 = vmax.f32 %v6113_v4, 0.0  ;;  %v4424_v9 = vpop.f32.mrb[7].mxu0  ;;  %v4637_v16 = vmax.f32 %v6115_v10, 0.0  ;;  %v4629_v19 = vpop.f32.mrb[7].mxu1 }
 0x396   :  { %v4636_v17 = vmax.f32 %v6114_v50, 0.0  ;;  %v4638_v20 = vmax.f32 %v6116_v13, 0.0 }
 0x397   :  { %v4643_v21 = vpack.c.bf16 %v4635_v12, %v4635_v12  ;;  %v4645_v22 = vpack.c.bf16 %v4637_v16, %v4637_v16 }
 0x398   :  { %v4644_v62 = vpack.c.bf16 %v4636_v17, %v4636_v17  ;;  %v4646_v61 = vpack.c.bf16 %v4638_v20, %v4638_v20 }
 0x39a   :  { %5278 = vmatprep.mubr.bf16.mxu0 %v4644_v62  ;;  %5318 = vmatprep.mubr.bf16.mxu1 %v4646_v61 }
 0x39b   :  { %5279 = vmatmul.mubr.bf16.vlgmr.msra.gmra.mrb[12].mxu0 %v4643_v21  ;;  %5319 = vmatmul.mubr.bf16.vlgmr.msra.gmra.mrb[12].mxu1 %v4645_v22 }
 0x3b2   :  { %v6037_v23 = vpop.f32.mrb[8].mxu0 }
 0x3b3   :  { %v6059_v24 = vpop.f32.mrb[8].mxu1  ;;  %v6038_v28 = vpop.f32.mrb[9].mxu0 }
 0x3b4   :  { %v6039_v53 = vadd.f32 %v6038_v28, %v6037_v23  ;;  %v6060_v29 = vpop.f32.mrb[9].mxu1  ;;  %v6040_v30 = vpop.f32.mrb[10].mxu0 }
 0x3b5   :  { %v6061_v8 = vadd.f32 %v6060_v29, %v6059_v24  ;;  %v6062_v32 = vpop.f32.mrb[10].mxu1  ;;  %v6041_v15 = vpop.f32.mrb[11].mxu0 }
 0x3b6   :  { %v5201_v36 = vadd.f32 %v6039_v53, %v5956_v25  ;;  %v6063_v7 = vpop.f32.mrb[11].mxu1 }
 0x3b8   :  { %v5241_v38 = vadd.f32 %v6061_v8, %v5201_v36 }
 0x46e   :  { %v6081_v39 = vpop.f32.mrb[12].mxu0  ;;  %v6103_v40 = vpop.f32.mrb[12].mxu1 }
 0x46f   :  { %v6082_v42 = vpop.f32.mrb[13].mxu0  ;;  %v6104_v44 = vpop.f32.mrb[13].mxu1 }
 0x470   :  { %v6083_v43 = vadd.f32 %v6082_v42, %v6081_v39  ;;  %v6084_v26 = vpop.f32.mrb[14].mxu0  ;;  %v6105_v45 = vadd.f32 %v6104_v44, %v6103_v40  ;;  %v6106_v46 = vpop.f32.mrb[14].mxu1 }
 0x471   :  { %v6085_v47 = vpop.f32.mrb[15].mxu0  ;;  %v6107_v49 = vpop.f32.mrb[15].mxu1 }
 0x472   :  { %v5281_v48 = vadd.f32 %v6083_v43, %v5241_v38 }
 0x474   :  { %v5321_v27 = vadd.f32 %v6105_v45, %v5281_v48 }
 0x476   :  { %5326 = vst [vmem:[#allocation11] sm:$0xf] %v5321_v27 }
 0x477   :  { %6390 = shalt.err (!%p6387_p2)
}
 0x478   :  { %s6391_s6 = scalar_lea.hbm %s6663_s5, 64 }
 0x479   :  { %p6392_p3 = scmp.ne.s32.totalorder %s6663_s5, %s6391_s6  ;;  %p6395_p4 = scmp.lt.u32.totalorder %s6391_s6, %s6663_s5 }
 0x47b   :  { %p6397_p5 = pnand %p6395_p4, %p6392_p3 }
 0x47d   :  { %6400 = shalt.err (!%p6397_p5)
}
 0x47e   :  { %5336 = dma.vmem_to_hbm [thread:$0]  %s5334_s28, 64, %s6663_s5, [#allocation4]  }
 0x47f   :  { %6407 = dma.done.wait [#allocation4], 64  }
 0x480   :  { %6408 = vsyncadd [#allocation4], 4294967232 }
 0x481   :  { %5340 = vsyncpa [#allocation3], 1 }
 0x482   :  { %5341 = vsyncpa [#allocation6], 1 }
 0x483   :  { %5342 = vsyncpa [#allocation9], 1 }
 0x484   :  { %5343 = vsyncpa [#allocation4], 1 }

</bundles_post_ra>
